<compile_context>
chip_gen: v7x
topology: tpu7x:2x2x1
jax: 0.10.0
libtpu: 0.0.40
codegen_flags: <defaults>
</compile_context>

<pallas_src>
import jax
import jax.numpy as jnp
from jax.experimental import pallas as pl
from jax.experimental.pallas import tpu as pltpu

IN_FEATURES = 10000
H1 = 128    # 100 real + 28 zero-padded
H2 = 128    # 20 real  + 108 zero-padded
OUT = 128   # 2 real   + 126 padded (bias -1e30 -> softmax contribution 0)
REAL_H1, REAL_H2, REAL_OUT = 100, 20, 2
TB_MAX = 512  # largest batch tile; safe on v7x (64 MiB VMEM) with bf16 x


def _round_up(n, m):
    return ((n + m - 1) // m) * m


def simplenet_kernel(x_ref, w1_ref, b1_ref, w2_ref, b2_ref, w3_ref, b3_ref, o_ref):
    # x_ref: (TB, 10000) bf16   w1: (10000, 128) bf16   other weights/biases f32
    x = x_ref[...]

    # layer 1: relu(x @ W1 + b1) -- bf16 MXU matmul, f32 accumulate / VPU relu
    h1 = jnp.dot(x, w1_ref[...], preferred_element_type=jnp.float32) + b1_ref[...]
    h1 = jnp.maximum(h1, 0.0)

    # layer 2: relu(h1 @ W2 + b2)
    h2 = jnp.dot(h1, w2_ref[...], preferred_element_type=jnp.float32) + b2_ref[...]
    h2 = jnp.maximum(h2, 0.0)

    # layer 3 + softmax over the (padded) class dim. Padded classes carry bias
    # -1e30, so exp underflows to exactly 0 and they do not affect the result.
    logits = jnp.dot(h2, w3_ref[...], preferred_element_type=jnp.float32) + b3_ref[...]
    m = jnp.max(logits, axis=-1, keepdims=True)
    e = jnp.exp(logits - m)
    denom = jnp.sum(e, axis=-1, keepdims=True)
    o_ref[...] = (e * pl.reciprocal(denom, approx=True)).astype(o_ref.dtype)


def pack_params(params):
    """Pad weights/biases to lane-aligned shapes; W1 cast to bf16."""
    w1, b1, w2, b2, w3, b3 = params  # (10000,100),(1,100),(100,20),(1,20),(20,2),(1,2)
    w1p = jnp.zeros((IN_FEATURES, H1), jnp.bfloat16).at[:, :REAL_H1].set(
        w1.astype(jnp.bfloat16))
    b1p = jnp.zeros((1, H1), jnp.float32).at[:, :REAL_H1].set(b1)
    w2p = jnp.zeros((H1, H2), jnp.float32).at[:REAL_H1, :REAL_H2].set(w2)
    b2p = jnp.zeros((1, H2), jnp.float32).at[:, :REAL_H2].set(b2)
    w3p = jnp.zeros((H2, OUT), jnp.float32).at[:REAL_H2, :REAL_OUT].set(w3)
    b3p = jnp.full((1, OUT), -1e30, jnp.float32).at[:, :REAL_OUT].set(b3)
    return (w1p, b1p, w2p, b2p, w3p, b3p)


def simplenet_forward(x, packed_params):
    """x: (B, 1, 100, 100) or (B, 10000) float32. Returns (B, 2) softmax probs."""
    w1p, b1p, w2p, b2p, w3p, b3p = packed_params

    x2d = x.reshape(-1, IN_FEATURES).astype(jnp.bfloat16)   # x.view(-1, 10000)
    B = x2d.shape[0]

    # Batch tile: multiple of 8 sublanes, capped at TB_MAX; pad batch to a
    # multiple of TB (padded rows are sliced off below).
    TB = min(TB_MAX, _round_up(B, 8))
    B_pad = _round_up(B, TB)
    if B_pad != B:
        x2d = jnp.pad(x2d, ((0, B_pad - B), (0, 0)))
    grid = (pl.cdiv(B_pad, TB),)

    resident = lambda shape: pl.BlockSpec(shape, lambda i: (0, 0))

    # Computed VMEM budget: double-buffered x tile + W1 + out tiles + headroom.
    vmem_limit = min(
        48 * 1024 * 1024,
        2 * TB * IN_FEATURES * 2      # x tiles (bf16, 2 buffers)
        + 2 * IN_FEATURES * H1 * 2    # W1 (bf16)
        + 2 * TB * OUT * 4            # out tiles (f32, 2 buffers)
        + (8 << 20),                  # small weights, activations, slack
    )

    cost = pl.CostEstimate(
        flops=2 * B_pad * (IN_FEATURES * H1 + H1 * H2 + H2 * OUT),
        transcendentals=B_pad * OUT,
        bytes_accessed=(B_pad * IN_FEATURES * 2            # x (bf16)
                        + IN_FEATURES * H1 * 2             # W1 (bf16)
                        + (H1 * H2 + H2 * OUT + H1 + H2 + OUT) * 4
                        + B_pad * OUT * 4),                # out (f32)
    )

    out = pl.pallas_call(
        simplenet_kernel,
        out_shape=jax.ShapeDtypeStruct((B_pad, OUT), jnp.float32),
        grid=grid,
        in_specs=[
            pl.BlockSpec((TB, IN_FEATURES), lambda i: (i, 0)),   # streamed x
            resident((IN_FEATURES, H1)), resident((1, H1)),
            resident((H1, H2)),          resident((1, H2)),
            resident((H2, OUT)),         resident((1, OUT)),
        ],
        out_specs=pl.BlockSpec((TB, OUT), lambda i: (i, 0)),     # lane-dense store
        compiler_params=pltpu.CompilerParams(
            dimension_semantics=("parallel",),   # megacore-shard batch on v7x
            vmem_limit_bytes=int(vmem_limit),
        ),
        cost_estimate=cost,
    )(x2d, w1p, b1p, w2p, b2p, w3p, b3p)

    return out[:B, :REAL_OUT]


def init_params(key):
    """Deterministic synthetic params with nn.Linear fan-in init, stored (in, out)."""
    ks = jax.random.split(key, 6)

    def uniform(k, shape, fan_in):
        bound = 1.0 / jnp.sqrt(fan_in)
        return jax.random.uniform(k, shape, jnp.float32, -bound, bound)

    w1 = uniform(ks[0], (10000, 100), 10000.0)
    b1 = uniform(ks[1], (1, 100), 10000.0)
    w2 = uniform(ks[2], (100, 20), 100.0)
    b2 = uniform(ks[3], (1, 20), 100.0)
    w3 = uniform(ks[4], (20, 2), 20.0)
    b3 = uniform(ks[5], (1, 2), 20.0)
    return (w1, b1, w2, b2, w3, b3)


def reference_forward(x, params):
    """Pure-JAX reference with the same dtype policy (bf16 layer-1 operands)."""
    w1, b1, w2, b2, w3, b3 = params
    x = x.reshape(-1, IN_FEATURES)
    h1 = jax.nn.relu(
        jnp.dot(x.astype(jnp.bfloat16), w1.astype(jnp.bfloat16),
                preferred_element_type=jnp.float32) + b1)
    h2 = jax.nn.relu(h1 @ w2 + b2)
    return jax.nn.softmax(h2 @ w3 + b3, axis=-1)


if __name__ == "__main__":
    key = jax.random.PRNGKey(0)
    k_param, k_x = jax.random.split(key)
    params = init_params(k_param)
    packed = pack_params(params)

    # "image" input that x.view(-1, 10000) flattens: (2, 1, 100, 100)
    x = jax.random.normal(k_x, (2, 1, 100, 100), jnp.float32)

    out = simplenet_forward(x, packed)
    out = jax.block_until_ready(out)

    ref = reference_forward(x, params)
    assert out.shape == (2, 2)
    assert jnp.allclose(out, ref, atol=2e-3, rtol=2e-3), "mismatch vs JAX reference"
    assert jnp.allclose(jnp.sum(out, axis=-1), 1.0, atol=2e-3), "softmax rows must sum to ~1"

    print("KERNEL_OK")
</pallas_src>

<mosaic_0001>
module attributes {stable_mosaic.version = 11 : i64} {
  func.func @simplenet_kernel(%arg0: i32, %arg1: memref<8x10000xbf16, #tpu.memory_space<vmem>>, %arg2: memref<10000x128xbf16, #tpu.memory_space<vmem>>, %arg3: memref<1x128xf32, #tpu.memory_space<vmem>>, %arg4: memref<128x128xf32, #tpu.memory_space<vmem>>, %arg5: memref<1x128xf32, #tpu.memory_space<vmem>>, %arg6: memref<128x128xf32, #tpu.memory_space<vmem>>, %arg7: memref<1x128xf32, #tpu.memory_space<vmem>>, %arg8: memref<8x128xf32, #tpu.memory_space<vmem>>) attributes {dimension_semantics = [#tpu.dimension_semantics<parallel>], iteration_bounds = array<i64: 1>, scalar_prefetch = 0 : i64, scratch_operands = 0 : i64, tpu.core_type = #tpu.core_type<tc>, window_params = [{transform_indices = @transform_0, window_bounds = array<i64: 8, 10000>}, {pipeline_mode = #tpu.pipeline_mode<synchronous>, transform_indices = @transform_1, window_bounds = array<i64: 10000, 128>}, {pipeline_mode = #tpu.pipeline_mode<synchronous>, transform_indices = @transform_2, window_bounds = array<i64: 1, 128>}, {pipeline_mode = #tpu.pipeline_mode<synchronous>, transform_indices = @transform_3, window_bounds = array<i64: 128, 128>}, {pipeline_mode = #tpu.pipeline_mode<synchronous>, transform_indices = @transform_4, window_bounds = array<i64: 1, 128>}, {pipeline_mode = #tpu.pipeline_mode<synchronous>, transform_indices = @transform_5, window_bounds = array<i64: 128, 128>}, {pipeline_mode = #tpu.pipeline_mode<synchronous>, transform_indices = @transform_6, window_bounds = array<i64: 1, 128>}, {transform_indices = @transform_7, window_bounds = array<i64: 8, 128>}]} {
    %c0 = arith.constant 0 : index
    %c0_0 = arith.constant 0 : index
    %0 = vector.load %arg1[%c0, %c0_0] : memref<8x10000xbf16, #tpu.memory_space<vmem>>, vector<8x10000xbf16>
    %c0_1 = arith.constant 0 : index
    %c0_2 = arith.constant 0 : index
    %1 = vector.load %arg2[%c0_1, %c0_2] : memref<10000x128xbf16, #tpu.memory_space<vmem>>, vector<10000x128xbf16>
    %cst = arith.constant dense<0.000000e+00> : vector<8x128xf32>
    %2 = tpu.matmul %0, %1, %cst {dimension_numbers = #tpu.dot_dimension_numbers<[1], [0], [0], [1], [0, 0, 1, 1], [], []>} : vector<8x10000xbf16>, vector<10000x128xbf16>, vector<8x128xf32> -> vector<8x128xf32>
    %c0_3 = arith.constant 0 : index
    %c0_4 = arith.constant 0 : index
    %3 = vector.load %arg3[%c0_3, %c0_4] : memref<1x128xf32, #tpu.memory_space<vmem>>, vector<1x128xf32>
    %4 = vector.broadcast %3 : vector<1x128xf32> to vector<8x128xf32>
    %5 = arith.addf %2, %4 : vector<8x128xf32>
    %cst_5 = arith.constant 0.000000e+00 : f32
    %6 = vector.broadcast %cst_5 : f32 to vector<8x128xf32>
    %7 = arith.maximumf %5, %6 : vector<8x128xf32>
    %c0_6 = arith.constant 0 : index
    %c0_7 = arith.constant 0 : index
    %8 = vector.load %arg4[%c0_6, %c0_7] : memref<128x128xf32, #tpu.memory_space<vmem>>, vector<128x128xf32>
    %cst_8 = arith.constant dense<0.000000e+00> : vector<8x128xf32>
    %9 = tpu.matmul %7, %8, %cst_8 {dimension_numbers = #tpu.dot_dimension_numbers<[1], [0], [0], [1], [0, 0, 1, 1], [], []>} : vector<8x128xf32>, vector<128x128xf32>, vector<8x128xf32> -> vector<8x128xf32>
    %c0_9 = arith.constant 0 : index
    %c0_10 = arith.constant 0 : index
    %10 = vector.load %arg5[%c0_9, %c0_10] : memref<1x128xf32, #tpu.memory_space<vmem>>, vector<1x128xf32>
    %11 = vector.broadcast %10 : vector<1x128xf32> to vector<8x128xf32>
    %12 = arith.addf %9, %11 : vector<8x128xf32>
    %cst_11 = arith.constant 0.000000e+00 : f32
    %13 = vector.broadcast %cst_11 : f32 to vector<8x128xf32>
    %14 = arith.maximumf %12, %13 : vector<8x128xf32>
    %c0_12 = arith.constant 0 : index
    %c0_13 = arith.constant 0 : index
    %15 = vector.load %arg6[%c0_12, %c0_13] : memref<128x128xf32, #tpu.memory_space<vmem>>, vector<128x128xf32>
    %cst_14 = arith.constant dense<0.000000e+00> : vector<8x128xf32>
    %16 = tpu.matmul %14, %15, %cst_14 {dimension_numbers = #tpu.dot_dimension_numbers<[1], [0], [0], [1], [0, 0, 1, 1], [], []>} : vector<8x128xf32>, vector<128x128xf32>, vector<8x128xf32> -> vector<8x128xf32>
    %c0_15 = arith.constant 0 : index
    %c0_16 = arith.constant 0 : index
    %17 = vector.load %arg7[%c0_15, %c0_16] : memref<1x128xf32, #tpu.memory_space<vmem>>, vector<1x128xf32>
    %18 = vector.broadcast %17 : vector<1x128xf32> to vector<8x128xf32>
    %19 = arith.addf %16, %18 : vector<8x128xf32>
    %cst_17 = arith.constant dense<0xFF800000> : vector<8xf32>
    %20 = vector.multi_reduction <maximumf>, %19, %cst_17 [1] : vector<8x128xf32> to vector<8xf32>
    %21 = vector.shape_cast %20 : vector<8xf32> to vector<8x1xf32>
    %22 = vector.broadcast %21 : vector<8x1xf32> to vector<8x128xf32>
    %23 = arith.subf %19, %22 : vector<8x128xf32>
    %24 = math.exp %23 : vector<8x128xf32>
    %cst_18 = arith.constant dense<0.000000e+00> : vector<8xf32>
    %25 = vector.multi_reduction <add>, %24, %cst_18 [1] : vector<8x128xf32> to vector<8xf32>
    %26 = vector.shape_cast %25 : vector<8xf32> to vector<8x1xf32>
    %27 = tpu.reciprocal %26 {approx = true} : vector<8x1xf32> -> vector<8x1xf32>
    %28 = vector.broadcast %27 : vector<8x1xf32> to vector<8x128xf32>
    %29 = arith.mulf %24, %28 : vector<8x128xf32>
    %c0_19 = arith.constant 0 : index
    %c0_20 = arith.constant 0 : index
    %30 = vector.load %arg8[%c0_19, %c0_20] : memref<8x128xf32, #tpu.memory_space<vmem>>, vector<8x128xf32>
    tpu.vector_store %arg8[%c0_19, %c0_20], %29 {strides = array<i32>} : memref<8x128xf32, #tpu.memory_space<vmem>>, vector<8x128xf32>,
    return
  }
  func.func @transform_0(%arg0: i32) -> (i32, i32) {
    %c0_i32 = arith.constant 0 : i32
    %c0_i32_0 = arith.constant 0 : i32
    return %arg0, %c0_i32 : i32, i32
  }
  func.func @transform_1(%arg0: i32) -> (i32, i32) {
    %c0_i32 = arith.constant 0 : i32
    %c0_i32_0 = arith.constant 0 : i32
    %c0_i32_1 = arith.constant 0 : i32
    return %c0_i32, %c0_i32_0 : i32, i32
  }
  func.func @transform_2(%arg0: i32) -> (i32, i32) {
    %c0_i32 = arith.constant 0 : i32
    %c0_i32_0 = arith.constant 0 : i32
    %c0_i32_1 = arith.constant 0 : i32
    return %c0_i32, %c0_i32_0 : i32, i32
  }
  func.func @transform_3(%arg0: i32) -> (i32, i32) {
    %c0_i32 = arith.constant 0 : i32
    %c0_i32_0 = arith.constant 0 : i32
    %c0_i32_1 = arith.constant 0 : i32
    return %c0_i32, %c0_i32_0 : i32, i32
  }
  func.func @transform_4(%arg0: i32) -> (i32, i32) {
    %c0_i32 = arith.constant 0 : i32
    %c0_i32_0 = arith.constant 0 : i32
    %c0_i32_1 = arith.constant 0 : i32
    return %c0_i32, %c0_i32_0 : i32, i32
  }
  func.func @transform_5(%arg0: i32) -> (i32, i32) {
    %c0_i32 = arith.constant 0 : i32
    %c0_i32_0 = arith.constant 0 : i32
    %c0_i32_1 = arith.constant 0 : i32
    return %c0_i32, %c0_i32_0 : i32, i32
  }
  func.func @transform_6(%arg0: i32) -> (i32, i32) {
    %c0_i32 = arith.constant 0 : i32
    %c0_i32_0 = arith.constant 0 : i32
    %c0_i32_1 = arith.constant 0 : i32
    return %c0_i32, %c0_i32_0 : i32, i32
  }
  func.func @transform_7(%arg0: i32) -> (i32, i32) {
    %c0_i32 = arith.constant 0 : i32
    %c0_i32_0 = arith.constant 0 : i32
    return %arg0, %c0_i32 : i32, i32
  }
}

</mosaic_0001>

<bundles_post_ra>
// kernel: tpu_custom_call.1
= control target key start
LH: loop header
LB: loop body
LE: loop exit
PB: predicated region body
PF: predicated region fallthrough
CT: control target
= control target key end

     0   :  { %12 = vsyncpa [#allocation3], 0  ;;  %s10099_s0 = inlined_call_operand.hbm [shape: bf16[8,10000], index: 0, kind: input, shape index: {}]   ;;  %s10100_s1 = inlined_call_operand.hbm [shape: bf16[10000,128], index: 1, kind: input, shape index: {}]   ;;  %s10101_s2 = inlined_call_operand.hbm [shape: f32[1,128], index: 2, kind: input, shape index: {}]   ;;  %s10102_s3 = inlined_call_operand.hbm [shape: f32[128,128], index: 3, kind: input, shape index: {}]   ;;  %s10103_s4 = inlined_call_operand.hbm [shape: f32[1,128], index: 4, kind: input, shape index: {}]   ;;  %s10104_s5 = inlined_call_operand.hbm [shape: f32[128,128], index: 5, kind: input, shape index: {}]   ;;  %s10105_s6 = inlined_call_operand.hbm [shape: f32[1,128], index: 6, kind: input, shape index: {}]   ;;  %s10106_s7 = inlined_call_operand.hbm [shape: f32[8,128], index: 7, kind: output, shape index: {}]  }
   0x1   :  { %13 = vsyncpa [#allocation6], 0 }
   0x2   :  { %14 = vsyncpa [#allocation9], 0 }
   0x3   :  { %15 = vsyncpa [#allocation12], 0 }
   0x4   :  { %16 = vsyncpa [#allocation4], 0  ;;  %s9893_s24 = smov [#allocation5]   ;;  %s9707_s28 = scalar_lea.hbm %s10100_s1, 80000 }
   0x5   :  { %s32_s25 = sshll.u32 %s9893_s24, 4  ;;  %p9708_p0 = scmp.ne.s32.totalorder %s10100_s1, %s9707_s28  ;;  %s33_s25 = int_to_ptr.vmem [resolvable:$true] %s32_s25 }
   0x6   :  { %p9711_p1 = scmp.lt.u32.totalorder %s9707_s28, %s10100_s1 }
   0x8   :  { %p9713_p2 = pnand %p9711_p1, %p9708_p0 }
   0xa   :  { %9716 = shalt.err (!%p9713_p2)
}
   0xb   :  { %s9717_s10 = scalar_lea.vmem %s33_s25, 80000  ;;  %p9722_p4 = scmp.lt.s32.totalorder %s33_s25, %s33_s25 }
   0xc   :  { %p9718_p3 = scmp.ne.s32.totalorder %s33_s25, %s9717_s10  ;;  %p9723_p5 = scmp.lt.s32.totalorder %s9717_s10, %s9717_s10 }
   0xe   :  { %p9724_p6 = por %p9723_p5, %p9722_p4 }
  0x10   :  { %p9725_p7 = pnand %p9724_p6, %p9718_p3 }
  0x12   :  { %9728 = shalt.err (!%p9725_p7)
}
  0x13   :  { %s9894_s11 = smov 64   ;;  %s9895_s12 = smov 4  }
  0x14   :  { %38 = dma.hbm_to_vmem [thread:$0]  %s10100_s1, 80000, %s33_s25, [#allocation6], %s9894_s11, %s9894_s11, %s9895_s12  }
  0x15   :  { %s9896_s15 = smov [#allocation8]   ;;  %s9729_s19 = scalar_lea.hbm %s10102_s3, 2048 }
  0x16   :  { %s54_s16 = sshll.u32 %s9896_s15, 4  ;;  %p9730_p8 = scmp.ne.s32.totalorder %s10102_s3, %s9729_s19  ;;  %s55_s16 = int_to_ptr.vmem [resolvable:$true] %s54_s16 }
  0x17   :  { %p9733_p9 = scmp.lt.u32.totalorder %s9729_s19, %s10102_s3 }
  0x19   :  { %p9735_p10 = pnand %p9733_p9, %p9730_p8 }
  0x1b   :  { %9738 = shalt.err (!%p9735_p10)
}
  0x1c   :  { %s9739_s24 = scalar_lea.vmem %s55_s16, 2048  ;;  %p9744_p12 = scmp.lt.s32.totalorder %s55_s16, %s55_s16 }
  0x1d   :  { %p9740_p11 = scmp.ne.s32.totalorder %s55_s16, %s9739_s24  ;;  %p9745_p13 = scmp.lt.s32.totalorder %s9739_s24, %s9739_s24 }
  0x1f   :  { %p9746_p0 = por %p9745_p13, %p9744_p12 }
  0x21   :  { %p9747_p1 = pnand %p9746_p0, %p9740_p11 }
  0x23   :  { %9750 = shalt.err (!%p9747_p1)
}
  0x24   :  { %s9897_s1 = smov 128   ;;  %s9898_s25 = smov 8  }
  0x25   :  { %60 = dma.hbm_to_vmem [thread:$0]  %s10102_s3, 2048, %s55_s16, [#allocation9], %s9897_s1, %s9897_s1, %s9898_s25  }
  0x26   :  { %s9899_s28 = smov [#allocation11]   ;;  %s9900_s30 = smov [#allocation2]  }
  0x27   :  { %s76_s29 = sshll.u32 %s9899_s28, 4  ;;  %s23_s8 = sshll.u32 %s9900_s30, 4  ;;  %s77_s29 = int_to_ptr.vmem [resolvable:$true] %s76_s29  ;;  %s24_s8 = int_to_ptr.vmem [resolvable:$true] %s23_s8 }
  0x28   :  { %s9751_s11 = scalar_lea.hbm %s10104_s5, 2048 }
  0x29   :  { %p9752_p2 = scmp.ne.s32.totalorder %s10104_s5, %s9751_s11  ;;  %p9755_p3 = scmp.lt.u32.totalorder %s9751_s11, %s10104_s5 }
  0x2b   :  { %p9757_p4 = pnand %p9755_p3, %p9752_p2 }
  0x2d   :  { %9760 = shalt.err (!%p9757_p4)
}
  0x2e   :  { %s9761_s3 = scalar_lea.vmem %s77_s29, 2048  ;;  %p9766_p6 = scmp.lt.s32.totalorder %s77_s29, %s77_s29 }
  0x2f   :  { %p9762_p5 = scmp.ne.s32.totalorder %s77_s29, %s9761_s3  ;;  %p9767_p7 = scmp.lt.s32.totalorder %s9761_s3, %s9761_s3 }
  0x31   :  { %p9768_p8 = por %p9767_p7, %p9766_p6 }
  0x33   :  { %p9769_p9 = pnand %p9768_p8, %p9762_p5 }
  0x35   :  { %9772 = shalt.err (!%p9769_p9)
}
  0x36   :  { %82 = dma.hbm_to_vmem [thread:$0]  %s10104_s5, 2048, %s77_s29, [#allocation12], %s9897_s1, %s9897_s1, %s9898_s25  }
  0x37   :  { %s9773_s20 = scalar_lea.hbm %s10099_s0, 5056 }
  0x38   :  { %p9774_p10 = scmp.ne.s32.totalorder %s10099_s0, %s9773_s20  ;;  %p9777_p11 = scmp.lt.u32.totalorder %s9773_s20, %s10099_s0 }
  0x3a   :  { %p9779_p12 = pnand %p9777_p11, %p9774_p10 }
  0x3c   :  { %9782 = shalt.err (!%p9779_p12)
}
  0x3d   :  { %s9783_s26 = scalar_lea.vmem %s24_s8, 5056  ;;  %p9788_p0 = scmp.lt.s32.totalorder %s24_s8, %s24_s8 }
  0x3e   :  { %p9784_p13 = scmp.ne.s32.totalorder %s24_s8, %s9783_s26  ;;  %p9789_p1 = scmp.lt.s32.totalorder %s9783_s26, %s9783_s26 }
  0x40   :  { %p9790_p2 = por %p9789_p1, %p9788_p0 }
  0x42   :  { %p9791_p3 = pnand %p9790_p2, %p9784_p13 }
  0x44   :  { %9794 = shalt.err (!%p9791_p3)
}
  0x45   :  { %26 = dma.hbm_to_vmem [thread:$0]  %s10099_s0, 5056, %s24_s8, [#allocation3]  }
  0x46   :  { %s9901_s25 = smov [#allocation7]   ;;  %s9902_s28 = smov [#allocation10]  }
  0x47   :  { %s45_s27 = sshll.u32 %s9901_s25, 4  ;;  %s67_s29 = sshll.u32 %s9902_s28, 4  ;;  %s46_s27 = int_to_ptr.vmem [resolvable:$true] %s45_s27  ;;  %s68_s29 = int_to_ptr.vmem [resolvable:$true] %s67_s29 }
  0x48   :  { %s9795_s10 = scalar_lea.hbm %s10101_s2, 16 }
  0x49   :  { %p9796_p4 = scmp.ne.s32.totalorder %s10101_s2, %s9795_s10  ;;  %p9799_p5 = scmp.lt.u32.totalorder %s9795_s10, %s10101_s2 }
  0x4b   :  { %p9801_p6 = pnand %p9799_p5, %p9796_p4 }
  0x4d   :  { %9804 = shalt.err (!%p9801_p6)
}
  0x4e   :  { %s9805_s0 = scalar_lea.vmem %s46_s27, 16  ;;  %s9809_s8 = scalar_lea.vmem %s46_s27, 32 }
  0x4f   :  { %p9806_p7 = scmp.ne.s32.totalorder %s46_s27, %s9805_s0  ;;  %p9810_p8 = scmp.lt.s32.totalorder %s46_s27, %s46_s27 }
  0x50   :  { %p9811_p9 = scmp.lt.s32.totalorder %s9809_s8, %s9805_s0 }
  0x52   :  { %p9812_p10 = por %p9811_p9, %p9810_p8 }
  0x54   :  { %p9813_p11 = pnand %p9812_p10, %p9806_p7 }
  0x56   :  { %9816 = shalt.err (!%p9813_p11)
}
  0x57   :  { %48 = dma.hbm_to_vmem [thread:$0]  %s10101_s2, 16, %s46_s27, [#allocation6]  }
  0x58   :  { %s9817_s18 = scalar_lea.hbm %s10103_s4, 16 }
  0x59   :  { %p9818_p12 = scmp.ne.s32.totalorder %s10103_s4, %s9817_s18  ;;  %p9821_p13 = scmp.lt.u32.totalorder %s9817_s18, %s10103_s4 }
  0x5b   :  { %p9823_p0 = pnand %p9821_p13, %p9818_p12 }
  0x5d   :  { %9826 = shalt.err (!%p9823_p0)
}
  0x5e   :  { %s9827_s23 = scalar_lea.vmem %s68_s29, 16  ;;  %s9831_s24 = scalar_lea.vmem %s68_s29, 32 }
  0x5f   :  { %p9828_p1 = scmp.ne.s32.totalorder %s68_s29, %s9827_s23  ;;  %p9832_p2 = scmp.lt.s32.totalorder %s68_s29, %s68_s29 }
  0x60   :  { %p9833_p3 = scmp.lt.s32.totalorder %s9831_s24, %s9827_s23 }
  0x62   :  { %p9834_p4 = por %p9833_p3, %p9832_p2 }
  0x64   :  { %p9835_p5 = pnand %p9834_p4, %p9828_p1 }
  0x66   :  { %9838 = shalt.err (!%p9835_p5)
}
  0x67   :  { %70 = dma.hbm_to_vmem [thread:$0]  %s10103_s4, 16, %s68_s29, [#allocation9]  }
  0x68   :  { %s9903_s5 = smov [#allocation13]   ;;  %s9839_s28 = scalar_lea.hbm %s10105_s6, 16 }
  0x69   :  { %s89_s1 = sshll.u32 %s9903_s5, 4  ;;  %p9840_p6 = scmp.ne.s32.totalorder %s10105_s6, %s9839_s28  ;;  %s90_s1 = int_to_ptr.vmem [resolvable:$true] %s89_s1 }
  0x6a   :  { %p9843_p7 = scmp.lt.u32.totalorder %s9839_s28, %s10105_s6 }
  0x6c   :  { %p9845_p8 = pnand %p9843_p7, %p9840_p6 }
  0x6e   :  { %9848 = shalt.err (!%p9845_p8)
}
  0x6f   :  { %s9849_s12 = scalar_lea.vmem %s90_s1, 16  ;;  %s9853_s4 = scalar_lea.vmem %s90_s1, 32 }
  0x70   :  { %p9850_p9 = scmp.ne.s32.totalorder %s90_s1, %s9849_s12  ;;  %p9854_p10 = scmp.lt.s32.totalorder %s90_s1, %s90_s1 }
  0x71   :  { %p9855_p11 = scmp.lt.s32.totalorder %s9853_s4, %s9849_s12 }
  0x73   :  { %p9856_p12 = por %p9855_p11, %p9854_p10 }
  0x75   :  { %p9857_p13 = pnand %p9856_p12, %p9850_p9 }
  0x77   :  { %9860 = shalt.err (!%p9857_p13)
}
  0x78   :  { %92 = dma.hbm_to_vmem [thread:$0]  %s10105_s6, 16, %s90_s1, [#allocation12]  }
  0x79   :  { %9883 = dma.done.wait [#allocation3], 5056  }
  0x7a   :  { %9884 = vsyncadd [#allocation3], 4294962240 }
  0x7b   :  { %9885 = dma.done.wait [#allocation6], 80016  }
  0x7c   :  { %9886 = vsyncadd [#allocation6], 4294887280 }
  0x7d   :  { %9887 = dma.done.wait [#allocation9], 2064  }
  0x7e   :  { %9888 = vsyncadd [#allocation9], 4294965232 }
  0x7f   :  { %9889 = dma.done.wait [#allocation12], 2064  }
  0x80   :  { %9890 = vsyncadd [#allocation12], 4294965232  ;;  %v8999_v0 = vld [vmem:[#allocation5 + $0x40] sm:$0xff]   ;;  %v9003_v4 = vld [vmem:[#allocation5 + $0x48] sm:$0xff]   ;;  %vm9905_vm0 = vmmov 0   ;;  %vm5438_vm1 = vcmask 130048  }
  0x81   :  { %v9000_v1 = vld [vmem:[#allocation5] sm:$0xff]   ;;  %7966 = vmatprep.subr.bf16.mxu0 %v8999_v0  ;;  %v9004_v5 = vld [vmem:[#allocation5 + $0x8] sm:$0xff]   ;;  %v9007_v8 = vld [vmem:[#allocation5 + $0x50] sm:$0xff]   ;;  %s9907_s6 = smov [#allocation14]  }
  0x82   :  { %v9001_v2 = vld [vmem:[#allocation5 + $0xc0] sm:$0xff]   ;;  %7967 = vmatpush3.bf16.msra.mxu0 %v9000_v1  ;;  %v9005_v6 = vld [vmem:[#allocation5 + $0xc8] sm:$0xff]   ;;  %v9008_v9 = vld [vmem:[#allocation5 + $0x10] sm:$0xff]   ;;  %s7246_s14 = sshll.u32 %s9907_s6, 4  ;;  %s7247_s14 = int_to_ptr.vmem [resolvable:$true] %s7246_s14 }
  0x83   :  { %v9002_v3 = vld [vmem:[#allocation5 + $0x80] sm:$0xff]   ;;  %7988 = vmatprep.subr.bf16.mxu1 %v9001_v2  ;;  %7968 = vmatprep.subr.bf16.mxu0 %v9003_v4  ;;  %v9006_v7 = vld [vmem:[#allocation5 + $0x88] sm:$0xff]   ;;  %v9009_v10 = vld [vmem:[#allocation5 + $0xd0] sm:$0xff]   ;;  %s9861_s0 = scalar_lea.vmem %s7247_s14, 128  ;;  %p9866_p1 = scmp.lt.s32.totalorder %s7247_s14, %s7247_s14 }
  0x84   :  { %7989 = vmatpush3.bf16.msra.mxu1 %v9002_v3  ;;  %v9010_v11 = vld [vmem:[#allocation5 + $0x90] sm:$0xff]   ;;  %v9011_v12 = vld [vmem:[#allocation5 + $0x58] sm:$0xff]   ;;  %v9015_v16 = vld [vmem:[#allocation5 + $0x60] sm:$0xff]   ;;  %p9862_p0 = scmp.ne.s32.totalorder %s7247_s14, %s9861_s0  ;;  %p9867_p2 = scmp.lt.s32.totalorder %s9861_s0, %s9861_s0 }
  0x85   :  { %7990 = vmatprep.subr.bf16.mxu1 %v9005_v6  ;;  %v9012_v13 = vld [vmem:[#allocation5 + $0x18] sm:$0xff]   ;;  %v9016_v17 = vld [vmem:[#allocation5 + $0x20] sm:$0xff]   ;;  %v9019_v20 = vld [vmem:[#allocation5 + $0x68] sm:$0xff]  }
  0x86   :  { %7969 = vmatpush3.bf16.msra.mxu0 %v9004_v5  ;;  %v9013_v14 = vld [vmem:[#allocation5 + $0xd8] sm:$0xff]   ;;  %v9017_v18 = vld [vmem:[#allocation5 + $0xe0] sm:$0xff]   ;;  %v9020_v21 = vld [vmem:[#allocation5 + $0x28] sm:$0xff]   ;;  %p9868_p3 = por %p9867_p2, %p9866_p1 }
  0x87   :  { %7970 = vmatprep.subr.bf16.mxu0 %v9007_v8  ;;  %v9014_v15 = vld [vmem:[#allocation5 + $0x98] sm:$0xff]   ;;  %v9018_v19 = vld [vmem:[#allocation5 + $0xa0] sm:$0xff]   ;;  %v9021_v22 = vld [vmem:[#allocation5 + $0xe8] sm:$0xff]  }
  0x88   :  { %7991 = vmatpush3.bf16.msra.mxu1 %v9006_v7  ;;  %v9022_v23 = vld [vmem:[#allocation5 + $0xa8] sm:$0xff]   ;;  %v9023_v24 = vld [vmem:[#allocation5 + $0x70] sm:$0xff]   ;;  %v9027_v28 = vld [vmem:[#allocation5 + $0x78] sm:$0xff]   ;;  %p9869_p4 = pnand %p9868_p3, %p9862_p0 }
  0x89   :  { %7992 = vmatprep.subr.bf16.mxu1 %v9009_v10  ;;  %v9024_v25 = vld [vmem:[#allocation5 + $0x30] sm:$0xff]   ;;  %v9028_v29 = vld [vmem:[#allocation5 + $0x38] sm:$0xff]   ;;  %v115_v31 = vld [vmem:[#allocation2] sm:$0xff] }
  0x8a   :  { %7971 = vmatpush3.bf16.msra.mxu0 %v9008_v9  ;;  %v9025_v26 = vld [vmem:[#allocation5 + $0xf0] sm:$0xff]   ;;  %v9029_v30 = vld [vmem:[#allocation5 + $0xf8] sm:$0xff]   ;;  %v7259_v32 = vcombine.low %v115_v31, %v115_v31  ;;  %v7260_v33 = vcombine.high %v115_v31, %v115_v31  ;;  %v9033_v35 = vld [vmem:[#allocation5 + $0x140] sm:$0xff]  }
  0x8b   :  { %7972 = vmatprep.subr.bf16.mxu0 %v9011_v12  ;;  %v9026_v27 = vld [vmem:[#allocation5 + $0xb0] sm:$0xff]   ;;  %v9032_v34 = vld [vmem:[#allocation5 + $0xb8] sm:$0xff]   ;;  %v9036_v39 = vld [vmem:[#allocation5 + $0x100] sm:$0xff]  }
  0x8c   :  { %7993 = vmatpush3.bf16.msra.mxu1 %v9010_v11  ;;  %v116_v36 = vld [vmem:[#allocation2 + $0x8] sm:$0xff]  ;;  %5474 = vmatprep.mubr.bf16.mxu0 %v7260_v33  ;;  %v9037_v40 = vld [vmem:[#allocation5 + $0x1c0] sm:$0xff]   ;;  %v9047_v50 = vld [vmem:[#allocation5 + $0x158] sm:$0xff]  }
  0x8d   :  { %7994 = vmatprep.subr.bf16.mxu1 %v9013_v14  ;;  %v7261_v37 = vcombine.low %v116_v36, %v116_v36  ;;  %v7262_v38 = vcombine.high %v116_v36, %v116_v36  ;;  %v9038_v41 = vld [vmem:[#allocation5 + $0x180] sm:$0xff]   ;;  %v9039_v42 = vld [vmem:[#allocation5 + $0x148] sm:$0xff]   ;;  %v9043_v46 = vld [vmem:[#allocation5 + $0x150] sm:$0xff]  }
  0x8e   :  { %7973 = vmatpush3.bf16.msra.mxu0 %v9012_v13  ;;  %v9040_v43 = vld [vmem:[#allocation5 + $0x108] sm:$0xff]   ;;  %v9044_v47 = vld [vmem:[#allocation5 + $0x110] sm:$0xff]   ;;  %v9048_v51 = vld [vmem:[#allocation5 + $0x118] sm:$0xff]  }
  0x8f   :  { %7974 = vmatprep.subr.bf16.mxu0 %v9015_v16  ;;  %5514 = vmatprep.mubr.bf16.mxu1 %v7262_v38  ;;  %v9041_v44 = vld [vmem:[#allocation5 + $0x1c8] sm:$0xff]   ;;  %v9045_v48 = vld [vmem:[#allocation5 + $0x1d0] sm:$0xff]   ;;  %v9049_v52 = vld [vmem:[#allocation5 + $0x1d8] sm:$0xff]  }
  0x90   :  { %7995 = vmatpush3.bf16.msra.mxu1 %v9014_v15  ;;  %v9042_v45 = vld [vmem:[#allocation5 + $0x188] sm:$0xff]   ;;  %v9046_v49 = vld [vmem:[#allocation5 + $0x190] sm:$0xff]   ;;  %v9050_v53 = vld [vmem:[#allocation5 + $0x198] sm:$0xff]  }
  0x91   :  { %7996 = vmatprep.subr.bf16.mxu1 %v9017_v18  ;;  %v9051_v54 = vld [vmem:[#allocation5 + $0x160] sm:$0xff]   ;;  %v9055_v58 = vld [vmem:[#allocation5 + $0x168] sm:$0xff]   ;;  %v9059_v62 = vld [vmem:[#allocation5 + $0x170] sm:$0xff]  }
  0x92   :  { %7975 = vmatpush3.bf16.msra.mxu0 %v9016_v17  ;;  %v9052_v55 = vld [vmem:[#allocation5 + $0x120] sm:$0xff]   ;;  %v9056_v59 = vld [vmem:[#allocation5 + $0x128] sm:$0xff]   ;;  %v9060_v63 = vld [vmem:[#allocation5 + $0x130] sm:$0xff]  }
  0x93   :  { %7976 = vmatprep.subr.bf16.mxu0 %v9019_v20  ;;  %v9053_v56 = vld [vmem:[#allocation5 + $0x1e0] sm:$0xff]   ;;  %v9057_v60 = vld [vmem:[#allocation5 + $0x1e8] sm:$0xff]   ;;  %v9061_v0 = vld [vmem:[#allocation5 + $0x1f0] sm:$0xff]  }
  0x94   :  { %7997 = vmatpush3.bf16.msra.mxu1 %v9018_v19  ;;  %v9054_v57 = vld [vmem:[#allocation5 + $0x1a0] sm:$0xff]   ;;  %v9058_v61 = vld [vmem:[#allocation5 + $0x1a8] sm:$0xff]   ;;  %v9062_v1 = vld [vmem:[#allocation5 + $0x1b0] sm:$0xff]  }
  0x95   :  { %7998 = vmatprep.subr.bf16.mxu1 %v9021_v22  ;;  %v9063_v2 = vld [vmem:[#allocation5 + $0x178] sm:$0xff]   ;;  %v9069_v9 = vld [vmem:[#allocation5 + $0x240] sm:$0xff]   ;;  %v9075_v16 = vld [vmem:[#allocation5 + $0x248] sm:$0xff]  }
  0x96   :  { %7977 = vmatpush3.bf16.msra.mxu0 %v9020_v21  ;;  %v9064_v3 = vld [vmem:[#allocation5 + $0x138] sm:$0xff]   ;;  %v9072_v13 = vld [vmem:[#allocation5 + $0x200] sm:$0xff]   ;;  %v9076_v17 = vld [vmem:[#allocation5 + $0x208] sm:$0xff]  }
  0x97   :  { %7978 = vmatprep.subr.bf16.mxu0 %v9023_v24  ;;  %v9065_v4 = vld [vmem:[#allocation5 + $0x1f8] sm:$0xff]   ;;  %v9073_v14 = vld [vmem:[#allocation5 + $0x2c0] sm:$0xff]   ;;  %v9077_v18 = vld [vmem:[#allocation5 + $0x2c8] sm:$0xff]  }
  0x98   :  { %7999 = vmatpush3.bf16.msra.mxu1 %v9022_v23  ;;  %v117_v5 = vld [vmem:[#allocation2 + $0x10] sm:$0xff]  ;;  %v118_v10 = vld [vmem:[#allocation2 + $0x18] sm:$0xff]  ;;  %v9078_v19 = vld [vmem:[#allocation5 + $0x288] sm:$0xff]  }
  0x99   :  { %8000 = vmatprep.subr.bf16.mxu1 %v9025_v26  ;;  %v7263_v6 = vcombine.low %v117_v5, %v117_v5  ;;  %v7264_v7 = vcombine.high %v117_v5, %v117_v5  ;;  %v9068_v8 = vld [vmem:[#allocation5 + $0x1b8] sm:$0xff]   ;;  %v7265_v11 = vcombine.low %v118_v10, %v118_v10  ;;  %v7266_v12 = vcombine.high %v118_v10, %v118_v10  ;;  %v9074_v15 = vld [vmem:[#allocation5 + $0x280] sm:$0xff]   ;;  %v9079_v20 = vld [vmem:[#allocation5 + $0x250] sm:$0xff]  }
  0x9a   :  { %7979 = vmatpush3.bf16.msra.mxu0 %v9024_v25  ;;  %v9080_v21 = vld [vmem:[#allocation5 + $0x210] sm:$0xff]   ;;  %v9083_v24 = vld [vmem:[#allocation5 + $0x258] sm:$0xff]   ;;  %v9090_v31 = vld [vmem:[#allocation5 + $0x2a0] sm:$0xff]  }
  0x9b   :  { %7980 = vmatprep.subr.bf16.mxu0 %v9027_v28  ;;  %v9081_v22 = vld [vmem:[#allocation5 + $0x2d0] sm:$0xff]   ;;  %v9084_v25 = vld [vmem:[#allocation5 + $0x218] sm:$0xff]   ;;  %v9087_v28 = vld [vmem:[#allocation5 + $0x260] sm:$0xff]  }
  0x9c   :  { %8001 = vmatpush3.bf16.msra.mxu1 %v9026_v27  ;;  %v9082_v23 = vld [vmem:[#allocation5 + $0x290] sm:$0xff]   ;;  %v9085_v26 = vld [vmem:[#allocation5 + $0x2d8] sm:$0xff]   ;;  %v9092_v33 = vld [vmem:[#allocation5 + $0x228] sm:$0xff]  }
  0x9d   :  { %8002 = vmatprep.subr.bf16.mxu1 %v9029_v30  ;;  %v9086_v27 = vld [vmem:[#allocation5 + $0x298] sm:$0xff]   ;;  %v9089_v30 = vld [vmem:[#allocation5 + $0x2e0] sm:$0xff]   ;;  %v9095_v36 = vld [vmem:[#allocation5 + $0x270] sm:$0xff]  }
  0x9e   :  { %7981 = vmatpush3.bf16.msra.mxu0 %v9028_v29  ;;  %v9088_v29 = vld [vmem:[#allocation5 + $0x220] sm:$0xff]   ;;  %v9097_v38 = vld [vmem:[#allocation5 + $0x2f0] sm:$0xff]  }
  0x9f   :  { %8010 = vmatprep.subr.bf16.mxu0 %v9033_v35  ;;  %v9094_v35 = vld [vmem:[#allocation5 + $0x2a8] sm:$0xff]   ;;  %v9126_v5 = vld [vmem:[#allocation5 + $0x3a0] sm:$0xff]   ;;  %v9131_v10 = vld [vmem:[#allocation5 + $0x370] sm:$0xff]  }
  0xa0   :  { %8003 = vmatpush3.bf16.msra.mxu1 %v9032_v34  ;;  %v9093_v34 = vld [vmem:[#allocation5 + $0x2e8] sm:$0xff]  }
  0xa1   :  { %5475 = vmatmul.mubr.bf16.vlgmr.msra.gmra.mrb[0].mxu0 %v7259_v32  ;;  %8032 = vmatprep.subr.bf16.mxu1 %v9037_v40  ;;  %v9091_v32 = vld [vmem:[#allocation5 + $0x268] sm:$0xff]   ;;  %v9099_v40 = vld [vmem:[#allocation5 + $0x278] sm:$0xff]  }
  0xa2   :  { %8011 = vmatpush3.bf16.msra.mxu0 %v9036_v39  ;;  %5554 = vmatprep.mubr.bf16.mxu0 %v7264_v7  ;;  %v9098_v39 = vld [vmem:[#allocation5 + $0x2b0] sm:$0xff]   ;;  %v9128_v7 = vld [vmem:[#allocation5 + $0x328] sm:$0xff]  }
  0xa3   :  { %5515 = vmatmul.mubr.bf16.vlgmr.msra.gmra.mrb[0].mxu1 %v7261_v37  ;;  %8012 = vmatprep.subr.bf16.mxu0 %v9039_v42  ;;  %v9096_v37 = vld [vmem:[#allocation5 + $0x230] sm:$0xff]   ;;  %v9101_v42 = vld [vmem:[#allocation5 + $0x2f8] sm:$0xff]  }
  0xa4   :  { %8033 = vmatpush3.bf16.msra.mxu1 %v9038_v41  ;;  %5594 = vmatprep.mubr.bf16.mxu1 %v7266_v12  ;;  %v9100_v41 = vld [vmem:[#allocation5 + $0x238] sm:$0xff]   ;;  %v9133_v12 = vld [vmem:[#allocation5 + $0x3f0] sm:$0xff]  }
  0xa5   :  { %8034 = vmatprep.subr.bf16.mxu1 %v9041_v44 }
  0xa6   :  { %8013 = vmatpush3.bf16.msra.mxu0 %v9040_v43  ;;  %v119_v43 = vld [vmem:[#allocation2 + $0x20] sm:$0xff] }
  0xa7   :  { %8014 = vmatprep.subr.bf16.mxu0 %v9043_v46  ;;  %v7267_v44 = vcombine.low %v119_v43, %v119_v43  ;;  %v9104_v46 = vld [vmem:[#allocation5 + $0x2b8] sm:$0xff]  }
  0xa8   :  { %8035 = vmatpush3.bf16.msra.mxu1 %v9042_v45  ;;  %v7268_v45 = vcombine.high %v119_v43, %v119_v43  ;;  %v9162_v43 = vld [vmem:[#allocation5 + $0x4a0] sm:$0xff]  }
  0xa9   :  { %8036 = vmatprep.subr.bf16.mxu1 %v9045_v48  ;;  %v120_v48 = vld [vmem:[#allocation2 + $0x28] sm:$0xff] }
  0xaa   :  { %8015 = vmatpush3.bf16.msra.mxu0 %v9044_v47  ;;  %v9105_v47 = vld [vmem:[#allocation5 + $0x340] sm:$0xff]  }
  0xab   :  { %8016 = vmatprep.subr.bf16.mxu0 %v9047_v50  ;;  %v7270_v50 = vcombine.high %v120_v48, %v120_v48 }
  0xac   :  { %8037 = vmatpush3.bf16.msra.mxu1 %v9046_v49  ;;  %v7269_v49 = vcombine.low %v120_v48, %v120_v48  ;;  %v9167_v48 = vld [vmem:[#allocation5 + $0x470] sm:$0xff]  }
  0xad   :  { %8038 = vmatprep.subr.bf16.mxu1 %v9049_v52  ;;  %v9109_v52 = vld [vmem:[#allocation5 + $0x3c0] sm:$0xff]  }
  0xae   :  { %8017 = vmatpush3.bf16.msra.mxu0 %v9048_v51  ;;  %v9108_v51 = vld [vmem:[#allocation5 + $0x300] sm:$0xff]  }
  0xaf   :  { %8018 = vmatprep.subr.bf16.mxu0 %v9051_v54  ;;  %v9111_v54 = vld [vmem:[#allocation5 + $0x348] sm:$0xff]  }
  0xb0   :  { %8039 = vmatpush3.bf16.msra.mxu1 %v9050_v53  ;;  %v9110_v53 = vld [vmem:[#allocation5 + $0x380] sm:$0xff]  }
  0xb1   :  { %8040 = vmatprep.subr.bf16.mxu1 %v9053_v56  ;;  %v9113_v56 = vld [vmem:[#allocation5 + $0x3c8] sm:$0xff]  }
  0xb2   :  { %8019 = vmatpush3.bf16.msra.mxu0 %v9052_v55  ;;  %v9112_v55 = vld [vmem:[#allocation5 + $0x308] sm:$0xff]  }
  0xb3   :  { %8020 = vmatprep.subr.bf16.mxu0 %v9055_v58  ;;  %v9115_v58 = vld [vmem:[#allocation5 + $0x350] sm:$0xff]  }
  0xb4   :  { %8041 = vmatpush3.bf16.msra.mxu1 %v9054_v57  ;;  %v9114_v57 = vld [vmem:[#allocation5 + $0x388] sm:$0xff]  }
  0xb5   :  { %8042 = vmatprep.subr.bf16.mxu1 %v9057_v60  ;;  %v9117_v60 = vld [vmem:[#allocation5 + $0x3d0] sm:$0xff]  }
  0xb6   :  { %8021 = vmatpush3.bf16.msra.mxu0 %v9056_v59  ;;  %v9116_v59 = vld [vmem:[#allocation5 + $0x310] sm:$0xff]  }
  0xb7   :  { %8022 = vmatprep.subr.bf16.mxu0 %v9059_v62  ;;  %v9119_v62 = vld [vmem:[#allocation5 + $0x358] sm:$0xff]  }
  0xb8   :  { %8043 = vmatpush3.bf16.msra.mxu1 %v9058_v61  ;;  %v9118_v61 = vld [vmem:[#allocation5 + $0x390] sm:$0xff]  }
  0xb9   :  { %8044 = vmatprep.subr.bf16.mxu1 %v9061_v0  ;;  %v9121_v0 = vld [vmem:[#allocation5 + $0x3d8] sm:$0xff]  }
  0xba   :  { %8023 = vmatpush3.bf16.msra.mxu0 %v9060_v63  ;;  %v9120_v63 = vld [vmem:[#allocation5 + $0x318] sm:$0xff]  }
  0xbb   :  { %8024 = vmatprep.subr.bf16.mxu0 %v9063_v2  ;;  %v9123_v2 = vld [vmem:[#allocation5 + $0x360] sm:$0xff]  }
  0xbc   :  { %8045 = vmatpush3.bf16.msra.mxu1 %v9062_v1  ;;  %v9122_v1 = vld [vmem:[#allocation5 + $0x398] sm:$0xff]  }
  0xbd   :  { %8046 = vmatprep.subr.bf16.mxu1 %v9065_v4  ;;  %v9125_v4 = vld [vmem:[#allocation5 + $0x3e0] sm:$0xff]  }
  0xbe   :  { %8025 = vmatpush3.bf16.msra.mxu0 %v9064_v3  ;;  %v9124_v3 = vld [vmem:[#allocation5 + $0x320] sm:$0xff]  }
  0xbf   :  { %8054 = vmatprep.subr.bf16.mxu0 %v9069_v9  ;;  %v9130_v9 = vld [vmem:[#allocation5 + $0x3a8] sm:$0xff]  }
  0xc0   :  { %8047 = vmatpush3.bf16.msra.mxu1 %v9068_v8  ;;  %v9129_v8 = vld [vmem:[#allocation5 + $0x3e8] sm:$0xff]  }
  0xc1   :  { %5555 = vmatmul.mubr.bf16.vlgmr.msra.gmra.mrb[4].mxu0 %v7263_v6  ;;  %8076 = vmatprep.subr.bf16.mxu1 %v9073_v14  ;;  %v9127_v6 = vld [vmem:[#allocation5 + $0x368] sm:$0xff]   ;;  %v9135_v14 = vld [vmem:[#allocation5 + $0x378] sm:$0xff]  }
  0xc2   :  { %8055 = vmatpush3.bf16.msra.mxu0 %v9072_v13  ;;  %5634 = vmatprep.mubr.bf16.mxu0 %v7268_v45  ;;  %v9134_v13 = vld [vmem:[#allocation5 + $0x3b0] sm:$0xff]   ;;  %v9164_v45 = vld [vmem:[#allocation5 + $0x428] sm:$0xff]  }
  0xc3   :  { %5595 = vmatmul.mubr.bf16.vlgmr.msra.gmra.mrb[4].mxu1 %v7265_v11  ;;  %8056 = vmatprep.subr.bf16.mxu0 %v9075_v16  ;;  %v9132_v11 = vld [vmem:[#allocation5 + $0x330] sm:$0xff]   ;;  %v9137_v16 = vld [vmem:[#allocation5 + $0x3f8] sm:$0xff]  }
  0xc4   :  { %8077 = vmatpush3.bf16.msra.mxu1 %v9074_v15  ;;  %5674 = vmatprep.mubr.bf16.mxu1 %v7270_v50  ;;  %v9136_v15 = vld [vmem:[#allocation5 + $0x338] sm:$0xff]   ;;  %v9169_v50 = vld [vmem:[#allocation5 + $0x4f0] sm:$0xff]  }
  0xc5   :  { %8078 = vmatprep.subr.bf16.mxu1 %v9077_v18 }
  0xc6   :  { %8057 = vmatpush3.bf16.msra.mxu0 %v9076_v17  ;;  %v121_v17 = vld [vmem:[#allocation2 + $0x30] sm:$0xff] }
  0xc7   :  { %8058 = vmatprep.subr.bf16.mxu0 %v9079_v20  ;;  %v7271_v18 = vcombine.low %v121_v17, %v121_v17  ;;  %v9140_v20 = vld [vmem:[#allocation5 + $0x3b8] sm:$0xff]  }
  0xc8   :  { %8079 = vmatpush3.bf16.msra.mxu1 %v9078_v19  ;;  %v7272_v19 = vcombine.high %v121_v17, %v121_v17  ;;  %v9198_v17 = vld [vmem:[#allocation5 + $0x5a0] sm:$0xff]  }
  0xc9   :  { %8080 = vmatprep.subr.bf16.mxu1 %v9081_v22  ;;  %v122_v22 = vld [vmem:[#allocation2 + $0x38] sm:$0xff] }
  0xca   :  { %8059 = vmatpush3.bf16.msra.mxu0 %v9080_v21  ;;  %v9141_v21 = vld [vmem:[#allocation5 + $0x440] sm:$0xff]  }
  0xcb   :  { %8060 = vmatprep.subr.bf16.mxu0 %v9083_v24  ;;  %v7274_v24 = vcombine.high %v122_v22, %v122_v22 }
  0xcc   :  { %8081 = vmatpush3.bf16.msra.mxu1 %v9082_v23  ;;  %v7273_v23 = vcombine.low %v122_v22, %v122_v22  ;;  %v9203_v22 = vld [vmem:[#allocation5 + $0x570] sm:$0xff]  }
  0xcd   :  { %8082 = vmatprep.subr.bf16.mxu1 %v9085_v26  ;;  %v9145_v26 = vld [vmem:[#allocation5 + $0x4c0] sm:$0xff]  }
  0xce   :  { %8061 = vmatpush3.bf16.msra.mxu0 %v9084_v25  ;;  %v9144_v25 = vld [vmem:[#allocation5 + $0x400] sm:$0xff]  }
  0xcf   :  { %8062 = vmatprep.subr.bf16.mxu0 %v9087_v28  ;;  %v9147_v28 = vld [vmem:[#allocation5 + $0x448] sm:$0xff]  }
  0xd0   :  { %8083 = vmatpush3.bf16.msra.mxu1 %v9086_v27  ;;  %v9146_v27 = vld [vmem:[#allocation5 + $0x480] sm:$0xff]  }
  0xd1   :  { %8084 = vmatprep.subr.bf16.mxu1 %v9089_v30  ;;  %v9149_v30 = vld [vmem:[#allocation5 + $0x4c8] sm:$0xff]  }
  0xd2   :  { %8063 = vmatpush3.bf16.msra.mxu0 %v9088_v29  ;;  %v9148_v29 = vld [vmem:[#allocation5 + $0x408] sm:$0xff]  }
  0xd3   :  { %8064 = vmatprep.subr.bf16.mxu0 %v9091_v32  ;;  %v9151_v32 = vld [vmem:[#allocation5 + $0x450] sm:$0xff]  }
  0xd4   :  { %8085 = vmatpush3.bf16.msra.mxu1 %v9090_v31  ;;  %v9150_v31 = vld [vmem:[#allocation5 + $0x488] sm:$0xff]  }
  0xd5   :  { %8086 = vmatprep.subr.bf16.mxu1 %v9093_v34  ;;  %v9153_v34 = vld [vmem:[#allocation5 + $0x4d0] sm:$0xff]  }
  0xd6   :  { %8065 = vmatpush3.bf16.msra.mxu0 %v9092_v33  ;;  %v9152_v33 = vld [vmem:[#allocation5 + $0x410] sm:$0xff]  }
  0xd7   :  { %8066 = vmatprep.subr.bf16.mxu0 %v9095_v36  ;;  %v9155_v36 = vld [vmem:[#allocation5 + $0x458] sm:$0xff]  }
  0xd8   :  { %8087 = vmatpush3.bf16.msra.mxu1 %v9094_v35  ;;  %v9154_v35 = vld [vmem:[#allocation5 + $0x490] sm:$0xff]  }
  0xd9   :  { %8088 = vmatprep.subr.bf16.mxu1 %v9097_v38  ;;  %v9157_v38 = vld [vmem:[#allocation5 + $0x4d8] sm:$0xff]  }
  0xda   :  { %8067 = vmatpush3.bf16.msra.mxu0 %v9096_v37  ;;  %v9156_v37 = vld [vmem:[#allocation5 + $0x418] sm:$0xff]  }
  0xdb   :  { %8068 = vmatprep.subr.bf16.mxu0 %v9099_v40  ;;  %v9159_v40 = vld [vmem:[#allocation5 + $0x460] sm:$0xff]  }
  0xdc   :  { %8089 = vmatpush3.bf16.msra.mxu1 %v9098_v39  ;;  %v9158_v39 = vld [vmem:[#allocation5 + $0x498] sm:$0xff]  }
  0xdd   :  { %8090 = vmatprep.subr.bf16.mxu1 %v9101_v42  ;;  %v9161_v42 = vld [vmem:[#allocation5 + $0x4e0] sm:$0xff]  }
  0xde   :  { %8069 = vmatpush3.bf16.msra.mxu0 %v9100_v41  ;;  %v9160_v41 = vld [vmem:[#allocation5 + $0x420] sm:$0xff]  }
  0xdf   :  { %8098 = vmatprep.subr.bf16.mxu0 %v9105_v47  ;;  %v9166_v47 = vld [vmem:[#allocation5 + $0x4a8] sm:$0xff]  }
  0xe0   :  { %8091 = vmatpush3.bf16.msra.mxu1 %v9104_v46  ;;  %v9165_v46 = vld [vmem:[#allocation5 + $0x4e8] sm:$0xff]  }
  0xe1   :  { %5635 = vmatmul.mubr.bf16.vlgmr.msra.gmra.mrb[8].mxu0 %v7267_v44  ;;  %8120 = vmatprep.subr.bf16.mxu1 %v9109_v52  ;;  %v9163_v44 = vld [vmem:[#allocation5 + $0x468] sm:$0xff]   ;;  %v9171_v52 = vld [vmem:[#allocation5 + $0x478] sm:$0xff]  }
  0xe2   :  { %8099 = vmatpush3.bf16.msra.mxu0 %v9108_v51  ;;  %5714 = vmatprep.mubr.bf16.mxu0 %v7272_v19  ;;  %v9170_v51 = vld [vmem:[#allocation5 + $0x4b0] sm:$0xff]   ;;  %v9200_v19 = vld [vmem:[#allocation5 + $0x528] sm:$0xff]  }
  0xe3   :  { %5675 = vmatmul.mubr.bf16.vlgmr.msra.gmra.mrb[8].mxu1 %v7269_v49  ;;  %8100 = vmatprep.subr.bf16.mxu0 %v9111_v54  ;;  %v9168_v49 = vld [vmem:[#allocation5 + $0x430] sm:$0xff]   ;;  %v9173_v54 = vld [vmem:[#allocation5 + $0x4f8] sm:$0xff]  }
  0xe4   :  { %8121 = vmatpush3.bf16.msra.mxu1 %v9110_v53  ;;  %5754 = vmatprep.mubr.bf16.mxu1 %v7274_v24  ;;  %v9172_v53 = vld [vmem:[#allocation5 + $0x438] sm:$0xff]   ;;  %v9205_v24 = vld [vmem:[#allocation5 + $0x5f0] sm:$0xff]  }
  0xe5   :  { %8122 = vmatprep.subr.bf16.mxu1 %v9113_v56 }
  0xe6   :  { %8101 = vmatpush3.bf16.msra.mxu0 %v9112_v55  ;;  %v123_v55 = vld [vmem:[#allocation2 + $0x40] sm:$0xff] }
  0xe7   :  { %8102 = vmatprep.subr.bf16.mxu0 %v9115_v58  ;;  %v7275_v56 = vcombine.low %v123_v55, %v123_v55  ;;  %v9176_v58 = vld [vmem:[#allocation5 + $0x4b8] sm:$0xff]  }
  0xe8   :  { %8123 = vmatpush3.bf16.msra.mxu1 %v9114_v57  ;;  %v7276_v57 = vcombine.high %v123_v55, %v123_v55  ;;  %v9234_v55 = vld [vmem:[#allocation5 + $0x6a0] sm:$0xff]  }
  0xe9   :  { %8124 = vmatprep.subr.bf16.mxu1 %v9117_v60  ;;  %v124_v60 = vld [vmem:[#allocation2 + $0x48] sm:$0xff] }
  0xea   :  { %8103 = vmatpush3.bf16.msra.mxu0 %v9116_v59  ;;  %v9177_v59 = vld [vmem:[#allocation5 + $0x540] sm:$0xff]  }
  0xeb   :  { %8104 = vmatprep.subr.bf16.mxu0 %v9119_v62  ;;  %v7278_v62 = vcombine.high %v124_v60, %v124_v60 }
  0xec   :  { %8125 = vmatpush3.bf16.msra.mxu1 %v9118_v61  ;;  %v7277_v61 = vcombine.low %v124_v60, %v124_v60  ;;  %v9239_v60 = vld [vmem:[#allocation5 + $0x670] sm:$0xff]  }
  0xed   :  { %8126 = vmatprep.subr.bf16.mxu1 %v9121_v0  ;;  %v9181_v0 = vld [vmem:[#allocation5 + $0x5c0] sm:$0xff]  }
  0xee   :  { %8105 = vmatpush3.bf16.msra.mxu0 %v9120_v63  ;;  %v9180_v63 = vld [vmem:[#allocation5 + $0x500] sm:$0xff]  }
  0xef   :  { %8106 = vmatprep.subr.bf16.mxu0 %v9123_v2  ;;  %v9183_v2 = vld [vmem:[#allocation5 + $0x548] sm:$0xff]  }
  0xf0   :  { %8127 = vmatpush3.bf16.msra.mxu1 %v9122_v1  ;;  %v9182_v1 = vld [vmem:[#allocation5 + $0x580] sm:$0xff]  }
  0xf1   :  { %8128 = vmatprep.subr.bf16.mxu1 %v9125_v4  ;;  %v9185_v4 = vld [vmem:[#allocation5 + $0x5c8] sm:$0xff]  }
  0xf2   :  { %8107 = vmatpush3.bf16.msra.mxu0 %v9124_v3  ;;  %v9184_v3 = vld [vmem:[#allocation5 + $0x508] sm:$0xff]  }
  0xf3   :  { %8108 = vmatprep.subr.bf16.mxu0 %v9127_v6  ;;  %v9187_v6 = vld [vmem:[#allocation5 + $0x550] sm:$0xff]  }
  0xf4   :  { %8129 = vmatpush3.bf16.msra.mxu1 %v9126_v5  ;;  %v9186_v5 = vld [vmem:[#allocation5 + $0x588] sm:$0xff]  }
  0xf5   :  { %8130 = vmatprep.subr.bf16.mxu1 %v9129_v8  ;;  %v9189_v8 = vld [vmem:[#allocation5 + $0x5d0] sm:$0xff]  }
  0xf6   :  { %8109 = vmatpush3.bf16.msra.mxu0 %v9128_v7  ;;  %v9188_v7 = vld [vmem:[#allocation5 + $0x510] sm:$0xff]  }
  0xf7   :  { %8110 = vmatprep.subr.bf16.mxu0 %v9131_v10  ;;  %v9191_v10 = vld [vmem:[#allocation5 + $0x558] sm:$0xff]  }
  0xf8   :  { %8131 = vmatpush3.bf16.msra.mxu1 %v9130_v9  ;;  %v9190_v9 = vld [vmem:[#allocation5 + $0x590] sm:$0xff]  }
  0xf9   :  { %8132 = vmatprep.subr.bf16.mxu1 %v9133_v12  ;;  %v9193_v12 = vld [vmem:[#allocation5 + $0x5d8] sm:$0xff]  }
  0xfa   :  { %8111 = vmatpush3.bf16.msra.mxu0 %v9132_v11  ;;  %v9192_v11 = vld [vmem:[#allocation5 + $0x518] sm:$0xff]  }
  0xfb   :  { %8112 = vmatprep.subr.bf16.mxu0 %v9135_v14  ;;  %v9195_v14 = vld [vmem:[#allocation5 + $0x560] sm:$0xff]  }
  0xfc   :  { %8133 = vmatpush3.bf16.msra.mxu1 %v9134_v13  ;;  %v9194_v13 = vld [vmem:[#allocation5 + $0x598] sm:$0xff]  }
  0xfd   :  { %8134 = vmatprep.subr.bf16.mxu1 %v9137_v16  ;;  %v9197_v16 = vld [vmem:[#allocation5 + $0x5e0] sm:$0xff]  }
  0xfe   :  { %8113 = vmatpush3.bf16.msra.mxu0 %v9136_v15  ;;  %v9196_v15 = vld [vmem:[#allocation5 + $0x520] sm:$0xff]  }
  0xff   :  { %8142 = vmatprep.subr.bf16.mxu0 %v9141_v21  ;;  %v9202_v21 = vld [vmem:[#allocation5 + $0x5a8] sm:$0xff]  }
 0x100   :  { %8135 = vmatpush3.bf16.msra.mxu1 %v9140_v20  ;;  %v9201_v20 = vld [vmem:[#allocation5 + $0x5e8] sm:$0xff]  }
 0x101   :  { %5715 = vmatmul.mubr.bf16.vlgmr.msra.gmra.mrb[12].mxu0 %v7271_v18  ;;  %8164 = vmatprep.subr.bf16.mxu1 %v9145_v26  ;;  %v9199_v18 = vld [vmem:[#allocation5 + $0x568] sm:$0xff]   ;;  %v9207_v26 = vld [vmem:[#allocation5 + $0x578] sm:$0xff]  }
 0x102   :  { %8143 = vmatpush3.bf16.msra.mxu0 %v9144_v25  ;;  %5794 = vmatprep.mubr.bf16.mxu0 %v7276_v57  ;;  %v9206_v25 = vld [vmem:[#allocation5 + $0x5b0] sm:$0xff]   ;;  %v9236_v57 = vld [vmem:[#allocation5 + $0x628] sm:$0xff]  }
 0x103   :  { %5755 = vmatmul.mubr.bf16.vlgmr.msra.gmra.mrb[12].mxu1 %v7273_v23  ;;  %8144 = vmatprep.subr.bf16.mxu0 %v9147_v28  ;;  %v9204_v23 = vld [vmem:[#allocation5 + $0x530] sm:$0xff]   ;;  %v9209_v28 = vld [vmem:[#allocation5 + $0x5f8] sm:$0xff]  }
 0x104   :  { %8165 = vmatpush3.bf16.msra.mxu1 %v9146_v27  ;;  %5834 = vmatprep.mubr.bf16.mxu1 %v7278_v62  ;;  %v9208_v27 = vld [vmem:[#allocation5 + $0x538] sm:$0xff]   ;;  %v9241_v62 = vld [vmem:[#allocation5 + $0x6f0] sm:$0xff]  }
 0x105   :  { %8166 = vmatprep.subr.bf16.mxu1 %v9149_v30 }
 0x106   :  { %8145 = vmatpush3.bf16.msra.mxu0 %v9148_v29  ;;  %v125_v29 = vld [vmem:[#allocation2 + $0x50] sm:$0xff] }
 0x107   :  { %8146 = vmatprep.subr.bf16.mxu0 %v9151_v32  ;;  %v7279_v30 = vcombine.low %v125_v29, %v125_v29  ;;  %v9212_v32 = vld [vmem:[#allocation5 + $0x5b8] sm:$0xff]  }
 0x108   :  { %8167 = vmatpush3.bf16.msra.mxu1 %v9150_v31  ;;  %v7280_v31 = vcombine.high %v125_v29, %v125_v29  ;;  %v9269_v29 = vld [vmem:[#allocation5 + $0x7e0] sm:$0xff]  }
 0x109   :  { %8168 = vmatprep.subr.bf16.mxu1 %v9153_v34  ;;  %v126_v34 = vld [vmem:[#allocation2 + $0x58] sm:$0xff] }
 0x10a   :  { %8147 = vmatpush3.bf16.msra.mxu0 %v9152_v33  ;;  %v9213_v33 = vld [vmem:[#allocation5 + $0x640] sm:$0xff]  }
 0x10b   :  { %8148 = vmatprep.subr.bf16.mxu0 %v9155_v36  ;;  %v7282_v36 = vcombine.high %v126_v34, %v126_v34 }
 0x10c   :  { %8169 = vmatpush3.bf16.msra.mxu1 %v9154_v35  ;;  %v7281_v35 = vcombine.low %v126_v34, %v126_v34 }
 0x10d   :  { %8170 = vmatprep.subr.bf16.mxu1 %v9157_v38  ;;  %v9217_v38 = vld [vmem:[#allocation5 + $0x6c0] sm:$0xff]  }
 0x10e   :  { %8149 = vmatpush3.bf16.msra.mxu0 %v9156_v37  ;;  %v9216_v37 = vld [vmem:[#allocation5 + $0x600] sm:$0xff]  }
 0x10f   :  { %8150 = vmatprep.subr.bf16.mxu0 %v9159_v40  ;;  %v9219_v40 = vld [vmem:[#allocation5 + $0x648] sm:$0xff]  }
 0x110   :  { %8171 = vmatpush3.bf16.msra.mxu1 %v9158_v39  ;;  %v9218_v39 = vld [vmem:[#allocation5 + $0x680] sm:$0xff]  }
 0x111   :  { %8172 = vmatprep.subr.bf16.mxu1 %v9161_v42  ;;  %v9221_v42 = vld [vmem:[#allocation5 + $0x6c8] sm:$0xff]  }
 0x112   :  { %8151 = vmatpush3.bf16.msra.mxu0 %v9160_v41  ;;  %v9220_v41 = vld [vmem:[#allocation5 + $0x608] sm:$0xff]  }
 0x113   :  { %8152 = vmatprep.subr.bf16.mxu0 %v9163_v44  ;;  %v9223_v44 = vld [vmem:[#allocation5 + $0x650] sm:$0xff]  }
 0x114   :  { %8173 = vmatpush3.bf16.msra.mxu1 %v9162_v43  ;;  %v9222_v43 = vld [vmem:[#allocation5 + $0x688] sm:$0xff]  }
 0x115   :  { %8174 = vmatprep.subr.bf16.mxu1 %v9165_v46  ;;  %v9225_v46 = vld [vmem:[#allocation5 + $0x6d0] sm:$0xff]  }
 0x116   :  { %8153 = vmatpush3.bf16.msra.mxu0 %v9164_v45  ;;  %v9224_v45 = vld [vmem:[#allocation5 + $0x610] sm:$0xff]  }
 0x117   :  { %8154 = vmatprep.subr.bf16.mxu0 %v9167_v48  ;;  %v9227_v48 = vld [vmem:[#allocation5 + $0x658] sm:$0xff]  }
 0x118   :  { %8175 = vmatpush3.bf16.msra.mxu1 %v9166_v47  ;;  %v9226_v47 = vld [vmem:[#allocation5 + $0x690] sm:$0xff]  }
 0x119   :  { %8176 = vmatprep.subr.bf16.mxu1 %v9169_v50  ;;  %v9229_v50 = vld [vmem:[#allocation5 + $0x6d8] sm:$0xff]  }
 0x11a   :  { %8155 = vmatpush3.bf16.msra.mxu0 %v9168_v49  ;;  %v9228_v49 = vld [vmem:[#allocation5 + $0x618] sm:$0xff]  }
 0x11b   :  { %8156 = vmatprep.subr.bf16.mxu0 %v9171_v52  ;;  %v9231_v52 = vld [vmem:[#allocation5 + $0x660] sm:$0xff]  }
 0x11c   :  { %8177 = vmatpush3.bf16.msra.mxu1 %v9170_v51  ;;  %v9230_v51 = vld [vmem:[#allocation5 + $0x698] sm:$0xff]  }
 0x11d   :  { %8178 = vmatprep.subr.bf16.mxu1 %v9173_v54  ;;  %v9233_v54 = vld [vmem:[#allocation5 + $0x6e0] sm:$0xff]  }
 0x11e   :  { %8157 = vmatpush3.bf16.msra.mxu0 %v9172_v53  ;;  %v9232_v53 = vld [vmem:[#allocation5 + $0x620] sm:$0xff]  }
 0x11f   :  { %8186 = vmatprep.subr.bf16.mxu0 %v9177_v59  ;;  %v9238_v59 = vld [vmem:[#allocation5 + $0x6a8] sm:$0xff]  }
 0x120   :  { %8179 = vmatpush3.bf16.msra.mxu1 %v9176_v58  ;;  %v9237_v58 = vld [vmem:[#allocation5 + $0x6e8] sm:$0xff]  }
 0x121   :  { %5795 = vmatmul.mubr.bf16.vlgmr.msra.gmra.mrb[16].mxu0 %v7275_v56  ;;  %8208 = vmatprep.subr.bf16.mxu1 %v9181_v0  ;;  %v9235_v56 = vld [vmem:[#allocation5 + $0x668] sm:$0xff]   ;;  %v9243_v0 = vld [vmem:[#allocation5 + $0x678] sm:$0xff]  }
 0x122   :  { %8187 = vmatpush3.bf16.msra.mxu0 %v9180_v63  ;;  %5874 = vmatprep.mubr.bf16.mxu0 %v7280_v31  ;;  %v9242_v63 = vld [vmem:[#allocation5 + $0x6b0] sm:$0xff]   ;;  %v9270_v31 = vld [vmem:[#allocation5 + $0x7a0] sm:$0xff]  }
 0x123   :  { %5835 = vmatmul.mubr.bf16.vlgmr.msra.gmra.mrb[16].mxu1 %v7277_v61  ;;  %8188 = vmatprep.subr.bf16.mxu0 %v9183_v2  ;;  %v9240_v61 = vld [vmem:[#allocation5 + $0x630] sm:$0xff]   ;;  %v9245_v2 = vld [vmem:[#allocation5 + $0x6f8] sm:$0xff]  }
 0x124   :  { %8209 = vmatpush3.bf16.msra.mxu1 %v9182_v1  ;;  %5914 = vmatprep.mubr.bf16.mxu1 %v7282_v36  ;;  %v9244_v1 = vld [vmem:[#allocation5 + $0x638] sm:$0xff]  }
 0x125   :  { %8210 = vmatprep.subr.bf16.mxu1 %v9185_v4 }
 0x126   :  { %8189 = vmatpush3.bf16.msra.mxu0 %v9184_v3  ;;  %v127_v3 = vld [vmem:[#allocation2 + $0x60] sm:$0xff] }
 0x127   :  { %8190 = vmatprep.subr.bf16.mxu0 %v9187_v6  ;;  %v7283_v4 = vcombine.low %v127_v3, %v127_v3  ;;  %v9248_v6 = vld [vmem:[#allocation5 + $0x6b8] sm:$0xff]  }
 0x128   :  { %8211 = vmatpush3.bf16.msra.mxu1 %v9186_v5  ;;  %v7284_v5 = vcombine.high %v127_v3, %v127_v3  ;;  %v9293_v3 = vld [vmem:[#allocation5 + $0x8c8] sm:$0xff]  }
 0x129   :  { %8212 = vmatprep.subr.bf16.mxu1 %v9189_v8  ;;  %v128_v8 = vld [vmem:[#allocation2 + $0x68] sm:$0xff] }
 0x12a   :  { %8191 = vmatpush3.bf16.msra.mxu0 %v9188_v7  ;;  %v9249_v7 = vld [vmem:[#allocation5 + $0x740] sm:$0xff]  }
 0x12b   :  { %8192 = vmatprep.subr.bf16.mxu0 %v9191_v10  ;;  %v7286_v10 = vcombine.high %v128_v8, %v128_v8 }
 0x12c   :  { %8213 = vmatpush3.bf16.msra.mxu1 %v9190_v9  ;;  %v7285_v9 = vcombine.low %v128_v8, %v128_v8  ;;  %v9298_v8 = vld [vmem:[#allocation5 + $0x890] sm:$0xff]  }
 0x12d   :  { %8214 = vmatprep.subr.bf16.mxu1 %v9193_v12  ;;  %v9253_v12 = vld [vmem:[#allocation5 + $0x7c0] sm:$0xff]  }
 0x12e   :  { %8193 = vmatpush3.bf16.msra.mxu0 %v9192_v11  ;;  %v9252_v11 = vld [vmem:[#allocation5 + $0x700] sm:$0xff]  }
 0x12f   :  { %8194 = vmatprep.subr.bf16.mxu0 %v9195_v14  ;;  %v9255_v14 = vld [vmem:[#allocation5 + $0x748] sm:$0xff]  }
 0x130   :  { %8215 = vmatpush3.bf16.msra.mxu1 %v9194_v13  ;;  %v9254_v13 = vld [vmem:[#allocation5 + $0x780] sm:$0xff]  }
 0x131   :  { %8216 = vmatprep.subr.bf16.mxu1 %v9197_v16  ;;  %v9257_v16 = vld [vmem:[#allocation5 + $0x7c8] sm:$0xff]  }
 0x132   :  { %8195 = vmatpush3.bf16.msra.mxu0 %v9196_v15  ;;  %v9256_v15 = vld [vmem:[#allocation5 + $0x708] sm:$0xff]  }
 0x133   :  { %8196 = vmatprep.subr.bf16.mxu0 %v9199_v18  ;;  %v9259_v18 = vld [vmem:[#allocation5 + $0x750] sm:$0xff]  }
 0x134   :  { %8217 = vmatpush3.bf16.msra.mxu1 %v9198_v17  ;;  %v9258_v17 = vld [vmem:[#allocation5 + $0x788] sm:$0xff]  }
 0x135   :  { %8218 = vmatprep.subr.bf16.mxu1 %v9201_v20  ;;  %v9261_v20 = vld [vmem:[#allocation5 + $0x7d0] sm:$0xff]  }
 0x136   :  { %8197 = vmatpush3.bf16.msra.mxu0 %v9200_v19  ;;  %v9260_v19 = vld [vmem:[#allocation5 + $0x710] sm:$0xff]  }
 0x137   :  { %8198 = vmatprep.subr.bf16.mxu0 %v9203_v22  ;;  %v9263_v22 = vld [vmem:[#allocation5 + $0x758] sm:$0xff]  }
 0x138   :  { %8219 = vmatpush3.bf16.msra.mxu1 %v9202_v21  ;;  %v9262_v21 = vld [vmem:[#allocation5 + $0x790] sm:$0xff]  }
 0x139   :  { %8220 = vmatprep.subr.bf16.mxu1 %v9205_v24  ;;  %v9265_v24 = vld [vmem:[#allocation5 + $0x7d8] sm:$0xff]  }
 0x13a   :  { %8199 = vmatpush3.bf16.msra.mxu0 %v9204_v23  ;;  %v9264_v23 = vld [vmem:[#allocation5 + $0x718] sm:$0xff]  }
 0x13b   :  { %8200 = vmatprep.subr.bf16.mxu0 %v9207_v26  ;;  %v9267_v26 = vld [vmem:[#allocation5 + $0x760] sm:$0xff]  }
 0x13c   :  { %8221 = vmatpush3.bf16.msra.mxu1 %v9206_v25  ;;  %v9266_v25 = vld [vmem:[#allocation5 + $0x798] sm:$0xff]  }
 0x13d   :  { %8222 = vmatprep.subr.bf16.mxu1 %v9209_v28 }
 0x13e   :  { %8201 = vmatpush3.bf16.msra.mxu0 %v9208_v27  ;;  %v9268_v27 = vld [vmem:[#allocation5 + $0x720] sm:$0xff]  }
 0x13f   :  { %8230 = vmatprep.subr.bf16.mxu0 %v9213_v33 }
 0x140   :  { %8223 = vmatpush3.bf16.msra.mxu1 %v9212_v32  ;;  %v7258_v32 = vld [vmem:[#allocation7] ss:$0 sm:$0xff] }
 0x141   :  { %5875 = vmatmul.mubr.bf16.vlgmr.msra.gmra.mrb[20].mxu0 %v7279_v30  ;;  %8252 = vmatprep.subr.bf16.mxu1 %v9217_v38  ;;  %v9272_v38 = vld [vmem:[#allocation5 + $0x728] sm:$0xff]  }
 0x142   :  { %8231 = vmatpush3.bf16.msra.mxu0 %v9216_v37  ;;  %5954 = vmatprep.mubr.bf16.mxu0 %v7284_v5  ;;  %v9295_v5 = vld [vmem:[#allocation5 + $0x850] sm:$0xff]  }
 0x143   :  { %5915 = vmatmul.mubr.bf16.vlgmr.msra.gmra.mrb[20].mxu1 %v7281_v35  ;;  %8232 = vmatprep.subr.bf16.mxu0 %v9219_v40  ;;  %v9271_v35 = vld [vmem:[#allocation5 + $0x768] sm:$0xff]  }
 0x144   :  { %8253 = vmatpush3.bf16.msra.mxu1 %v9218_v39  ;;  %5994 = vmatprep.mubr.bf16.mxu1 %v7286_v10  ;;  %v9300_v10 = vld [vmem:[#allocation5 + $0x818] sm:$0xff]  }
 0x145   :  { %8254 = vmatprep.subr.bf16.mxu1 %v9221_v42 }
 0x146   :  { %8233 = vmatpush3.bf16.msra.mxu0 %v9220_v41  ;;  %v9273_v41 = vld [vmem:[#allocation5 + $0x7e8] sm:$0xff]  }
 0x147   :  { %8234 = vmatprep.subr.bf16.mxu0 %v9223_v44 }
 0x148   :  { %8255 = vmatpush3.bf16.msra.mxu1 %v9222_v43  ;;  %v9274_v43 = vld [vmem:[#allocation5 + $0x7a8] sm:$0xff]  }
 0x149   :  { %8256 = vmatprep.subr.bf16.mxu1 %v9225_v46 }
 0x14a   :  { %8235 = vmatpush3.bf16.msra.mxu0 %v9224_v45  ;;  %v9275_v45 = vld [vmem:[#allocation5 + $0x770] sm:$0xff]  }
 0x14b   :  { %8236 = vmatprep.subr.bf16.mxu0 %v9227_v48  ;;  %v9276_v48 = vld [vmem:[#allocation5 + $0x730] sm:$0xff]  }
 0x14c   :  { %8257 = vmatpush3.bf16.msra.mxu1 %v9226_v47 }
 0x14d   :  { %8258 = vmatprep.subr.bf16.mxu1 %v9229_v50  ;;  %v9278_v50 = vld [vmem:[#allocation5 + $0x7b0] sm:$0xff]  }
 0x14e   :  { %8237 = vmatpush3.bf16.msra.mxu0 %v9228_v49  ;;  %v9277_v49 = vld [vmem:[#allocation5 + $0x7f0] sm:$0xff]  }
 0x14f   :  { %8238 = vmatprep.subr.bf16.mxu0 %v9231_v52  ;;  %v9280_v52 = vld [vmem:[#allocation5 + $0x738] sm:$0xff]  }
 0x150   :  { %8259 = vmatpush3.bf16.msra.mxu1 %v9230_v51  ;;  %v9279_v51 = vld [vmem:[#allocation5 + $0x778] sm:$0xff]  }
 0x151   :  { %8260 = vmatprep.subr.bf16.mxu1 %v9233_v54  ;;  %v129_v54 = vld [vmem:[#allocation2 + $0x70] sm:$0xff] }
 0x152   :  { %8239 = vmatpush3.bf16.msra.mxu0 %v9232_v53  ;;  %v9281_v53 = vld [vmem:[#allocation5 + $0x7f8] sm:$0xff]  }
 0x153   :  { %8240 = vmatprep.subr.bf16.mxu0 %v9235_v56  ;;  %v7288_v56 = vcombine.high %v129_v54, %v129_v54 }
 0x154   :  { %8261 = vmatpush3.bf16.msra.mxu1 %v9234_v55  ;;  %v7287_v55 = vcombine.low %v129_v54, %v129_v54  ;;  %v9330_v54 = vld [vmem:[#allocation5 + $0x988] sm:$0xff]  }
 0x155   :  { %8262 = vmatprep.subr.bf16.mxu1 %v9237_v58  ;;  %v9285_v58 = vld [vmem:[#allocation5 + $0x840] sm:$0xff]  }
 0x156   :  { %8241 = vmatpush3.bf16.msra.mxu0 %v9236_v57  ;;  %v9284_v57 = vld [vmem:[#allocation5 + $0x7b8] sm:$0xff]  }
 0x157   :  { %8242 = vmatprep.subr.bf16.mxu0 %v9239_v60 }
 0x158   :  { %8263 = vmatpush3.bf16.msra.mxu1 %v9238_v59  ;;  %v130_v59 = vld [vmem:[#allocation2 + $0x78] sm:$0xff] }
 0x159   :  { %8264 = vmatprep.subr.bf16.mxu1 %v9241_v62  ;;  %v7289_v60 = vcombine.low %v130_v59, %v130_v59  ;;  %v9288_v62 = vld [vmem:[#allocation5 + $0x800] sm:$0xff]  }
 0x15a   :  { %8243 = vmatpush3.bf16.msra.mxu0 %v9240_v61  ;;  %v7290_v61 = vcombine.high %v130_v59, %v130_v59  ;;  %v9335_v59 = vld [vmem:[#allocation5 + $0x958] sm:$0xff]  }
 0x15b   :  { %8244 = vmatprep.subr.bf16.mxu0 %v9243_v0  ;;  %v9290_v0 = vld [vmem:[#allocation5 + $0x880] sm:$0xff]  }
 0x15c   :  { %8265 = vmatpush3.bf16.msra.mxu1 %v9242_v63  ;;  %v9289_v63 = vld [vmem:[#allocation5 + $0x8c0] sm:$0xff]  }
 0x15d   :  { %8266 = vmatprep.subr.bf16.mxu1 %v9245_v2  ;;  %v9292_v2 = vld [vmem:[#allocation5 + $0x808] sm:$0xff]  }
 0x15e   :  { %8245 = vmatpush3.bf16.msra.mxu0 %v9244_v1  ;;  %v9291_v1 = vld [vmem:[#allocation5 + $0x848] sm:$0xff]  }
 0x15f   :  { %8274 = vmatprep.subr.bf16.mxu0 %v9249_v7  ;;  %v9297_v7 = vld [vmem:[#allocation5 + $0x8d0] sm:$0xff]  }
 0x160   :  { %8267 = vmatpush3.bf16.msra.mxu1 %v9248_v6  ;;  %v9296_v6 = vld [vmem:[#allocation5 + $0x810] sm:$0xff]  }
 0x161   :  { %5955 = vmatmul.mubr.bf16.vlgmr.msra.gmra.mrb[24].mxu0 %v7283_v4  ;;  %8296 = vmatprep.subr.bf16.mxu1 %v9253_v12  ;;  %v9294_v4 = vld [vmem:[#allocation5 + $0x888] sm:$0xff]   ;;  %v9302_v12 = vld [vmem:[#allocation5 + $0x898] sm:$0xff]  }
 0x162   :  { %8275 = vmatpush3.bf16.msra.mxu0 %v9252_v11  ;;  %6034 = vmatprep.mubr.bf16.mxu0 %v7288_v56  ;;  %v9301_v11 = vld [vmem:[#allocation5 + $0x8d8] sm:$0xff]   ;;  %v9332_v56 = vld [vmem:[#allocation5 + $0x910] sm:$0xff]  }
 0x163   :  { %5995 = vmatmul.mubr.bf16.vlgmr.msra.gmra.mrb[24].mxu1 %v7285_v9  ;;  %8276 = vmatprep.subr.bf16.mxu0 %v9255_v14  ;;  %v9299_v9 = vld [vmem:[#allocation5 + $0x858] sm:$0xff]  }
 0x164   :  { %8297 = vmatpush3.bf16.msra.mxu1 %v9254_v13  ;;  %6074 = vmatprep.mubr.bf16.mxu1 %v7290_v61  ;;  %v9303_v13 = vld [vmem:[#allocation5 + $0x860] sm:$0xff]   ;;  %v9337_v61 = vld [vmem:[#allocation5 + $0x9d8] sm:$0xff]  }
 0x165   :  { %8298 = vmatprep.subr.bf16.mxu1 %v9257_v16 }
 0x166   :  { %8277 = vmatpush3.bf16.msra.mxu0 %v9256_v15  ;;  %v9304_v15 = vld [vmem:[#allocation5 + $0x820] sm:$0xff]  }
 0x167   :  { %8278 = vmatprep.subr.bf16.mxu0 %v9259_v18 }
 0x168   :  { %8299 = vmatpush3.bf16.msra.mxu1 %v9258_v17  ;;  %v9305_v17 = vld [vmem:[#allocation5 + $0x8e0] sm:$0xff]  }
 0x169   :  { %8300 = vmatprep.subr.bf16.mxu1 %v9261_v20  ;;  %v9306_v20 = vld [vmem:[#allocation5 + $0x8a0] sm:$0xff]  }
 0x16a   :  { %8279 = vmatpush3.bf16.msra.mxu0 %v9260_v19 }
 0x16b   :  { %8280 = vmatprep.subr.bf16.mxu0 %v9263_v22 }
 0x16c   :  { %8301 = vmatpush3.bf16.msra.mxu1 %v9262_v21 }
 0x16d   :  { %8302 = vmatprep.subr.bf16.mxu1 %v9265_v24 }
 0x16e   :  { %8281 = vmatpush3.bf16.msra.mxu0 %v9264_v23  ;;  %v9307_v23 = vld [vmem:[#allocation5 + $0x868] sm:$0xff]  }
 0x16f   :  { %8282 = vmatprep.subr.bf16.mxu0 %v9267_v26 }
 0x170   :  { %8303 = vmatpush3.bf16.msra.mxu1 %v9266_v25  ;;  %v9308_v25 = vld [vmem:[#allocation5 + $0x828] sm:$0xff]  }
 0x171   :  { %8304 = vmatprep.subr.bf16.mxu1 %v9269_v29 }
 0x172   :  { %8283 = vmatpush3.bf16.msra.mxu0 %v9268_v27 }
 0x173   :  { %8284 = vmatprep.subr.bf16.mxu0 %v9271_v35  ;;  %v9313_v35 = vld [vmem:[#allocation5 + $0x8f0] sm:$0xff]  }
 0x174   :  { %v7982_v28 = vpop.f32.mrb[0].mxu0  ;;  %8305 = vmatpush3.bf16.msra.mxu1 %v9270_v31 }
 0x175   :  { %v7983_v30 = vpop.f32.mrb[1].mxu0  ;;  %8306 = vmatprep.subr.bf16.mxu1 %v9273_v41 }
 0x176   :  { %v7984_v33 = vadd.f32 %v7983_v30, %v7982_v28  ;;  %v7985_v34 = vpop.f32.mrb[2].mxu0  ;;  %v8004_v36 = vpop.f32.mrb[0].mxu1  ;;  %8285 = vmatpush3.bf16.msra.mxu0 %v9272_v38  ;;  %v9309_v28 = vld [vmem:[#allocation5 + $0x8e8] sm:$0xff]   ;;  %v9316_v38 = vld [vmem:[#allocation5 + $0x838] sm:$0xff]  }
 0x177   :  { %v7986_v39 = vpop.f32.mrb[3].mxu0  ;;  %v8005_v40 = vpop.f32.mrb[1].mxu1  ;;  %8286 = vmatprep.subr.bf16.mxu0 %v9275_v45  ;;  %v9310_v30 = vld [vmem:[#allocation5 + $0x8a8] sm:$0xff]   ;;  %v9312_v34 = vld [vmem:[#allocation5 + $0x830] sm:$0xff]  }
 0x178   :  { %v5477_v37 = vadd.f32 %v7984_v33, %v7258_v32  ;;  %v8006_v42 = vadd.f32 %v8005_v40, %v8004_v36  ;;  %v8007_v44 = vpop.f32.mrb[2].mxu1  ;;  %8307 = vmatpush3.bf16.msra.mxu1 %v9274_v43  ;;  %v9311_v33 = vld [vmem:[#allocation5 + $0x870] sm:$0xff]   ;;  %v9317_v39 = vld [vmem:[#allocation5 + $0x8f8] sm:$0xff]   ;;  %v131_v40 = vld [vmem:[#allocation2 + $0x80] sm:$0xff] }
 0x179   :  { %v8008_v46 = vpop.f32.mrb[3].mxu1  ;;  %8308 = vmatprep.subr.bf16.mxu1 %v9277_v49  ;;  %v9314_v36 = vld [vmem:[#allocation5 + $0x8b0] sm:$0xff]   ;;  %v7291_v41 = vcombine.low %v131_v40, %v131_v40  ;;  %v9320_v43 = vld [vmem:[#allocation5 + $0x8b8] sm:$0xff]   ;;  %v9321_v44 = vld [vmem:[#allocation5 + $0x940] sm:$0xff]  }
 0x17a   :  { %v10032_v47 = vadd.f32 %v8006_v42, %v5477_v37  ;;  %8287 = vmatpush3.bf16.msra.mxu0 %v9276_v48  ;;  %v9315_v37 = vld [vmem:[#allocation5 + $0x878] sm:$0xff]   ;;  %v7292_v42 = vcombine.high %v131_v40, %v131_v40  ;;  %v132_v45 = vld [vmem:[#allocation2 + $0x88] sm:$0xff]  ;;  %v9324_v48 = vld [vmem:[#allocation5 + $0x900] sm:$0xff]  }
 0x17b   :  { %8288 = vmatprep.subr.bf16.mxu0 %v9279_v51  ;;  %v7293_v46 = vcombine.low %v132_v45, %v132_v45  ;;  %v9325_v49 = vld [vmem:[#allocation5 + $0x9c0] sm:$0xff]   ;;  %v9327_v51 = vld [vmem:[#allocation5 + $0x948] sm:$0xff]  }
 0x17c   :  { %8309 = vmatpush3.bf16.msra.mxu1 %v9278_v50  ;;  %v9326_v50 = vld [vmem:[#allocation5 + $0x980] sm:$0xff]   ;;  %v9366_v40 = vld [vmem:[#allocation5 + $0xa88] sm:$0xff]  }
 0x17d   :  { %8310 = vmatprep.subr.bf16.mxu1 %v9281_v53  ;;  %v9329_v53 = vld [vmem:[#allocation5 + $0x9c8] sm:$0xff]  }
 0x17e   :  { %8289 = vmatpush3.bf16.msra.mxu0 %v9280_v52  ;;  %v9328_v52 = vld [vmem:[#allocation5 + $0x908] sm:$0xff]  }
 0x17f   :  { %8318 = vmatprep.subr.bf16.mxu0 %v9285_v58  ;;  %v9334_v58 = vld [vmem:[#allocation5 + $0x990] sm:$0xff]  }
 0x180   :  { %8311 = vmatpush3.bf16.msra.mxu1 %v9284_v57  ;;  %v9333_v57 = vld [vmem:[#allocation5 + $0x9d0] sm:$0xff]  }
 0x181   :  { %6035 = vmatmul.mubr.bf16.vlgmr.msra.gmra.mrb[28].mxu0 %v7287_v55  ;;  %8340 = vmatprep.subr.bf16.mxu1 %v9289_v63  ;;  %v9331_v55 = vld [vmem:[#allocation5 + $0x950] sm:$0xff]   ;;  %v9339_v63 = vld [vmem:[#allocation5 + $0x960] sm:$0xff]  }
 0x182   :  { %8319 = vmatpush3.bf16.msra.mxu0 %v9288_v62  ;;  %6114 = vmatprep.mubr.bf16.mxu0 %v7292_v42  ;;  %v9338_v62 = vld [vmem:[#allocation5 + $0x998] sm:$0xff]   ;;  %v9368_v42 = vld [vmem:[#allocation5 + $0xa10] sm:$0xff]  }
 0x183   :  { %6075 = vmatmul.mubr.bf16.vlgmr.msra.gmra.mrb[28].mxu1 %v7289_v60  ;;  %8320 = vmatprep.subr.bf16.mxu0 %v9291_v1  ;;  %v9336_v60 = vld [vmem:[#allocation5 + $0x918] sm:$0xff]   ;;  %v9340_v1 = vld [vmem:[#allocation5 + $0x920] sm:$0xff]  }
 0x184   :  { %8341 = vmatpush3.bf16.msra.mxu1 %v9290_v0 }
 0x185   :  { %8342 = vmatprep.subr.bf16.mxu1 %v9293_v3  ;;  %v9341_v3 = vld [vmem:[#allocation5 + $0x9e0] sm:$0xff]  }
 0x186   :  { %8321 = vmatpush3.bf16.msra.mxu0 %v9292_v2 }
 0x187   :  { %8322 = vmatprep.subr.bf16.mxu0 %v9295_v5 }
 0x188   :  { %8343 = vmatpush3.bf16.msra.mxu1 %v9294_v4 }
 0x189   :  { %8344 = vmatprep.subr.bf16.mxu1 %v9297_v7 }
 0x18a   :  { %8323 = vmatpush3.bf16.msra.mxu0 %v9296_v6  ;;  %v9342_v6 = vld [vmem:[#allocation5 + $0x9a0] sm:$0xff]  }
 0x18b   :  { %8324 = vmatprep.subr.bf16.mxu0 %v9299_v9  ;;  %v9343_v9 = vld [vmem:[#allocation5 + $0x968] sm:$0xff]  }
 0x18c   :  { %8345 = vmatpush3.bf16.msra.mxu1 %v9298_v8 }
 0x18d   :  { %8346 = vmatprep.subr.bf16.mxu1 %v9301_v11  ;;  %v9344_v11 = vld [vmem:[#allocation5 + $0x928] sm:$0xff]  }
 0x18e   :  { %8325 = vmatpush3.bf16.msra.mxu0 %v9300_v10 }
 0x18f   :  { %8326 = vmatprep.subr.bf16.mxu0 %v9303_v13 }
 0x190   :  { %8347 = vmatpush3.bf16.msra.mxu1 %v9302_v12 }
 0x191   :  { %8348 = vmatprep.subr.bf16.mxu1 %v9305_v17 }
 0x192   :  { %8327 = vmatpush3.bf16.msra.mxu0 %v9304_v15 }
 0x193   :  { %8328 = vmatprep.subr.bf16.mxu0 %v9307_v23  ;;  %v9351_v23 = vld [vmem:[#allocation5 + $0x978] sm:$0xff]  }
 0x194   :  { %v8026_v14 = vpop.f32.mrb[4].mxu0  ;;  %8349 = vmatpush3.bf16.msra.mxu1 %v9306_v20  ;;  %v9348_v20 = vld [vmem:[#allocation5 + $0x930] sm:$0xff]  }
 0x195   :  { %v8027_v16 = vpop.f32.mrb[5].mxu0  ;;  %8350 = vmatprep.subr.bf16.mxu1 %v9309_v28 }
 0x196   :  { %v8028_v18 = vadd.f32 %v8027_v16, %v8026_v14  ;;  %v8029_v19 = vpop.f32.mrb[6].mxu0  ;;  %v8048_v21 = vpop.f32.mrb[4].mxu1  ;;  %8329 = vmatpush3.bf16.msra.mxu0 %v9308_v25  ;;  %v9345_v14 = vld [vmem:[#allocation5 + $0x9e8] sm:$0xff]   ;;  %v9353_v25 = vld [vmem:[#allocation5 + $0x9f8] sm:$0xff]  }
 0x197   :  { %v8030_v24 = vpop.f32.mrb[7].mxu0  ;;  %v8049_v26 = vpop.f32.mrb[5].mxu1  ;;  %8330 = vmatprep.subr.bf16.mxu0 %v9311_v33  ;;  %v9346_v16 = vld [vmem:[#allocation5 + $0x9a8] sm:$0xff]   ;;  %v9347_v19 = vld [vmem:[#allocation5 + $0x970] sm:$0xff]  }
 0x198   :  { %v5557_v22 = vadd.f32 %v8028_v18, %v10032_v47  ;;  %v8050_v27 = vadd.f32 %v8049_v26, %v8048_v21  ;;  %v8051_v29 = vpop.f32.mrb[6].mxu1  ;;  %8351 = vmatpush3.bf16.msra.mxu1 %v9310_v30  ;;  %v7294_v47 = vcombine.high %v132_v45, %v132_v45  ;;  %v9349_v21 = vld [vmem:[#allocation5 + $0x9f0] sm:$0xff]   ;;  %v9352_v24 = vld [vmem:[#allocation5 + $0x938] sm:$0xff]   ;;  %v9357_v30 = vld [vmem:[#allocation5 + $0xa40] sm:$0xff]  }
 0x199   :  { %v8052_v31 = vpop.f32.mrb[7].mxu1  ;;  %8352 = vmatprep.subr.bf16.mxu1 %v9313_v35  ;;  %v133_v26 = vld [vmem:[#allocation2 + $0x90] sm:$0xff]  ;;  %v9361_v35 = vld [vmem:[#allocation5 + $0xac0] sm:$0xff]  }
 0x19a   :  { %v10035_v32 = vadd.f32 %v8050_v27, %v5557_v22  ;;  %8331 = vmatpush3.bf16.msra.mxu0 %v9312_v34  ;;  %6154 = vmatprep.mubr.bf16.mxu1 %v7294_v47  ;;  %v9350_v22 = vld [vmem:[#allocation5 + $0x9b0] sm:$0xff]   ;;  %v7295_v27 = vcombine.low %v133_v26, %v133_v26  ;;  %v7296_v28 = vcombine.high %v133_v26, %v133_v26  ;;  %v9356_v29 = vld [vmem:[#allocation5 + $0x9b8] sm:$0xff]   ;;  %v9360_v34 = vld [vmem:[#allocation5 + $0xa00] sm:$0xff]  }
 0x19b   :  { %8332 = vmatprep.subr.bf16.mxu0 %v9315_v37  ;;  %v134_v31 = vld [vmem:[#allocation2 + $0x98] sm:$0xff]  ;;  %v9363_v37 = vld [vmem:[#allocation5 + $0xa48] sm:$0xff]  }
 0x19c   :  { %8353 = vmatpush3.bf16.msra.mxu1 %v9314_v36  ;;  %v7298_v33 = vcombine.high %v134_v31, %v134_v31  ;;  %v9362_v36 = vld [vmem:[#allocation5 + $0xa80] sm:$0xff]   ;;  %v9371_v45 = vld [vmem:[#allocation5 + $0xa58] sm:$0xff]   ;;  %v9402_v26 = vld [vmem:[#allocation5 + $0xb88] sm:$0xff]  }
 0x19d   :  { %8354 = vmatprep.subr.bf16.mxu1 %v9317_v39  ;;  %v9365_v39 = vld [vmem:[#allocation5 + $0xac8] sm:$0xff]   ;;  %v9373_v47 = vld [vmem:[#allocation5 + $0xad8] sm:$0xff]  }
 0x19e   :  { %8333 = vmatpush3.bf16.msra.mxu0 %v9316_v38  ;;  %v9364_v38 = vld [vmem:[#allocation5 + $0xa08] sm:$0xff]  }
 0x19f   :  { %8362 = vmatprep.subr.bf16.mxu0 %v9321_v44  ;;  %v9370_v44 = vld [vmem:[#allocation5 + $0xa90] sm:$0xff]  }
 0x1a0   :  { %8355 = vmatpush3.bf16.msra.mxu1 %v9320_v43  ;;  %v9369_v43 = vld [vmem:[#allocation5 + $0xad0] sm:$0xff]  }
 0x1a1   :  { %6115 = vmatmul.mubr.bf16.vlgmr.msra.gmra.mrb[32].mxu0 %v7291_v41  ;;  %8384 = vmatprep.subr.bf16.mxu1 %v9325_v49  ;;  %v9367_v41 = vld [vmem:[#allocation5 + $0xa50] sm:$0xff]   ;;  %v9375_v49 = vld [vmem:[#allocation5 + $0xa60] sm:$0xff]  }
 0x1a2   :  { %8363 = vmatpush3.bf16.msra.mxu0 %v9324_v48  ;;  %6194 = vmatprep.mubr.bf16.mxu0 %v7296_v28  ;;  %v9374_v48 = vld [vmem:[#allocation5 + $0xa98] sm:$0xff]   ;;  %v9404_v28 = vld [vmem:[#allocation5 + $0xb10] sm:$0xff]  }
 0x1a3   :  { %6155 = vmatmul.mubr.bf16.vlgmr.msra.gmra.mrb[32].mxu1 %v7293_v46  ;;  %8364 = vmatprep.subr.bf16.mxu0 %v9327_v51  ;;  %v9372_v46 = vld [vmem:[#allocation5 + $0xa18] sm:$0xff]  }
 0x1a4   :  { %8385 = vmatpush3.bf16.msra.mxu1 %v9326_v50  ;;  %6234 = vmatprep.mubr.bf16.mxu1 %v7298_v33  ;;  %v9376_v50 = vld [vmem:[#allocation5 + $0xa20] sm:$0xff]   ;;  %v9409_v33 = vld [vmem:[#allocation5 + $0xbd8] sm:$0xff]  }
 0x1a5   :  { %8386 = vmatprep.subr.bf16.mxu1 %v9329_v53 }
 0x1a6   :  { %8365 = vmatpush3.bf16.msra.mxu0 %v9328_v52  ;;  %v9377_v52 = vld [vmem:[#allocation5 + $0xae0] sm:$0xff]  }
 0x1a7   :  { %8366 = vmatprep.subr.bf16.mxu0 %v9331_v55 }
 0x1a8   :  { %8387 = vmatpush3.bf16.msra.mxu1 %v9330_v54  ;;  %v9378_v54 = vld [vmem:[#allocation5 + $0xaa0] sm:$0xff]  }
 0x1a9   :  { %8388 = vmatprep.subr.bf16.mxu1 %v9333_v57  ;;  %v9379_v57 = vld [vmem:[#allocation5 + $0xa68] sm:$0xff]  }
 0x1aa   :  { %8367 = vmatpush3.bf16.msra.mxu0 %v9332_v56 }
 0x1ab   :  { %8368 = vmatprep.subr.bf16.mxu0 %v9335_v59 }
 0x1ac   :  { %8389 = vmatpush3.bf16.msra.mxu1 %v9334_v58 }
 0x1ad   :  { %8390 = vmatprep.subr.bf16.mxu1 %v9337_v61 }
 0x1ae   :  { %8369 = vmatpush3.bf16.msra.mxu0 %v9336_v60  ;;  %v9380_v60 = vld [vmem:[#allocation5 + $0xa28] sm:$0xff]  }
 0x1af   :  { %8370 = vmatprep.subr.bf16.mxu0 %v9339_v63  ;;  %v9381_v63 = vld [vmem:[#allocation5 + $0xae8] sm:$0xff]  }
 0x1b0   :  { %8391 = vmatpush3.bf16.msra.mxu1 %v9338_v62 }
 0x1b1   :  { %8392 = vmatprep.subr.bf16.mxu1 %v9341_v3  ;;  %v9383_v3 = vld [vmem:[#allocation5 + $0xa70] sm:$0xff]  }
 0x1b2   :  { %8371 = vmatpush3.bf16.msra.mxu0 %v9340_v1  ;;  %v9382_v1 = vld [vmem:[#allocation5 + $0xaa8] sm:$0xff]  }
 0x1b3   :  { %8372 = vmatprep.subr.bf16.mxu0 %v9343_v9  ;;  %v9387_v9 = vld [vmem:[#allocation5 + $0xa78] sm:$0xff]  }
 0x1b4   :  { %v8070_v0 = vpop.f32.mrb[8].mxu0  ;;  %8393 = vmatpush3.bf16.msra.mxu1 %v9342_v6  ;;  %v9384_v6 = vld [vmem:[#allocation5 + $0xa30] sm:$0xff]  }
 0x1b5   :  { %v8071_v2 = vpop.f32.mrb[9].mxu0  ;;  %8394 = vmatprep.subr.bf16.mxu1 %v9345_v14 }
 0x1b6   :  { %v8072_v4 = vadd.f32 %v8071_v2, %v8070_v0  ;;  %v8073_v5 = vpop.f32.mrb[10].mxu0  ;;  %v8092_v7 = vpop.f32.mrb[8].mxu1  ;;  %8373 = vmatpush3.bf16.msra.mxu0 %v9344_v11  ;;  %v9389_v11 = vld [vmem:[#allocation5 + $0xaf8] sm:$0xff]  }
 0x1b7   :  { %v8074_v10 = vpop.f32.mrb[11].mxu0  ;;  %v8093_v12 = vpop.f32.mrb[9].mxu1  ;;  %8374 = vmatprep.subr.bf16.mxu0 %v9347_v19 }
 0x1b8   :  { %v5637_v8 = vadd.f32 %v8072_v4, %v10035_v32  ;;  %v8094_v13 = vadd.f32 %v8093_v12, %v8092_v7  ;;  %v8095_v15 = vpop.f32.mrb[10].mxu1  ;;  %8395 = vmatpush3.bf16.msra.mxu1 %v9346_v16  ;;  %v7297_v32 = vcombine.low %v134_v31, %v134_v31  ;;  %v9385_v7 = vld [vmem:[#allocation5 + $0xaf0] sm:$0xff]   ;;  %v9388_v10 = vld [vmem:[#allocation5 + $0xa38] sm:$0xff]   ;;  %v135_v12 = vld [vmem:[#allocation2 + $0xa0] sm:$0xff] }
 0x1b9   :  { %v8096_v17 = vpop.f32.mrb[11].mxu1  ;;  %8396 = vmatprep.subr.bf16.mxu1 %v9349_v21  ;;  %v7300_v14 = vcombine.high %v135_v12, %v135_v12  ;;  %v9392_v15 = vld [vmem:[#allocation5 + $0xab8] sm:$0xff]   ;;  %v9393_v16 = vld [vmem:[#allocation5 + $0xb40] sm:$0xff]  }
 0x1ba   :  { %v10038_v18 = vadd.f32 %v8094_v13, %v5637_v8  ;;  %8375 = vmatpush3.bf16.msra.mxu0 %v9348_v20  ;;  %v9386_v8 = vld [vmem:[#allocation5 + $0xab0] sm:$0xff]   ;;  %v7299_v13 = vcombine.low %v135_v12, %v135_v12  ;;  %v9396_v20 = vld [vmem:[#allocation5 + $0xb00] sm:$0xff]   ;;  %v9407_v31 = vld [vmem:[#allocation5 + $0xb58] sm:$0xff]  }
 0x1bb   :  { %8376 = vmatprep.subr.bf16.mxu0 %v9351_v23  ;;  %v136_v17 = vld [vmem:[#allocation2 + $0xa8] sm:$0xff]  ;;  %v9397_v21 = vld [vmem:[#allocation5 + $0xbc0] sm:$0xff]  }
 0x1bc   :  { %8397 = vmatpush3.bf16.msra.mxu1 %v9350_v22  ;;  %v7302_v19 = vcombine.high %v136_v17, %v136_v17  ;;  %v9398_v22 = vld [vmem:[#allocation5 + $0xb80] sm:$0xff]   ;;  %v9399_v23 = vld [vmem:[#allocation5 + $0xb48] sm:$0xff]  }
 0x1bd   :  { %8398 = vmatprep.subr.bf16.mxu1 %v9353_v25  ;;  %v9401_v25 = vld [vmem:[#allocation5 + $0xbc8] sm:$0xff]  }
 0x1be   :  { %8377 = vmatpush3.bf16.msra.mxu0 %v9352_v24  ;;  %v9400_v24 = vld [vmem:[#allocation5 + $0xb08] sm:$0xff]  }
 0x1bf   :  { %8406 = vmatprep.subr.bf16.mxu0 %v9357_v30  ;;  %v9406_v30 = vld [vmem:[#allocation5 + $0xb90] sm:$0xff]   ;;  %v9438_v12 = vld [vmem:[#allocation5 + $0xc88] sm:$0xff]  }
 0x1c0   :  { %8399 = vmatpush3.bf16.msra.mxu1 %v9356_v29  ;;  %v9405_v29 = vld [vmem:[#allocation5 + $0xbd0] sm:$0xff]  }
 0x1c1   :  { %6195 = vmatmul.mubr.bf16.vlgmr.msra.gmra.mrb[36].mxu0 %v7295_v27  ;;  %8428 = vmatprep.subr.bf16.mxu1 %v9361_v35  ;;  %v9403_v27 = vld [vmem:[#allocation5 + $0xb50] sm:$0xff]   ;;  %v9411_v35 = vld [vmem:[#allocation5 + $0xb60] sm:$0xff]  }
 0x1c2   :  { %8407 = vmatpush3.bf16.msra.mxu0 %v9360_v34  ;;  %6274 = vmatprep.mubr.bf16.mxu0 %v7300_v14  ;;  %v9410_v34 = vld [vmem:[#allocation5 + $0xb98] sm:$0xff]   ;;  %v9440_v14 = vld [vmem:[#allocation5 + $0xc10] sm:$0xff]  }
 0x1c3   :  { %6235 = vmatmul.mubr.bf16.vlgmr.msra.gmra.mrb[36].mxu1 %v7297_v32  ;;  %8408 = vmatprep.subr.bf16.mxu0 %v9363_v37  ;;  %v9408_v32 = vld [vmem:[#allocation5 + $0xb18] sm:$0xff]   ;;  %v9412_v37 = vld [vmem:[#allocation5 + $0xb20] sm:$0xff]  }
 0x1c4   :  { %8429 = vmatpush3.bf16.msra.mxu1 %v9362_v36  ;;  %6314 = vmatprep.mubr.bf16.mxu1 %v7302_v19  ;;  %v9445_v19 = vld [vmem:[#allocation5 + $0xcd8] sm:$0xff]  }
 0x1c5   :  { %8430 = vmatprep.subr.bf16.mxu1 %v9365_v39  ;;  %v9413_v39 = vld [vmem:[#allocation5 + $0xbe0] sm:$0xff]  }
 0x1c6   :  { %8409 = vmatpush3.bf16.msra.mxu0 %v9364_v38 }
 0x1c7   :  { %8410 = vmatprep.subr.bf16.mxu0 %v9367_v41 }
 0x1c8   :  { %8431 = vmatpush3.bf16.msra.mxu1 %v9366_v40 }
 0x1c9   :  { %8432 = vmatprep.subr.bf16.mxu1 %v9369_v43 }
 0x1ca   :  { %8411 = vmatpush3.bf16.msra.mxu0 %v9368_v42  ;;  %v9414_v42 = vld [vmem:[#allocation5 + $0xba0] sm:$0xff]  }
 0x1cb   :  { %8412 = vmatprep.subr.bf16.mxu0 %v9371_v45  ;;  %v9415_v45 = vld [vmem:[#allocation5 + $0xb68] sm:$0xff]  }
 0x1cc   :  { %8433 = vmatpush3.bf16.msra.mxu1 %v9370_v44 }
 0x1cd   :  { %8434 = vmatprep.subr.bf16.mxu1 %v9373_v47  ;;  %v9416_v47 = vld [vmem:[#allocation5 + $0xb28] sm:$0xff]  }
 0x1ce   :  { %8413 = vmatpush3.bf16.msra.mxu0 %v9372_v46 }
 0x1cf   :  { %8414 = vmatprep.subr.bf16.mxu0 %v9375_v49 }
 0x1d0   :  { %8435 = vmatpush3.bf16.msra.mxu1 %v9374_v48 }
 0x1d1   :  { %8436 = vmatprep.subr.bf16.mxu1 %v9377_v52  ;;  %v9418_v52 = vld [vmem:[#allocation5 + $0xba8] sm:$0xff]  }
 0x1d2   :  { %8415 = vmatpush3.bf16.msra.mxu0 %v9376_v50  ;;  %v9417_v50 = vld [vmem:[#allocation5 + $0xbe8] sm:$0xff]  }
 0x1d3   :  { %8416 = vmatprep.subr.bf16.mxu0 %v9379_v57  ;;  %v9421_v57 = vld [vmem:[#allocation5 + $0xbf0] sm:$0xff]  }
 0x1d4   :  { %v8114_v51 = vpop.f32.mrb[12].mxu0  ;;  %8437 = vmatpush3.bf16.msra.mxu1 %v9378_v54 }
 0x1d5   :  { %v8115_v53 = vpop.f32.mrb[13].mxu0  ;;  %8438 = vmatprep.subr.bf16.mxu1 %v9381_v63 }
 0x1d6   :  { %v8116_v55 = vadd.f32 %v8115_v53, %v8114_v51  ;;  %v8117_v56 = vpop.f32.mrb[14].mxu0  ;;  %v8136_v58 = vpop.f32.mrb[12].mxu1  ;;  %8417 = vmatpush3.bf16.msra.mxu0 %v9380_v60  ;;  %v9424_v60 = vld [vmem:[#allocation5 + $0xb38] sm:$0xff]  }
 0x1d7   :  { %v8118_v61 = vpop.f32.mrb[15].mxu0  ;;  %v8137_v62 = vpop.f32.mrb[13].mxu1  ;;  %8418 = vmatprep.subr.bf16.mxu0 %v9383_v3  ;;  %v9420_v56 = vld [vmem:[#allocation5 + $0xb30] sm:$0xff]   ;;  %v138_v3 = vld [vmem:[#allocation2 + $0xb8] sm:$0xff] }
 0x1d8   :  { %v5717_v59 = vadd.f32 %v8116_v55, %v10038_v18  ;;  %v8138_v0 = vadd.f32 %v8137_v62, %v8136_v58  ;;  %v8139_v2 = vpop.f32.mrb[14].mxu1  ;;  %8439 = vmatpush3.bf16.msra.mxu1 %v9382_v1  ;;  %v7301_v18 = vcombine.low %v136_v17, %v136_v17  ;;  %v9419_v55 = vld [vmem:[#allocation5 + $0xb70] sm:$0xff]   ;;  %v9425_v61 = vld [vmem:[#allocation5 + $0xbf8] sm:$0xff]  }
 0x1d9   :  { %v8140_v4 = vpop.f32.mrb[15].mxu1  ;;  %8440 = vmatprep.subr.bf16.mxu1 %v9385_v7  ;;  %v9422_v58 = vld [vmem:[#allocation5 + $0xbb0] sm:$0xff]   ;;  %v9428_v1 = vld [vmem:[#allocation5 + $0xbb8] sm:$0xff]   ;;  %v9429_v2 = vld [vmem:[#allocation5 + $0xc40] sm:$0xff]  }
 0x1da   :  { %v10041_v5 = vadd.f32 %v8138_v0, %v5717_v59  ;;  %8419 = vmatpush3.bf16.msra.mxu0 %v9384_v6  ;;  %v9423_v59 = vld [vmem:[#allocation5 + $0xb78] sm:$0xff]   ;;  %v7305_v4 = vcombine.low %v138_v3, %v138_v3  ;;  %v9432_v6 = vld [vmem:[#allocation5 + $0xc00] sm:$0xff]  }
 0x1db   :  { %8420 = vmatprep.subr.bf16.mxu0 %v9387_v9  ;;  %v137_v62 = vld [vmem:[#allocation2 + $0xb0] sm:$0xff]  ;;  %v9433_v7 = vld [vmem:[#allocation5 + $0xcc0] sm:$0xff]   ;;  %v9435_v9 = vld [vmem:[#allocation5 + $0xc48] sm:$0xff]  }
 0x1dc   :  { %8441 = vmatpush3.bf16.msra.mxu1 %v9386_v8  ;;  %v7303_v63 = vcombine.low %v137_v62, %v137_v62  ;;  %v7304_v0 = vcombine.high %v137_v62, %v137_v62  ;;  %v9434_v8 = vld [vmem:[#allocation5 + $0xc80] sm:$0xff]   ;;  %v9443_v17 = vld [vmem:[#allocation5 + $0xc58] sm:$0xff]   ;;  %v9474_v62 = vld [vmem:[#allocation5 + $0xd88] sm:$0xff]  }
 0x1dd   :  { %8442 = vmatprep.subr.bf16.mxu1 %v9389_v11  ;;  %v9437_v11 = vld [vmem:[#allocation5 + $0xcc8] sm:$0xff]  }
 0x1de   :  { %8421 = vmatpush3.bf16.msra.mxu0 %v9388_v10  ;;  %v9436_v10 = vld [vmem:[#allocation5 + $0xc08] sm:$0xff]  }
 0x1df   :  { %8450 = vmatprep.subr.bf16.mxu0 %v9393_v16  ;;  %v9442_v16 = vld [vmem:[#allocation5 + $0xc90] sm:$0xff]  }
 0x1e0   :  { %8443 = vmatpush3.bf16.msra.mxu1 %v9392_v15  ;;  %v9441_v15 = vld [vmem:[#allocation5 + $0xcd0] sm:$0xff]  }
 0x1e1   :  { %6275 = vmatmul.mubr.bf16.vlgmr.msra.gmra.mrb[40].mxu0 %v7299_v13  ;;  %8472 = vmatprep.subr.bf16.mxu1 %v9397_v21  ;;  %v9439_v13 = vld [vmem:[#allocation5 + $0xc50] sm:$0xff]   ;;  %v9447_v21 = vld [vmem:[#allocation5 + $0xc60] sm:$0xff]  }
 0x1e2   :  { %8451 = vmatpush3.bf16.msra.mxu0 %v9396_v20  ;;  %6354 = vmatprep.mubr.bf16.mxu0 %v7304_v0  ;;  %v9446_v20 = vld [vmem:[#allocation5 + $0xc98] sm:$0xff]   ;;  %v9476_v0 = vld [vmem:[#allocation5 + $0xd10] sm:$0xff]  }
 0x1e3   :  { %6315 = vmatmul.mubr.bf16.vlgmr.msra.gmra.mrb[40].mxu1 %v7301_v18  ;;  %8452 = vmatprep.subr.bf16.mxu0 %v9399_v23  ;;  %v9444_v18 = vld [vmem:[#allocation5 + $0xc18] sm:$0xff]   ;;  %v9448_v23 = vld [vmem:[#allocation5 + $0xc20] sm:$0xff]  }
 0x1e4   :  { %8473 = vmatpush3.bf16.msra.mxu1 %v9398_v22 }
 0x1e5   :  { %8474 = vmatprep.subr.bf16.mxu1 %v9401_v25  ;;  %v9449_v25 = vld [vmem:[#allocation5 + $0xce0] sm:$0xff]  }
 0x1e6   :  { %8453 = vmatpush3.bf16.msra.mxu0 %v9400_v24 }
 0x1e7   :  { %8454 = vmatprep.subr.bf16.mxu0 %v9403_v27 }
 0x1e8   :  { %8475 = vmatpush3.bf16.msra.mxu1 %v9402_v26 }
 0x1e9   :  { %8476 = vmatprep.subr.bf16.mxu1 %v9405_v29 }
 0x1ea   :  { %8455 = vmatpush3.bf16.msra.mxu0 %v9404_v28  ;;  %v9450_v28 = vld [vmem:[#allocation5 + $0xca0] sm:$0xff]  }
 0x1eb   :  { %8456 = vmatprep.subr.bf16.mxu0 %v9407_v31  ;;  %v9451_v31 = vld [vmem:[#allocation5 + $0xc68] sm:$0xff]  }
 0x1ec   :  { %8477 = vmatpush3.bf16.msra.mxu1 %v9406_v30 }
 0x1ed   :  { %8478 = vmatprep.subr.bf16.mxu1 %v9409_v33  ;;  %v9452_v33 = vld [vmem:[#allocation5 + $0xc28] sm:$0xff]  }
 0x1ee   :  { %8457 = vmatpush3.bf16.msra.mxu0 %v9408_v32 }
 0x1ef   :  { %8458 = vmatprep.subr.bf16.mxu0 %v9411_v35 }
 0x1f0   :  { %8479 = vmatpush3.bf16.msra.mxu1 %v9410_v34 }
 0x1f1   :  { %8480 = vmatprep.subr.bf16.mxu1 %v9413_v39 }
 0x1f2   :  { %8459 = vmatpush3.bf16.msra.mxu0 %v9412_v37 }
 0x1f3   :  { %8460 = vmatprep.subr.bf16.mxu0 %v9415_v45  ;;  %v9459_v45 = vld [vmem:[#allocation5 + $0xc78] sm:$0xff]  }
 0x1f4   :  { %v8158_v36 = vpop.f32.mrb[16].mxu0  ;;  %8481 = vmatpush3.bf16.msra.mxu1 %v9414_v42  ;;  %v9456_v42 = vld [vmem:[#allocation5 + $0xc30] sm:$0xff]  }
 0x1f5   :  { %v8159_v38 = vpop.f32.mrb[17].mxu0  ;;  %8482 = vmatprep.subr.bf16.mxu1 %v9417_v50 }
 0x1f6   :  { %v8160_v40 = vadd.f32 %v8159_v38, %v8158_v36  ;;  %v8161_v41 = vpop.f32.mrb[18].mxu0  ;;  %v8180_v43 = vpop.f32.mrb[16].mxu1  ;;  %8461 = vmatpush3.bf16.msra.mxu0 %v9416_v47  ;;  %v9453_v36 = vld [vmem:[#allocation5 + $0xce8] sm:$0xff]   ;;  %v9461_v47 = vld [vmem:[#allocation5 + $0xcf8] sm:$0xff]  }
 0x1f7   :  { %v8162_v46 = vpop.f32.mrb[19].mxu0  ;;  %v8181_v48 = vpop.f32.mrb[17].mxu1  ;;  %8462 = vmatprep.subr.bf16.mxu0 %v9419_v55  ;;  %v9454_v38 = vld [vmem:[#allocation5 + $0xca8] sm:$0xff]   ;;  %v9455_v41 = vld [vmem:[#allocation5 + $0xc70] sm:$0xff]  }
 0x1f8   :  { %v5797_v44 = vadd.f32 %v8160_v40, %v10041_v5  ;;  %v8182_v49 = vadd.f32 %v8181_v48, %v8180_v43  ;;  %v8183_v51 = vpop.f32.mrb[18].mxu1  ;;  %8483 = vmatpush3.bf16.msra.mxu1 %v9418_v52  ;;  %v7306_v5 = vcombine.high %v138_v3, %v138_v3  ;;  %v9457_v43 = vld [vmem:[#allocation5 + $0xcf0] sm:$0xff]   ;;  %v9460_v46 = vld [vmem:[#allocation5 + $0xc38] sm:$0xff]   ;;  %v139_v48 = vld [vmem:[#allocation2 + $0xc0] sm:$0xff] }
 0x1f9   :  { %v8184_v53 = vpop.f32.mrb[19].mxu1  ;;  %8484 = vmatprep.subr.bf16.mxu1 %v9421_v57  ;;  %v7308_v50 = vcombine.high %v139_v48, %v139_v48  ;;  %v9464_v51 = vld [vmem:[#allocation5 + $0xcb8] sm:$0xff]   ;;  %v9465_v52 = vld [vmem:[#allocation5 + $0xd40] sm:$0xff]  }
 0x1fa   :  { %v10044_v54 = vadd.f32 %v8182_v49, %v5797_v44  ;;  %8463 = vmatpush3.bf16.msra.mxu0 %v9420_v56  ;;  %6394 = vmatprep.mubr.bf16.mxu1 %v7306_v5  ;;  %v9458_v44 = vld [vmem:[#allocation5 + $0xcb0] sm:$0xff]   ;;  %v7307_v49 = vcombine.low %v139_v48, %v139_v48  ;;  %v9468_v56 = vld [vmem:[#allocation5 + $0xd00] sm:$0xff]   ;;  %v9479_v3 = vld [vmem:[#allocation5 + $0xd58] sm:$0xff]  }
 0x1fb   :  { %8464 = vmatprep.subr.bf16.mxu0 %v9423_v59  ;;  %v140_v53 = vld [vmem:[#allocation2 + $0xc8] sm:$0xff]  ;;  %v9469_v57 = vld [vmem:[#allocation5 + $0xdc0] sm:$0xff]   ;;  %v9481_v5 = vld [vmem:[#allocation5 + $0xdd8] sm:$0xff]  }
 0x1fc   :  { %8485 = vmatpush3.bf16.msra.mxu1 %v9422_v58  ;;  %v7310_v55 = vcombine.high %v140_v53, %v140_v53  ;;  %v9470_v58 = vld [vmem:[#allocation5 + $0xd80] sm:$0xff]   ;;  %v9471_v59 = vld [vmem:[#allocation5 + $0xd48] sm:$0xff]  }
 0x1fd   :  { %8486 = vmatprep.subr.bf16.mxu1 %v9425_v61  ;;  %v9473_v61 = vld [vmem:[#allocation5 + $0xdc8] sm:$0xff]  }
 0x1fe   :  { %8465 = vmatpush3.bf16.msra.mxu0 %v9424_v60  ;;  %v9472_v60 = vld [vmem:[#allocation5 + $0xd08] sm:$0xff]  }
 0x1ff   :  { %8494 = vmatprep.subr.bf16.mxu0 %v9429_v2  ;;  %v9478_v2 = vld [vmem:[#allocation5 + $0xd90] sm:$0xff]   ;;  %v9510_v48 = vld [vmem:[#allocation5 + $0xe88] sm:$0xff]  }
 0x200   :  { %8487 = vmatpush3.bf16.msra.mxu1 %v9428_v1  ;;  %v9477_v1 = vld [vmem:[#allocation5 + $0xdd0] sm:$0xff]  }
 0x201   :  { %6355 = vmatmul.mubr.bf16.vlgmr.msra.gmra.mrb[44].mxu0 %v7303_v63  ;;  %8516 = vmatprep.subr.bf16.mxu1 %v9433_v7  ;;  %v9475_v63 = vld [vmem:[#allocation5 + $0xd50] sm:$0xff]   ;;  %v9483_v7 = vld [vmem:[#allocation5 + $0xd60] sm:$0xff]  }
 0x202   :  { %8495 = vmatpush3.bf16.msra.mxu0 %v9432_v6  ;;  %6434 = vmatprep.mubr.bf16.mxu0 %v7308_v50  ;;  %v9482_v6 = vld [vmem:[#allocation5 + $0xd98] sm:$0xff]   ;;  %v9512_v50 = vld [vmem:[#allocation5 + $0xe10] sm:$0xff]  }
 0x203   :  { %6395 = vmatmul.mubr.bf16.vlgmr.msra.gmra.mrb[44].mxu1 %v7305_v4  ;;  %8496 = vmatprep.subr.bf16.mxu0 %v9435_v9  ;;  %v9480_v4 = vld [vmem:[#allocation5 + $0xd18] sm:$0xff]  }
 0x204   :  { %8517 = vmatpush3.bf16.msra.mxu1 %v9434_v8  ;;  %6474 = vmatprep.mubr.bf16.mxu1 %v7310_v55  ;;  %v9484_v8 = vld [vmem:[#allocation5 + $0xd20] sm:$0xff]   ;;  %v9517_v55 = vld [vmem:[#allocation5 + $0xed8] sm:$0xff]  }
 0x205   :  { %8518 = vmatprep.subr.bf16.mxu1 %v9437_v11 }
 0x206   :  { %8497 = vmatpush3.bf16.msra.mxu0 %v9436_v10  ;;  %v9485_v10 = vld [vmem:[#allocation5 + $0xde0] sm:$0xff]  }
 0x207   :  { %8498 = vmatprep.subr.bf16.mxu0 %v9439_v13 }
 0x208   :  { %8519 = vmatpush3.bf16.msra.mxu1 %v9438_v12  ;;  %v9486_v12 = vld [vmem:[#allocation5 + $0xda0] sm:$0xff]  }
 0x209   :  { %8520 = vmatprep.subr.bf16.mxu1 %v9441_v15  ;;  %v9487_v15 = vld [vmem:[#allocation5 + $0xd68] sm:$0xff]  }
 0x20a   :  { %8499 = vmatpush3.bf16.msra.mxu0 %v9440_v14 }
 0x20b   :  { %8500 = vmatprep.subr.bf16.mxu0 %v9443_v17 }
 0x20c   :  { %8521 = vmatpush3.bf16.msra.mxu1 %v9442_v16 }
 0x20d   :  { %8522 = vmatprep.subr.bf16.mxu1 %v9445_v19 }
 0x20e   :  { %8501 = vmatpush3.bf16.msra.mxu0 %v9444_v18  ;;  %v9488_v18 = vld [vmem:[#allocation5 + $0xd28] sm:$0xff]  }
 0x20f   :  { %8502 = vmatprep.subr.bf16.mxu0 %v9447_v21  ;;  %v9489_v21 = vld [vmem:[#allocation5 + $0xde8] sm:$0xff]  }
 0x210   :  { %8523 = vmatpush3.bf16.msra.mxu1 %v9446_v20 }
 0x211   :  { %8524 = vmatprep.subr.bf16.mxu1 %v9449_v25  ;;  %v9491_v25 = vld [vmem:[#allocation5 + $0xd70] sm:$0xff]  }
 0x212   :  { %8503 = vmatpush3.bf16.msra.mxu0 %v9448_v23  ;;  %v9490_v23 = vld [vmem:[#allocation5 + $0xda8] sm:$0xff]  }
 0x213   :  { %8504 = vmatprep.subr.bf16.mxu0 %v9451_v31  ;;  %v9495_v31 = vld [vmem:[#allocation5 + $0xd78] sm:$0xff]  }
 0x214   :  { %v8202_v22 = vpop.f32.mrb[20].mxu0  ;;  %8525 = vmatpush3.bf16.msra.mxu1 %v9450_v28  ;;  %v9492_v28 = vld [vmem:[#allocation5 + $0xd30] sm:$0xff]  }
 0x215   :  { %v8203_v24 = vpop.f32.mrb[21].mxu0  ;;  %8526 = vmatprep.subr.bf16.mxu1 %v9453_v36 }
 0x216   :  { %v8204_v26 = vadd.f32 %v8203_v24, %v8202_v22  ;;  %v8205_v27 = vpop.f32.mrb[22].mxu0  ;;  %v8224_v29 = vpop.f32.mrb[20].mxu1  ;;  %8505 = vmatpush3.bf16.msra.mxu0 %v9452_v33  ;;  %v9497_v33 = vld [vmem:[#allocation5 + $0xdf8] sm:$0xff]  }
 0x217   :  { %v8206_v32 = vpop.f32.mrb[23].mxu0  ;;  %v8225_v34 = vpop.f32.mrb[21].mxu1  ;;  %8506 = vmatprep.subr.bf16.mxu0 %v9455_v41 }
 0x218   :  { %v5877_v30 = vadd.f32 %v8204_v26, %v10044_v54  ;;  %v8226_v35 = vadd.f32 %v8225_v34, %v8224_v29  ;;  %v8227_v37 = vpop.f32.mrb[22].mxu1  ;;  %8527 = vmatpush3.bf16.msra.mxu1 %v9454_v38  ;;  %v7309_v54 = vcombine.low %v140_v53, %v140_v53  ;;  %v9493_v29 = vld [vmem:[#allocation5 + $0xdf0] sm:$0xff]   ;;  %v9496_v32 = vld [vmem:[#allocation5 + $0xd38] sm:$0xff]   ;;  %v9501_v38 = vld [vmem:[#allocation5 + $0xe40] sm:$0xff]  }
 0x219   :  { %v8228_v39 = vpop.f32.mrb[23].mxu1  ;;  %8528 = vmatprep.subr.bf16.mxu1 %v9457_v43  ;;  %v141_v34 = vld [vmem:[#allocation2 + $0xd0] sm:$0xff]  ;;  %v9505_v43 = vld [vmem:[#allocation5 + $0xec0] sm:$0xff]  }
 0x21a   :  { %v10047_v40 = vadd.f32 %v8226_v35, %v5877_v30  ;;  %8507 = vmatpush3.bf16.msra.mxu0 %v9456_v42  ;;  %v9494_v30 = vld [vmem:[#allocation5 + $0xdb0] sm:$0xff]   ;;  %v7311_v35 = vcombine.low %v141_v34, %v141_v34  ;;  %v7312_v36 = vcombine.high %v141_v34, %v141_v34  ;;  %v9500_v37 = vld [vmem:[#allocation5 + $0xdb8] sm:$0xff]   ;;  %v9504_v42 = vld [vmem:[#allocation5 + $0xe00] sm:$0xff]  }
 0x21b   :  { %8508 = vmatprep.subr.bf16.mxu0 %v9459_v45  ;;  %v142_v39 = vld [vmem:[#allocation2 + $0xd8] sm:$0xff]  ;;  %v9507_v45 = vld [vmem:[#allocation5 + $0xe48] sm:$0xff]  }
 0x21c   :  { %8529 = vmatpush3.bf16.msra.mxu1 %v9458_v44  ;;  %v7314_v41 = vcombine.high %v142_v39, %v142_v39  ;;  %v9506_v44 = vld [vmem:[#allocation5 + $0xe80] sm:$0xff]   ;;  %v9515_v53 = vld [vmem:[#allocation5 + $0xe58] sm:$0xff]   ;;  %v9546_v34 = vld [vmem:[#allocation5 + $0xf88] sm:$0xff]  }
 0x21d   :  { %8530 = vmatprep.subr.bf16.mxu1 %v9461_v47  ;;  %v9509_v47 = vld [vmem:[#allocation5 + $0xec8] sm:$0xff]  }
 0x21e   :  { %8509 = vmatpush3.bf16.msra.mxu0 %v9460_v46  ;;  %v9508_v46 = vld [vmem:[#allocation5 + $0xe08] sm:$0xff]  }
 0x21f   :  { %8538 = vmatprep.subr.bf16.mxu0 %v9465_v52  ;;  %v9514_v52 = vld [vmem:[#allocation5 + $0xe90] sm:$0xff]  }
 0x220   :  { %8531 = vmatpush3.bf16.msra.mxu1 %v9464_v51  ;;  %v9513_v51 = vld [vmem:[#allocation5 + $0xed0] sm:$0xff]  }
 0x221   :  { %6435 = vmatmul.mubr.bf16.vlgmr.msra.gmra.mrb[48].mxu0 %v7307_v49  ;;  %8560 = vmatprep.subr.bf16.mxu1 %v9469_v57  ;;  %v9511_v49 = vld [vmem:[#allocation5 + $0xe50] sm:$0xff]   ;;  %v9519_v57 = vld [vmem:[#allocation5 + $0xe60] sm:$0xff]  }
 0x222   :  { %8539 = vmatpush3.bf16.msra.mxu0 %v9468_v56  ;;  %6514 = vmatprep.mubr.bf16.mxu0 %v7312_v36  ;;  %v9518_v56 = vld [vmem:[#allocation5 + $0xe98] sm:$0xff]   ;;  %v9548_v36 = vld [vmem:[#allocation5 + $0xf10] sm:$0xff]  }
 0x223   :  { %6475 = vmatmul.mubr.bf16.vlgmr.msra.gmra.mrb[48].mxu1 %v7309_v54  ;;  %8540 = vmatprep.subr.bf16.mxu0 %v9471_v59  ;;  %v9516_v54 = vld [vmem:[#allocation5 + $0xe18] sm:$0xff]  }
 0x224   :  { %8561 = vmatpush3.bf16.msra.mxu1 %v9470_v58  ;;  %6554 = vmatprep.mubr.bf16.mxu1 %v7314_v41  ;;  %v9520_v58 = vld [vmem:[#allocation5 + $0xe20] sm:$0xff]   ;;  %v9553_v41 = vld [vmem:[#allocation5 + $0xfd8] sm:$0xff]  }
 0x225   :  { %8562 = vmatprep.subr.bf16.mxu1 %v9473_v61 }
 0x226   :  { %8541 = vmatpush3.bf16.msra.mxu0 %v9472_v60  ;;  %v9521_v60 = vld [vmem:[#allocation5 + $0xee0] sm:$0xff]  }
 0x227   :  { %8542 = vmatprep.subr.bf16.mxu0 %v9475_v63 }
 0x228   :  { %8563 = vmatpush3.bf16.msra.mxu1 %v9474_v62  ;;  %v9522_v62 = vld [vmem:[#allocation5 + $0xea0] sm:$0xff]  }
 0x229   :  { %8564 = vmatprep.subr.bf16.mxu1 %v9477_v1  ;;  %v9523_v1 = vld [vmem:[#allocation5 + $0xe68] sm:$0xff]  }
 0x22a   :  { %8543 = vmatpush3.bf16.msra.mxu0 %v9476_v0 }
 0x22b   :  { %8544 = vmatprep.subr.bf16.mxu0 %v9479_v3 }
 0x22c   :  { %8565 = vmatpush3.bf16.msra.mxu1 %v9478_v2 }
 0x22d   :  { %8566 = vmatprep.subr.bf16.mxu1 %v9481_v5 }
 0x22e   :  { %8545 = vmatpush3.bf16.msra.mxu0 %v9480_v4  ;;  %v9524_v4 = vld [vmem:[#allocation5 + $0xe28] sm:$0xff]  }
 0x22f   :  { %8546 = vmatprep.subr.bf16.mxu0 %v9483_v7  ;;  %v9525_v7 = vld [vmem:[#allocation5 + $0xee8] sm:$0xff]  }
 0x230   :  { %8567 = vmatpush3.bf16.msra.mxu1 %v9482_v6 }
 0x231   :  { %8568 = vmatprep.subr.bf16.mxu1 %v9485_v10 }
 0x232   :  { %8547 = vmatpush3.bf16.msra.mxu0 %v9484_v8 }
 0x233   :  { %8548 = vmatprep.subr.bf16.mxu0 %v9487_v15  ;;  %v9529_v15 = vld [vmem:[#allocation5 + $0xef0] sm:$0xff]  }
 0x234   :  { %v8246_v9 = vpop.f32.mrb[24].mxu0  ;;  %8569 = vmatpush3.bf16.msra.mxu1 %v9486_v12  ;;  %v9527_v12 = vld [vmem:[#allocation5 + $0xe70] sm:$0xff]  }
 0x235   :  { %v8247_v11 = vpop.f32.mrb[25].mxu0  ;;  %8570 = vmatprep.subr.bf16.mxu1 %v9489_v21 }
 0x236   :  { %v8248_v13 = vadd.f32 %v8247_v11, %v8246_v9  ;;  %v8249_v14 = vpop.f32.mrb[26].mxu0  ;;  %v8268_v16 = vpop.f32.mrb[24].mxu1  ;;  %8549 = vmatpush3.bf16.msra.mxu0 %v9488_v18  ;;  %v9526_v9 = vld [vmem:[#allocation5 + $0xea8] sm:$0xff]   ;;  %v9532_v18 = vld [vmem:[#allocation5 + $0xe38] sm:$0xff]  }
 0x237   :  { %v8250_v19 = vpop.f32.mrb[27].mxu0  ;;  %v8269_v20 = vpop.f32.mrb[25].mxu1  ;;  %8550 = vmatprep.subr.bf16.mxu0 %v9491_v25  ;;  %v9528_v14 = vld [vmem:[#allocation5 + $0xe30] sm:$0xff]  }
 0x238   :  { %v5957_v17 = vadd.f32 %v8248_v13, %v10047_v40  ;;  %v8270_v22 = vadd.f32 %v8269_v20, %v8268_v16  ;;  %v8271_v24 = vpop.f32.mrb[26].mxu1  ;;  %8571 = vmatpush3.bf16.msra.mxu1 %v9490_v23  ;;  %v7313_v40 = vcombine.low %v142_v39, %v142_v39  ;;  %v9530_v16 = vld [vmem:[#allocation5 + $0xeb0] sm:$0xff]   ;;  %v9533_v19 = vld [vmem:[#allocation5 + $0xef8] sm:$0xff]   ;;  %v143_v20 = vld [vmem:[#allocation2 + $0xe0] sm:$0xff] }
 0x239   :  { %v8272_v26 = vpop.f32.mrb[27].mxu1  ;;  %8572 = vmatprep.subr.bf16.mxu1 %v9493_v29  ;;  %v7315_v21 = vcombine.low %v143_v20, %v143_v20  ;;  %v9536_v23 = vld [vmem:[#allocation5 + $0xeb8] sm:$0xff]   ;;  %v9537_v24 = vld [vmem:[#allocation5 + $0xf40] sm:$0xff]   ;;  %v144_v25 = vld [vmem:[#allocation2 + $0xe8] sm:$0xff] }
 0x23a   :  { %v10050_v27 = vadd.f32 %v8270_v22, %v5957_v17  ;;  %8551 = vmatpush3.bf16.msra.mxu0 %v9492_v28  ;;  %v9531_v17 = vld [vmem:[#allocation5 + $0xe78] sm:$0xff]   ;;  %v7316_v22 = vcombine.high %v143_v20, %v143_v20  ;;  %v7317_v26 = vcombine.low %v144_v25, %v144_v25  ;;  %v9540_v28 = vld [vmem:[#allocation5 + $0xf00] sm:$0xff]   ;;  %v9582_v20 = vld [vmem:[#allocation5 + $0x1088] sm:$0xff]  }
 0x23b   :  { %8552 = vmatprep.subr.bf16.mxu0 %v9495_v31  ;;  %v9541_v29 = vld [vmem:[#allocation5 + $0xfc0] sm:$0xff]   ;;  %v9543_v31 = vld [vmem:[#allocation5 + $0xf48] sm:$0xff]   ;;  %v9551_v39 = vld [vmem:[#allocation5 + $0xf58] sm:$0xff]  }
 0x23c   :  { %8573 = vmatpush3.bf16.msra.mxu1 %v9494_v30  ;;  %v9542_v30 = vld [vmem:[#allocation5 + $0xf80] sm:$0xff]  }
 0x23d   :  { %8574 = vmatprep.subr.bf16.mxu1 %v9497_v33  ;;  %v9545_v33 = vld [vmem:[#allocation5 + $0xfc8] sm:$0xff]  }
 0x23e   :  { %8553 = vmatpush3.bf16.msra.mxu0 %v9496_v32  ;;  %v9544_v32 = vld [vmem:[#allocation5 + $0xf08] sm:$0xff]  }
 0x23f   :  { %8582 = vmatprep.subr.bf16.mxu0 %v9501_v38  ;;  %v9550_v38 = vld [vmem:[#allocation5 + $0xf90] sm:$0xff]  }
 0x240   :  { %8575 = vmatpush3.bf16.msra.mxu1 %v9500_v37  ;;  %v9549_v37 = vld [vmem:[#allocation5 + $0xfd0] sm:$0xff]  }
 0x241   :  { %6515 = vmatmul.mubr.bf16.vlgmr.msra.gmra.mrb[52].mxu0 %v7311_v35  ;;  %8604 = vmatprep.subr.bf16.mxu1 %v9505_v43  ;;  %v9547_v35 = vld [vmem:[#allocation5 + $0xf50] sm:$0xff]   ;;  %v9555_v43 = vld [vmem:[#allocation5 + $0xf60] sm:$0xff]  }
 0x242   :  { %8583 = vmatpush3.bf16.msra.mxu0 %v9504_v42  ;;  %6594 = vmatprep.mubr.bf16.mxu0 %v7316_v22  ;;  %v9554_v42 = vld [vmem:[#allocation5 + $0xf98] sm:$0xff]   ;;  %v9584_v22 = vld [vmem:[#allocation5 + $0x1010] sm:$0xff]  }
 0x243   :  { %6555 = vmatmul.mubr.bf16.vlgmr.msra.gmra.mrb[52].mxu1 %v7313_v40  ;;  %8584 = vmatprep.subr.bf16.mxu0 %v9507_v45  ;;  %v9552_v40 = vld [vmem:[#allocation5 + $0xf18] sm:$0xff]   ;;  %v9556_v45 = vld [vmem:[#allocation5 + $0xf20] sm:$0xff]  }
 0x244   :  { %8605 = vmatpush3.bf16.msra.mxu1 %v9506_v44 }
 0x245   :  { %8606 = vmatprep.subr.bf16.mxu1 %v9509_v47  ;;  %v9557_v47 = vld [vmem:[#allocation5 + $0xfe0] sm:$0xff]  }
 0x246   :  { %8585 = vmatpush3.bf16.msra.mxu0 %v9508_v46 }
 0x247   :  { %8586 = vmatprep.subr.bf16.mxu0 %v9511_v49 }
 0x248   :  { %8607 = vmatpush3.bf16.msra.mxu1 %v9510_v48 }
 0x249   :  { %8608 = vmatprep.subr.bf16.mxu1 %v9513_v51 }
 0x24a   :  { %8587 = vmatpush3.bf16.msra.mxu0 %v9512_v50  ;;  %v9558_v50 = vld [vmem:[#allocation5 + $0xfa0] sm:$0xff]  }
 0x24b   :  { %8588 = vmatprep.subr.bf16.mxu0 %v9515_v53  ;;  %v9559_v53 = vld [vmem:[#allocation5 + $0xf68] sm:$0xff]  }
 0x24c   :  { %8609 = vmatpush3.bf16.msra.mxu1 %v9514_v52 }
 0x24d   :  { %8610 = vmatprep.subr.bf16.mxu1 %v9517_v55  ;;  %v9560_v55 = vld [vmem:[#allocation5 + $0xf28] sm:$0xff]  }
 0x24e   :  { %8589 = vmatpush3.bf16.msra.mxu0 %v9516_v54 }
 0x24f   :  { %8590 = vmatprep.subr.bf16.mxu0 %v9519_v57 }
 0x250   :  { %8611 = vmatpush3.bf16.msra.mxu1 %v9518_v56 }
 0x251   :  { %8612 = vmatprep.subr.bf16.mxu1 %v9521_v60  ;;  %v9562_v60 = vld [vmem:[#allocation5 + $0xfa8] sm:$0xff]  }
 0x252   :  { %8591 = vmatpush3.bf16.msra.mxu0 %v9520_v58  ;;  %v9561_v58 = vld [vmem:[#allocation5 + $0xfe8] sm:$0xff]  }
 0x253   :  { %8592 = vmatprep.subr.bf16.mxu0 %v9523_v1  ;;  %v9565_v1 = vld [vmem:[#allocation5 + $0xff0] sm:$0xff]  }
 0x254   :  { %v8290_v59 = vpop.f32.mrb[28].mxu0  ;;  %8613 = vmatpush3.bf16.msra.mxu1 %v9522_v62 }
 0x255   :  { %v8291_v61 = vpop.f32.mrb[29].mxu0  ;;  %8614 = vmatprep.subr.bf16.mxu1 %v9525_v7 }
 0x256   :  { %v8292_v63 = vadd.f32 %v8291_v61, %v8290_v59  ;;  %v8293_v0 = vpop.f32.mrb[30].mxu0  ;;  %v8312_v2 = vpop.f32.mrb[28].mxu1  ;;  %8593 = vmatpush3.bf16.msra.mxu0 %v9524_v4  ;;  %v9568_v4 = vld [vmem:[#allocation5 + $0xf38] sm:$0xff]  }
 0x257   :  { %v8294_v5 = vpop.f32.mrb[31].mxu0  ;;  %v8313_v6 = vpop.f32.mrb[29].mxu1  ;;  %8594 = vmatprep.subr.bf16.mxu0 %v9527_v12  ;;  %v9564_v0 = vld [vmem:[#allocation5 + $0xf30] sm:$0xff]  }
 0x258   :  { %v6037_v3 = vadd.f32 %v8292_v63, %v10050_v27  ;;  %v8314_v8 = vadd.f32 %v8313_v6, %v8312_v2  ;;  %v8315_v10 = vpop.f32.mrb[30].mxu1  ;;  %8615 = vmatpush3.bf16.msra.mxu1 %v9526_v9  ;;  %v7318_v27 = vcombine.high %v144_v25, %v144_v25  ;;  %v9563_v63 = vld [vmem:[#allocation5 + $0xf70] sm:$0xff]   ;;  %v9569_v5 = vld [vmem:[#allocation5 + $0xff8] sm:$0xff]  }
 0x259   :  { %v8316_v13 = vpop.f32.mrb[31].mxu1  ;;  %8616 = vmatprep.subr.bf16.mxu1 %v9529_v15  ;;  %v9566_v2 = vld [vmem:[#allocation5 + $0xfb0] sm:$0xff]   ;;  %v9572_v9 = vld [vmem:[#allocation5 + $0xfb8] sm:$0xff]   ;;  %v9573_v10 = vld [vmem:[#allocation5 + $0x1040] sm:$0xff]  }
 0x25a   :  { %v10053_v11 = vadd.f32 %v8314_v8, %v6037_v3  ;;  %8595 = vmatpush3.bf16.msra.mxu0 %v9528_v14  ;;  %6634 = vmatprep.mubr.bf16.mxu1 %v7318_v27  ;;  %v9567_v3 = vld [vmem:[#allocation5 + $0xf78] sm:$0xff]   ;;  %v9576_v14 = vld [vmem:[#allocation5 + $0x1000] sm:$0xff]  }
 0x25b   :  { %8596 = vmatprep.subr.bf16.mxu0 %v9531_v17  ;;  %v145_v6 = vld [vmem:[#allocation2 + $0xf0] sm:$0xff]  ;;  %v9577_v15 = vld [vmem:[#allocation5 + $0x10c0] sm:$0xff]   ;;  %v9579_v17 = vld [vmem:[#allocation5 + $0x1048] sm:$0xff]  }
 0x25c   :  { %8617 = vmatpush3.bf16.msra.mxu1 %v9530_v16  ;;  %v7319_v7 = vcombine.low %v145_v6, %v145_v6  ;;  %v7320_v8 = vcombine.high %v145_v6, %v145_v6  ;;  %v9578_v16 = vld [vmem:[#allocation5 + $0x1080] sm:$0xff]   ;;  %v9587_v25 = vld [vmem:[#allocation5 + $0x1058] sm:$0xff]   ;;  %v9618_v6 = vld [vmem:[#allocation5 + $0x1188] sm:$0xff]  }
 0x25d   :  { %8618 = vmatprep.subr.bf16.mxu1 %v9533_v19  ;;  %v9581_v19 = vld [vmem:[#allocation5 + $0x10c8] sm:$0xff]   ;;  %v9589_v27 = vld [vmem:[#allocation5 + $0x10d8] sm:$0xff]  }
 0x25e   :  { %8597 = vmatpush3.bf16.msra.mxu0 %v9532_v18  ;;  %v9580_v18 = vld [vmem:[#allocation5 + $0x1008] sm:$0xff]  }
 0x25f   :  { %8626 = vmatprep.subr.bf16.mxu0 %v9537_v24  ;;  %v9586_v24 = vld [vmem:[#allocation5 + $0x1090] sm:$0xff]  }
 0x260   :  { %8619 = vmatpush3.bf16.msra.mxu1 %v9536_v23  ;;  %v9585_v23 = vld [vmem:[#allocation5 + $0x10d0] sm:$0xff]  }
 0x261   :  { %6595 = vmatmul.mubr.bf16.vlgmr.msra.gmra.mrb[56].mxu0 %v7315_v21  ;;  %8648 = vmatprep.subr.bf16.mxu1 %v9541_v29  ;;  %v9583_v21 = vld [vmem:[#allocation5 + $0x1050] sm:$0xff]   ;;  %v9591_v29 = vld [vmem:[#allocation5 + $0x1060] sm:$0xff]  }
 0x262   :  { %8627 = vmatpush3.bf16.msra.mxu0 %v9540_v28  ;;  %6674 = vmatprep.mubr.bf16.mxu0 %v7320_v8  ;;  %v9590_v28 = vld [vmem:[#allocation5 + $0x1098] sm:$0xff]   ;;  %v9620_v8 = vld [vmem:[#allocation5 + $0x1110] sm:$0xff]  }
 0x263   :  { %6635 = vmatmul.mubr.bf16.vlgmr.msra.gmra.mrb[56].mxu1 %v7317_v26  ;;  %8628 = vmatprep.subr.bf16.mxu0 %v9543_v31  ;;  %v9588_v26 = vld [vmem:[#allocation5 + $0x1018] sm:$0xff]  }
 0x264   :  { %8649 = vmatpush3.bf16.msra.mxu1 %v9542_v30  ;;  %v9592_v30 = vld [vmem:[#allocation5 + $0x1020] sm:$0xff]  }
 0x265   :  { %8650 = vmatprep.subr.bf16.mxu1 %v9545_v33 }
 0x266   :  { %8629 = vmatpush3.bf16.msra.mxu0 %v9544_v32  ;;  %v9593_v32 = vld [vmem:[#allocation5 + $0x10e0] sm:$0xff]  }
 0x267   :  { %8630 = vmatprep.subr.bf16.mxu0 %v9547_v35 }
 0x268   :  { %8651 = vmatpush3.bf16.msra.mxu1 %v9546_v34  ;;  %v9594_v34 = vld [vmem:[#allocation5 + $0x10a0] sm:$0xff]  }
 0x269   :  { %8652 = vmatprep.subr.bf16.mxu1 %v9549_v37  ;;  %v9595_v37 = vld [vmem:[#allocation5 + $0x1068] sm:$0xff]  }
 0x26a   :  { %8631 = vmatpush3.bf16.msra.mxu0 %v9548_v36 }
 0x26b   :  { %8632 = vmatprep.subr.bf16.mxu0 %v9551_v39 }
 0x26c   :  { %8653 = vmatpush3.bf16.msra.mxu1 %v9550_v38 }
 0x26d   :  { %8654 = vmatprep.subr.bf16.mxu1 %v9553_v41 }
 0x26e   :  { %8633 = vmatpush3.bf16.msra.mxu0 %v9552_v40  ;;  %v9596_v40 = vld [vmem:[#allocation5 + $0x1028] sm:$0xff]  }
 0x26f   :  { %8634 = vmatprep.subr.bf16.mxu0 %v9555_v43  ;;  %v9597_v43 = vld [vmem:[#allocation5 + $0x10e8] sm:$0xff]  }
 0x270   :  { %8655 = vmatpush3.bf16.msra.mxu1 %v9554_v42 }
 0x271   :  { %8656 = vmatprep.subr.bf16.mxu1 %v9557_v47  ;;  %v9599_v47 = vld [vmem:[#allocation5 + $0x1070] sm:$0xff]  }
 0x272   :  { %8635 = vmatpush3.bf16.msra.mxu0 %v9556_v45  ;;  %v9598_v45 = vld [vmem:[#allocation5 + $0x10a8] sm:$0xff]  }
 0x273   :  { %8636 = vmatprep.subr.bf16.mxu0 %v9559_v53  ;;  %v9603_v53 = vld [vmem:[#allocation5 + $0x1078] sm:$0xff]  }
 0x274   :  { %v8334_v44 = vpop.f32.mrb[32].mxu0  ;;  %8657 = vmatpush3.bf16.msra.mxu1 %v9558_v50  ;;  %v9600_v50 = vld [vmem:[#allocation5 + $0x1030] sm:$0xff]  }
 0x275   :  { %v8335_v46 = vpop.f32.mrb[33].mxu0  ;;  %8658 = vmatprep.subr.bf16.mxu1 %v9561_v58 }
 0x276   :  { %v8336_v48 = vadd.f32 %v8335_v46, %v8334_v44  ;;  %v8337_v49 = vpop.f32.mrb[34].mxu0  ;;  %v8356_v51 = vpop.f32.mrb[32].mxu1  ;;  %8637 = vmatpush3.bf16.msra.mxu0 %v9560_v55  ;;  %v9605_v55 = vld [vmem:[#allocation5 + $0x10f8] sm:$0xff]  }
 0x277   :  { %v8338_v54 = vpop.f32.mrb[35].mxu0  ;;  %v8357_v56 = vpop.f32.mrb[33].mxu1  ;;  %8638 = vmatprep.subr.bf16.mxu0 %v9563_v63 }
 0x278   :  { %v6117_v52 = vadd.f32 %v8336_v48, %v10053_v11  ;;  %v8358_v57 = vadd.f32 %v8357_v56, %v8356_v51  ;;  %v8359_v59 = vpop.f32.mrb[34].mxu1  ;;  %8659 = vmatpush3.bf16.msra.mxu1 %v9562_v60  ;;  %v146_v11 = vld [vmem:[#allocation2 + $0xf8] sm:$0xff]  ;;  %v9601_v51 = vld [vmem:[#allocation5 + $0x10f0] sm:$0xff]   ;;  %v147_v56 = vld [vmem:[#allocation2 + $0x100] sm:$0xff] }
 0x279   :  { %v8360_v61 = vpop.f32.mrb[35].mxu1  ;;  %8660 = vmatprep.subr.bf16.mxu1 %v9565_v1  ;;  %v7321_v12 = vcombine.low %v146_v11, %v146_v11  ;;  %v7322_v13 = vcombine.high %v146_v11, %v146_v11  ;;  %v9604_v54 = vld [vmem:[#allocation5 + $0x1038] sm:$0xff]   ;;  %v7324_v58 = vcombine.high %v147_v56, %v147_v56  ;;  %v9609_v60 = vld [vmem:[#allocation5 + $0x1140] sm:$0xff]  }
 0x27a   :  { %v10056_v62 = vadd.f32 %v8358_v57, %v6117_v52  ;;  %8639 = vmatpush3.bf16.msra.mxu0 %v9564_v0  ;;  %v9602_v52 = vld [vmem:[#allocation5 + $0x10b0] sm:$0xff]   ;;  %v7323_v57 = vcombine.low %v147_v56, %v147_v56  ;;  %v9608_v59 = vld [vmem:[#allocation5 + $0x10b8] sm:$0xff]   ;;  %v9612_v0 = vld [vmem:[#allocation5 + $0x1100] sm:$0xff]  }
 0x27b   :  { %8640 = vmatprep.subr.bf16.mxu0 %v9567_v3  ;;  %6714 = vmatprep.mubr.bf16.mxu1 %v7322_v13  ;;  %v148_v61 = vld [vmem:[#allocation2 + $0x108] sm:$0xff]  ;;  %v9613_v1 = vld [vmem:[#allocation5 + $0x11c0] sm:$0xff]   ;;  %v9623_v11 = vld [vmem:[#allocation5 + $0x1158] sm:$0xff]  }
 0x27c   :  { %8661 = vmatpush3.bf16.msra.mxu1 %v9566_v2  ;;  %v7326_v63 = vcombine.high %v148_v61, %v148_v61  ;;  %v9614_v2 = vld [vmem:[#allocation5 + $0x1180] sm:$0xff]   ;;  %v9615_v3 = vld [vmem:[#allocation5 + $0x1148] sm:$0xff]   ;;  %v9625_v13 = vld [vmem:[#allocation5 + $0x11d8] sm:$0xff]  }
 0x27d   :  { %8662 = vmatprep.subr.bf16.mxu1 %v9569_v5  ;;  %v9617_v5 = vld [vmem:[#allocation5 + $0x11c8] sm:$0xff]  }
 0x27e   :  { %8641 = vmatpush3.bf16.msra.mxu0 %v9568_v4  ;;  %v9616_v4 = vld [vmem:[#allocation5 + $0x1108] sm:$0xff]  }
 0x27f   :  { %8670 = vmatprep.subr.bf16.mxu0 %v9573_v10  ;;  %v9622_v10 = vld [vmem:[#allocation5 + $0x1190] sm:$0xff]   ;;  %v9654_v56 = vld [vmem:[#allocation5 + $0x1288] sm:$0xff]  }
 0x280   :  { %8663 = vmatpush3.bf16.msra.mxu1 %v9572_v9  ;;  %v9621_v9 = vld [vmem:[#allocation5 + $0x11d0] sm:$0xff]  }
 0x281   :  { %6675 = vmatmul.mubr.bf16.vlgmr.msra.gmra.mrb[60].mxu0 %v7319_v7  ;;  %8692 = vmatprep.subr.bf16.mxu1 %v9577_v15  ;;  %v9619_v7 = vld [vmem:[#allocation5 + $0x1150] sm:$0xff]   ;;  %v9627_v15 = vld [vmem:[#allocation5 + $0x1160] sm:$0xff]  }
 0x282   :  { %8671 = vmatpush3.bf16.msra.mxu0 %v9576_v14  ;;  %6754 = vmatprep.mubr.bf16.mxu0 %v7324_v58  ;;  %v9626_v14 = vld [vmem:[#allocation5 + $0x1198] sm:$0xff]   ;;  %v9656_v58 = vld [vmem:[#allocation5 + $0x1210] sm:$0xff]  }
 0x283   :  { %6715 = vmatmul.mubr.bf16.vlgmr.msra.gmra.mrb[60].mxu1 %v7321_v12  ;;  %8672 = vmatprep.subr.bf16.mxu0 %v9579_v17  ;;  %v9624_v12 = vld [vmem:[#allocation5 + $0x1118] sm:$0xff]  }
 0x284   :  { %8693 = vmatpush3.bf16.msra.mxu1 %v9578_v16  ;;  %6794 = vmatprep.mubr.bf16.mxu1 %v7326_v63  ;;  %v9628_v16 = vld [vmem:[#allocation5 + $0x1120] sm:$0xff]   ;;  %v9661_v63 = vld [vmem:[#allocation5 + $0x12d8] sm:$0xff]  }
 0x285   :  { %8694 = vmatprep.subr.bf16.mxu1 %v9581_v19 }
 0x286   :  { %8673 = vmatpush3.bf16.msra.mxu0 %v9580_v18  ;;  %v9629_v18 = vld [vmem:[#allocation5 + $0x11e0] sm:$0xff]  }
 0x287   :  { %8674 = vmatprep.subr.bf16.mxu0 %v9583_v21 }
 0x288   :  { %8695 = vmatpush3.bf16.msra.mxu1 %v9582_v20  ;;  %v9630_v20 = vld [vmem:[#allocation5 + $0x11a0] sm:$0xff]  }
 0x289   :  { %8696 = vmatprep.subr.bf16.mxu1 %v9585_v23  ;;  %v9631_v23 = vld [vmem:[#allocation5 + $0x1168] sm:$0xff]  }
 0x28a   :  { %8675 = vmatpush3.bf16.msra.mxu0 %v9584_v22 }
 0x28b   :  { %8676 = vmatprep.subr.bf16.mxu0 %v9587_v25 }
 0x28c   :  { %8697 = vmatpush3.bf16.msra.mxu1 %v9586_v24 }
 0x28d   :  { %8698 = vmatprep.subr.bf16.mxu1 %v9589_v27 }
 0x28e   :  { %8677 = vmatpush3.bf16.msra.mxu0 %v9588_v26  ;;  %v9632_v26 = vld [vmem:[#allocation5 + $0x1128] sm:$0xff]  }
 0x28f   :  { %8678 = vmatprep.subr.bf16.mxu0 %v9591_v29  ;;  %v9633_v29 = vld [vmem:[#allocation5 + $0x11e8] sm:$0xff]  }
 0x290   :  { %8699 = vmatpush3.bf16.msra.mxu1 %v9590_v28 }
 0x291   :  { %8700 = vmatprep.subr.bf16.mxu1 %v9593_v32 }
 0x292   :  { %8679 = vmatpush3.bf16.msra.mxu0 %v9592_v30 }
 0x293   :  { %8680 = vmatprep.subr.bf16.mxu0 %v9595_v37  ;;  %v9637_v37 = vld [vmem:[#allocation5 + $0x11f0] sm:$0xff]  }
 0x294   :  { %v8378_v31 = vpop.f32.mrb[36].mxu0  ;;  %8701 = vmatpush3.bf16.msra.mxu1 %v9594_v34  ;;  %v9635_v34 = vld [vmem:[#allocation5 + $0x1170] sm:$0xff]  }
 0x295   :  { %v8379_v33 = vpop.f32.mrb[37].mxu0  ;;  %8702 = vmatprep.subr.bf16.mxu1 %v9597_v43 }
 0x296   :  { %v8380_v35 = vadd.f32 %v8379_v33, %v8378_v31  ;;  %v8381_v36 = vpop.f32.mrb[38].mxu0  ;;  %v8400_v38 = vpop.f32.mrb[36].mxu1  ;;  %8681 = vmatpush3.bf16.msra.mxu0 %v9596_v40  ;;  %v9634_v31 = vld [vmem:[#allocation5 + $0x11a8] sm:$0xff]   ;;  %v9640_v40 = vld [vmem:[#allocation5 + $0x1138] sm:$0xff]  }
 0x297   :  { %v8382_v41 = vpop.f32.mrb[39].mxu0  ;;  %v8401_v42 = vpop.f32.mrb[37].mxu1  ;;  %8682 = vmatprep.subr.bf16.mxu0 %v9599_v47  ;;  %v9636_v36 = vld [vmem:[#allocation5 + $0x1130] sm:$0xff]   ;;  %v150_v47 = vld [vmem:[#allocation2 + $0x118] sm:$0xff] }
 0x298   :  { %v6197_v39 = vadd.f32 %v8380_v35, %v10056_v62  ;;  %v8402_v44 = vadd.f32 %v8401_v42, %v8400_v38  ;;  %v8403_v46 = vpop.f32.mrb[38].mxu1  ;;  %8703 = vmatpush3.bf16.msra.mxu1 %v9598_v45  ;;  %v7325_v62 = vcombine.low %v148_v61, %v148_v61  ;;  %v9638_v38 = vld [vmem:[#allocation5 + $0x11b0] sm:$0xff]   ;;  %v9641_v41 = vld [vmem:[#allocation5 + $0x11f8] sm:$0xff]  }
 0x299   :  { %v8404_v48 = vpop.f32.mrb[39].mxu1  ;;  %8704 = vmatprep.subr.bf16.mxu1 %v9601_v51  ;;  %v149_v42 = vld [vmem:[#allocation2 + $0x110] sm:$0xff]  ;;  %v9645_v46 = vld [vmem:[#allocation5 + $0x1240] sm:$0xff]  }
 0x29a   :  { %v10059_v49 = vadd.f32 %v8402_v44, %v6197_v39  ;;  %8683 = vmatpush3.bf16.msra.mxu0 %v9600_v50  ;;  %v9639_v39 = vld [vmem:[#allocation5 + $0x1178] sm:$0xff]   ;;  %v7327_v43 = vcombine.low %v149_v42, %v149_v42  ;;  %v7328_v44 = vcombine.high %v149_v42, %v149_v42  ;;  %v7329_v48 = vcombine.low %v150_v47, %v150_v47  ;;  %v9648_v50 = vld [vmem:[#allocation5 + $0x1200] sm:$0xff]  }
 0x29b   :  { %8684 = vmatprep.subr.bf16.mxu0 %v9603_v53  ;;  %v9644_v45 = vld [vmem:[#allocation5 + $0x11b8] sm:$0xff]   ;;  %v9649_v51 = vld [vmem:[#allocation5 + $0x12c0] sm:$0xff]   ;;  %v9651_v53 = vld [vmem:[#allocation5 + $0x1248] sm:$0xff]  }
 0x29c   :  { %8705 = vmatpush3.bf16.msra.mxu1 %v9602_v52  ;;  %v9650_v52 = vld [vmem:[#allocation5 + $0x1280] sm:$0xff]   ;;  %v9659_v61 = vld [vmem:[#allocation5 + $0x1258] sm:$0xff]  }
 0x29d   :  { %8706 = vmatprep.subr.bf16.mxu1 %v9605_v55  ;;  %v9653_v55 = vld [vmem:[#allocation5 + $0x12c8] sm:$0xff]   ;;  %v9689_v42 = vld [vmem:[#allocation5 + $0x1358] sm:$0xff]  }
 0x29e   :  { %8685 = vmatpush3.bf16.msra.mxu0 %v9604_v54  ;;  %v9652_v54 = vld [vmem:[#allocation5 + $0x1208] sm:$0xff]  }
 0x29f   :  { %8714 = vmatprep.subr.bf16.mxu0 %v9609_v60  ;;  %v9658_v60 = vld [vmem:[#allocation5 + $0x1290] sm:$0xff]  }
 0x2a0   :  { %8707 = vmatpush3.bf16.msra.mxu1 %v9608_v59  ;;  %v9657_v59 = vld [vmem:[#allocation5 + $0x12d0] sm:$0xff]  }
 0x2a1   :  { %6755 = vmatmul.mubr.bf16.vlgmr.msra.gmra.mrb[64].mxu0 %v7323_v57  ;;  %8736 = vmatprep.subr.bf16.mxu1 %v9613_v1  ;;  %v9655_v57 = vld [vmem:[#allocation5 + $0x1250] sm:$0xff]   ;;  %v9663_v1 = vld [vmem:[#allocation5 + $0x1260] sm:$0xff]  }
 0x2a2   :  { %8715 = vmatpush3.bf16.msra.mxu0 %v9612_v0  ;;  %6834 = vmatprep.mubr.bf16.mxu0 %v7328_v44  ;;  %v9662_v0 = vld [vmem:[#allocation5 + $0x1298] sm:$0xff]   ;;  %v9691_v44 = vld [vmem:[#allocation5 + $0x1360] sm:$0xff]  }
 0x2a3   :  { %6795 = vmatmul.mubr.bf16.vlgmr.msra.gmra.mrb[64].mxu1 %v7325_v62  ;;  %8716 = vmatprep.subr.bf16.mxu0 %v9615_v3  ;;  %v9660_v62 = vld [vmem:[#allocation5 + $0x1218] sm:$0xff]   ;;  %v9664_v3 = vld [vmem:[#allocation5 + $0x1220] sm:$0xff]  }
 0x2a4   :  { %8737 = vmatpush3.bf16.msra.mxu1 %v9614_v2 }
 0x2a5   :  { %8738 = vmatprep.subr.bf16.mxu1 %v9617_v5  ;;  %v9665_v5 = vld [vmem:[#allocation5 + $0x12e0] sm:$0xff]  }
 0x2a6   :  { %8717 = vmatpush3.bf16.msra.mxu0 %v9616_v4 }
 0x2a7   :  { %8718 = vmatprep.subr.bf16.mxu0 %v9619_v7 }
 0x2a8   :  { %8739 = vmatpush3.bf16.msra.mxu1 %v9618_v6 }
 0x2a9   :  { %8740 = vmatprep.subr.bf16.mxu1 %v9621_v9 }
 0x2aa   :  { %8719 = vmatpush3.bf16.msra.mxu0 %v9620_v8  ;;  %v9666_v8 = vld [vmem:[#allocation5 + $0x12a0] sm:$0xff]  }
 0x2ab   :  { %8720 = vmatprep.subr.bf16.mxu0 %v9623_v11  ;;  %v9667_v11 = vld [vmem:[#allocation5 + $0x1268] sm:$0xff]  }
 0x2ac   :  { %8741 = vmatpush3.bf16.msra.mxu1 %v9622_v10 }
 0x2ad   :  { %8742 = vmatprep.subr.bf16.mxu1 %v9625_v13  ;;  %v9668_v13 = vld [vmem:[#allocation5 + $0x1228] sm:$0xff]  }
 0x2ae   :  { %8721 = vmatpush3.bf16.msra.mxu0 %v9624_v12 }
 0x2af   :  { %8722 = vmatprep.subr.bf16.mxu0 %v9627_v15 }
 0x2b0   :  { %8743 = vmatpush3.bf16.msra.mxu1 %v9626_v14 }
 0x2b1   :  { %8744 = vmatprep.subr.bf16.mxu1 %v9629_v18  ;;  %v9670_v18 = vld [vmem:[#allocation5 + $0x12a8] sm:$0xff]  }
 0x2b2   :  { %8723 = vmatpush3.bf16.msra.mxu0 %v9628_v16  ;;  %v9669_v16 = vld [vmem:[#allocation5 + $0x12e8] sm:$0xff]  }
 0x2b3   :  { %8724 = vmatprep.subr.bf16.mxu0 %v9631_v23  ;;  %v9673_v23 = vld [vmem:[#allocation5 + $0x12f0] sm:$0xff]  }
 0x2b4   :  { %v8422_v17 = vpop.f32.mrb[40].mxu0  ;;  %8745 = vmatpush3.bf16.msra.mxu1 %v9630_v20 }
 0x2b5   :  { %v8423_v19 = vpop.f32.mrb[41].mxu0  ;;  %8746 = vmatprep.subr.bf16.mxu1 %v9633_v29 }
 0x2b6   :  { %v8424_v21 = vadd.f32 %v8423_v19, %v8422_v17  ;;  %v8425_v22 = vpop.f32.mrb[42].mxu0  ;;  %v8444_v24 = vpop.f32.mrb[40].mxu1  ;;  %8725 = vmatpush3.bf16.msra.mxu0 %v9632_v26  ;;  %v9676_v26 = vld [vmem:[#allocation5 + $0x1238] sm:$0xff]  }
 0x2b7   :  { %v8426_v27 = vpop.f32.mrb[43].mxu0  ;;  %v8445_v28 = vpop.f32.mrb[41].mxu1  ;;  %8726 = vmatprep.subr.bf16.mxu0 %v9635_v34  ;;  %v9672_v22 = vld [vmem:[#allocation5 + $0x1230] sm:$0xff]  }
 0x2b8   :  { %v6277_v25 = vadd.f32 %v8424_v21, %v10059_v49  ;;  %v8446_v30 = vadd.f32 %v8445_v28, %v8444_v24  ;;  %v8447_v32 = vpop.f32.mrb[42].mxu1  ;;  %8747 = vmatpush3.bf16.msra.mxu1 %v9634_v31  ;;  %v7330_v49 = vcombine.high %v150_v47, %v150_v47  ;;  %v9671_v21 = vld [vmem:[#allocation5 + $0x1270] sm:$0xff]   ;;  %v9677_v27 = vld [vmem:[#allocation5 + $0x12f8] sm:$0xff]   ;;  %v151_v28 = vld [vmem:[#allocation2 + $0x120] sm:$0xff] }
 0x2b9   :  { %v8448_v35 = vpop.f32.mrb[43].mxu1  ;;  %8748 = vmatprep.subr.bf16.mxu1 %v9637_v37  ;;  %v9674_v24 = vld [vmem:[#allocation5 + $0x12b0] sm:$0xff]   ;;  %v7331_v29 = vcombine.low %v151_v28, %v151_v28  ;;  %v9680_v31 = vld [vmem:[#allocation5 + $0x12b8] sm:$0xff]   ;;  %v9681_v32 = vld [vmem:[#allocation5 + $0x1340] sm:$0xff]  }
 0x2ba   :  { %v10062_v33 = vadd.f32 %v8446_v30, %v6277_v25  ;;  %8727 = vmatpush3.bf16.msra.mxu0 %v9636_v36  ;;  %6874 = vmatprep.mubr.bf16.mxu1 %v7330_v49  ;;  %v9675_v25 = vld [vmem:[#allocation5 + $0x1278] sm:$0xff]   ;;  %v7332_v30 = vcombine.high %v151_v28, %v151_v28  ;;  %v9684_v36 = vld [vmem:[#allocation5 + $0x1300] sm:$0xff]   ;;  %v9685_v37 = vld [vmem:[#allocation5 + $0x1348] sm:$0xff]  }
 0x2bb   :  { %8728 = vmatprep.subr.bf16.mxu0 %v9639_v39  ;;  %v9687_v39 = vld [vmem:[#allocation5 + $0x1350] sm:$0xff]   ;;  %v9699_v47 = vld [vmem:[#allocation5 + $0x1380] sm:$0xff]  }
 0x2bc   :  { %8749 = vmatpush3.bf16.msra.mxu1 %v9638_v38  ;;  %v9686_v38 = vld [vmem:[#allocation5 + $0x1308] sm:$0xff]   ;;  %v153_v49 = vld [vmem:[#allocation2 + $0x130] sm:$0xff] }
 0x2bd   :  { %8750 = vmatprep.subr.bf16.mxu1 %v9641_v41  ;;  %v9688_v41 = vld [vmem:[#allocation5 + $0x1310] sm:$0xff]  }
 0x2be   :  { %8729 = vmatpush3.bf16.msra.mxu0 %v9640_v40  ;;  %v9904_v40 = vmov 0.0  }
 0x2bf   :  { %8758 = vmatprep.subr.bf16.mxu0 %v9645_v46  ;;  %v9693_v46 = vld [vmem:[#allocation5 + $0x1368] sm:$0xff]  }
 0x2c0   :  { %8751 = vmatpush3.bf16.msra.mxu1 %v9644_v45  ;;  %v9692_v45 = vld [vmem:[#allocation5 + $0x1320] sm:$0xff]  }
 0x2c1   :  { %6835 = vmatmul.mubr.bf16.vlgmr.msra.gmra.mrb[68].mxu0 %v7327_v43  ;;  %8780 = vmatprep.subr.bf16.mxu1 %v9649_v51  ;;  %v9690_v43 = vld [vmem:[#allocation5 + $0x1318] sm:$0xff]  }
 0x2c2   :  { %8759 = vmatpush3.bf16.msra.mxu0 %v9648_v50  ;;  %6914 = vmatprep.mubr.bf16.mxu0 %v7332_v30  ;;  %v9702_v50 = vld [vmem:[#allocation2 + $0x138] ss:$0 sps:$4 sm:$0xff]   ;;  %v7044_v30 = vld [vmem:[#allocation8 + $0x8] sm:$0xff] }
 0x2c3   :  { %6875 = vmatmul.mubr.bf16.vlgmr.msra.gmra.mrb[68].mxu1 %v7329_v48  ;;  %8760 = vmatprep.subr.bf16.mxu0 %v9651_v53 }
 0x2c4   :  { %8781 = vmatpush3.bf16.msra.mxu1 %v9650_v52  ;;  %v7336_v52 = vcombine.high %v153_v49, %v153_v49 }
 0x2c5   :  { %8782 = vmatprep.subr.bf16.mxu1 %v9653_v55 }
 0x2c6   :  { %8761 = vmatpush3.bf16.msra.mxu0 %v9652_v54 }
 0x2c7   :  { %8762 = vmatprep.subr.bf16.mxu0 %v9655_v57 }
 0x2c8   :  { %8783 = vmatpush3.bf16.msra.mxu1 %v9654_v56  ;;  %v9694_v56 = vld [vmem:[#allocation5 + $0x1328] sm:$0xff]  }
 0x2c9   :  { %8784 = vmatprep.subr.bf16.mxu1 %v9657_v59  ;;  %v9695_v59 = vld [vmem:[#allocation5 + $0x1370] sm:$0xff]  }
 0x2ca   :  { %8763 = vmatpush3.bf16.msra.mxu0 %v9656_v58 }
 0x2cb   :  { %8764 = vmatprep.subr.bf16.mxu0 %v9659_v61 }
 0x2cc   :  { %8785 = vmatpush3.bf16.msra.mxu1 %v9658_v60 }
 0x2cd   :  { %8786 = vmatprep.subr.bf16.mxu1 %v9661_v63 }
 0x2ce   :  { %8765 = vmatpush3.bf16.msra.mxu0 %v9660_v62 }
 0x2cf   :  { %8766 = vmatprep.subr.bf16.mxu0 %v9663_v1  ;;  %v9696_v1 = vld [vmem:[#allocation5 + $0x1330] sm:$0xff]  }
 0x2d0   :  { %8787 = vmatpush3.bf16.msra.mxu1 %v9662_v0 }
 0x2d1   :  { %8788 = vmatprep.subr.bf16.mxu1 %v9665_v5 }
 0x2d2   :  { %8767 = vmatpush3.bf16.msra.mxu0 %v9664_v3  ;;  %v9698_v3 = vld [vmem:[#allocation5 + $0x1338] sm:$0xff]  }
 0x2d3   :  { %8768 = vmatprep.subr.bf16.mxu0 %v9667_v11 }
 0x2d4   :  { %v8466_v2 = vpop.f32.mrb[44].mxu0  ;;  %8789 = vmatpush3.bf16.msra.mxu1 %v9666_v8 }
 0x2d5   :  { %v8467_v4 = vpop.f32.mrb[45].mxu0  ;;  %8790 = vmatprep.subr.bf16.mxu1 %v9669_v16 }
 0x2d6   :  { %v8468_v6 = vadd.f32 %v8467_v4, %v8466_v2  ;;  %v8469_v7 = vpop.f32.mrb[46].mxu0  ;;  %v8488_v9 = vpop.f32.mrb[44].mxu1  ;;  %8769 = vmatpush3.bf16.msra.mxu0 %v9668_v13  ;;  %v9697_v2 = vld [vmem:[#allocation5 + $0x1378] sm:$0xff]   ;;  %v7335_v4 = vcombine.low %v153_v49, %v153_v49 }
 0x2d7   :  { %v8470_v12 = vpop.f32.mrb[47].mxu0  ;;  %v8489_v14 = vpop.f32.mrb[45].mxu1  ;;  %8770 = vmatprep.subr.bf16.mxu0 %v9671_v21 }
 0x2d8   :  { %v6357_v10 = vadd.f32 %v8468_v6, %v10062_v33  ;;  %v8490_v15 = vadd.f32 %v8489_v14, %v8488_v9  ;;  %v8491_v17 = vpop.f32.mrb[46].mxu1  ;;  %8791 = vmatpush3.bf16.msra.mxu1 %v9670_v18  ;;  %v152_v33 = vld [vmem:[#allocation2 + $0x128] sm:$0xff] }
 0x2d9   :  { %v8492_v19 = vpop.f32.mrb[47].mxu1  ;;  %8792 = vmatprep.subr.bf16.mxu1 %v9673_v23  ;;  %v7333_v34 = vcombine.low %v152_v33, %v152_v33  ;;  %v7334_v35 = vcombine.high %v152_v33, %v152_v33 }
 0x2da   :  { %v10065_v20 = vadd.f32 %v8490_v15, %v6357_v10  ;;  %8771 = vmatpush3.bf16.msra.mxu0 %v9672_v22 }
 0x2db   :  { %8772 = vmatprep.subr.bf16.mxu0 %v9675_v25  ;;  %6954 = vmatprep.mubr.bf16.mxu1 %v7334_v35 }
 0x2dc   :  { %8793 = vmatpush3.bf16.msra.mxu1 %v9674_v24 }
 0x2dd   :  { %8794 = vmatprep.subr.bf16.mxu1 %v9677_v27 }
 0x2de   :  { %8773 = vmatpush3.bf16.msra.mxu0 %v9676_v26 }
 0x2df   :  { %8802 = vmatprep.subr.bf16.mxu0 %v9681_v32  ;;  %v9906_v32 = vmov 0.0|0.0  }
 0x2e0   :  { %8795 = vmatpush3.bf16.msra.mxu1 %v9680_v31  ;;  %v7045_v31 = vld [vmem:[#allocation8 + $0x10] sm:$0xff] }
 0x2e1   :  { %6915 = vmatmul.mubr.bf16.vlgmr.msra.gmra.mrb[72].mxu0 %v7331_v29  ;;  %8860 = vmatprep.subr.bf16.mxu1 %v9904_v40  ;;  %v7043_v29 = vld [vmem:[#allocation8] sm:$0xff] }
 0x2e2   :  { %8803 = vmatpush3.bf16.msra.mxu0 %v9684_v36  ;;  %6994 = vmatprep.mubr.bf16.mxu0 %v7336_v52  ;;  %v8937_v33 = vpack.c.bf16 %v7044_v30, %v7043_v29  ;;  %v7047_v36 = vld [vmem:[#allocation8 + $0x20] sm:$0xff] }
 0x2e3   :  { %6955 = vmatmul.mubr.bf16.vlgmr.msra.gmra.mrb[72].mxu1 %v7333_v34  ;;  %8804 = vmatprep.subr.bf16.mxu0 %v9685_v37  ;;  %v7046_v34 = vld [vmem:[#allocation8 + $0x18] sm:$0xff]  ;;  %v7048_v37 = vld [vmem:[#allocation8 + $0x28] sm:$0xff] }
 0x2e4   :  { %8862 = vmatprep.mubr.msk.bf16.mxu1 %vm9905_vm0, %v9904_v40  ;;  %8861 = vmatpush3.bf16.msra.mxu1 %v9699_v47  ;;  %v8940_v35 = vpack.c.bf16 %v7046_v34, %v7045_v31 }
 0x2e5   :  { %8936 = vmatprep.subr.bf16.mxu1 %v9906_v32 }
 0x2e6   :  { %8805 = vmatpush3.bf16.msra.mxu0 %v9686_v38  ;;  %v8943_v38 = vpack.c.bf16 %v7048_v37, %v7047_v36 }
 0x2e7   :  { %8806 = vmatprep.subr.bf16.mxu0 %v9687_v39  ;;  %v7049_v39 = vld [vmem:[#allocation8 + $0x30] sm:$0xff] }
 0x2ea   :  { %8807 = vmatpush3.bf16.msra.mxu0 %v9688_v41 }
 0x2eb   :  { %8808 = vmatprep.subr.bf16.mxu0 %v9689_v42  ;;  %8863 = vmatmul.mubr.msk.bf16.vlgmr.msra.gmra.mrb[76].mxu1 %vm5438_vm1, %v9702_v50  ;;  %v7051_v42 = vld [vmem:[#allocation8 + $0x40] sm:$0xff] }
 0x2ec   :  { %8898 = vmatprep.mubr.msk.f32.mxu1 %vm9905_vm0, %v9904_v40  ;;  %8938 = vmatpush3.bf16.msra.mxu1 %v8937_v33 }
 0x2ed   :  { %8939 = vmatprep.subr.bf16.mxu1 %v9906_v32 }
 0x2ee   :  { %8809 = vmatpush3.bf16.msra.mxu0 %v9690_v43  ;;  %v7052_v43 = vld [vmem:[#allocation8 + $0x48] sm:$0xff] }
 0x2ef   :  { %8810 = vmatprep.subr.bf16.mxu0 %v9691_v44  ;;  %v8949_v44 = vpack.c.bf16 %v7052_v43, %v7051_v42 }
 0x2f0   :  { %8941 = vmatpush3.bf16.msra.mxu1 %v8940_v35 }
 0x2f1   :  { %8942 = vmatprep.subr.bf16.mxu1 %v9906_v32 }
 0x2f2   :  { %8811 = vmatpush3.bf16.msra.mxu0 %v9692_v45  ;;  %v7053_v45 = vld [vmem:[#allocation8 + $0x50] sm:$0xff] }
 0x2f3   :  { %8812 = vmatprep.subr.bf16.mxu0 %v9693_v46  ;;  %v7054_v46 = vld [vmem:[#allocation8 + $0x58] sm:$0xff] }
 0x2f4   :  { %v8510_v48 = vpop.f32.mrb[48].mxu0  ;;  %8944 = vmatpush3.bf16.msra.mxu1 %v8943_v38  ;;  %v8952_v47 = vpack.c.bf16 %v7054_v46, %v7053_v45 }
 0x2f5   :  { %v8511_v51 = vpop.f32.mrb[49].mxu0  ;;  %8945 = vmatprep.subr.bf16.mxu1 %v9906_v32 }
 0x2f6   :  { %v8512_v53 = vadd.f32 %v8511_v51, %v8510_v48  ;;  %v8513_v54 = vpop.f32.mrb[50].mxu0  ;;  %v8532_v55 = vpop.f32.mrb[48].mxu1  ;;  %8813 = vmatpush3.bf16.msra.mxu0 %v9694_v56 }
 0x2f7   :  { %v8514_v57 = vpop.f32.mrb[51].mxu0  ;;  %v8533_v58 = vpop.f32.mrb[49].mxu1  ;;  %8814 = vmatprep.subr.bf16.mxu0 %v9695_v59  ;;  %v7056_v54 = vld [vmem:[#allocation8 + $0x68] sm:$0xff] }
 0x2f8   :  { %v6437_v60 = vadd.f32 %v8512_v53, %v10065_v20  ;;  %v8534_v61 = vadd.f32 %v8533_v58, %v8532_v55  ;;  %v8535_v62 = vpop.f32.mrb[50].mxu1  ;;  %v7055_v53 = vld [vmem:[#allocation8 + $0x60] sm:$0xff] }
 0x2f9   :  { %v8536_v63 = vpop.f32.mrb[51].mxu1  ;;  %v8955_v57 = vpack.c.bf16 %v7056_v54, %v7055_v53 }
 0x2fa   :  { %v6477_v0 = vadd.f32 %v8534_v61, %v6437_v60  ;;  %8815 = vmatpush3.bf16.msra.mxu0 %v9696_v1  ;;  %v7057_v63 = vld [vmem:[#allocation8 + $0x70] sm:$0xff] }
 0x2fb   :  { %8816 = vmatprep.subr.bf16.mxu0 %v9697_v2  ;;  %v7137_v2 = vld [vmem:[#allocation11] sm:$0xff] }
 0x2fe   :  { %8817 = vmatpush3.bf16.msra.mxu0 %v9698_v3  ;;  %v7138_v3 = vld [vmem:[#allocation11 + $0x8] sm:$0xff] }
 0x2ff   :  { %8960 = vmatprep.subr.bf16.mxu0 %v9906_v32 }
 0x301   :  { %6995 = vmatmul.mubr.bf16.vlgmr.msra.gmra.mrb[76].mxu0 %v7335_v4  ;;  %v7139_v4 = vld [vmem:[#allocation11 + $0x10] sm:$0xff] }
 0x302   :  { %8933 = vmatprep.mubr.msk.f32.mxu0 %vm9905_vm0, %v9904_v40  ;;  %v7050_v40 = vld [vmem:[#allocation8 + $0x38] sm:$0xff] }
 0x303   :  { %v8946_v41 = vpack.c.bf16 %v7050_v40, %v7049_v39 }
 0x305   :  { %8947 = vmatpush3.bf16.msra.mxu1 %v8946_v41 }
 0x306   :  { %8948 = vmatprep.subr.bf16.mxu1 %v9906_v32 }
 0x309   :  { %8950 = vmatpush3.bf16.msra.mxu1 %v8949_v44 }
 0x30a   :  { %8951 = vmatprep.subr.bf16.mxu1 %v9906_v32 }
 0x30d   :  { %8953 = vmatpush3.bf16.msra.mxu1 %v8952_v47 }
 0x30e   :  { %8954 = vmatprep.subr.bf16.mxu1 %v9906_v32 }
 0x311   :  { %8956 = vmatpush3.bf16.msra.mxu1 %v8955_v57 }
 0x312   :  { %8957 = vmatprep.subr.bf16.mxu1 %v9906_v32 }
 0x314   :  { %v8554_v5 = vpop.f32.mrb[52].mxu0 }
 0x315   :  { %v8555_v6 = vpop.f32.mrb[53].mxu0 }
 0x316   :  { %v8556_v7 = vadd.f32 %v8555_v6, %v8554_v5  ;;  %v8557_v8 = vpop.f32.mrb[54].mxu0  ;;  %v8576_v9 = vpop.f32.mrb[52].mxu1  ;;  %v8961_v5 = vpack.c.bf16 %v7138_v3, %v7137_v2  ;;  %v7140_v6 = vld [vmem:[#allocation11 + $0x18] sm:$0xff] }
 0x317   :  { %v8558_v10 = vpop.f32.mrb[55].mxu0  ;;  %v8577_v11 = vpop.f32.mrb[53].mxu1  ;;  %v7141_v8 = vld [vmem:[#allocation11 + $0x20] sm:$0xff] }
 0x318   :  { %v6517_v12 = vadd.f32 %v8556_v7, %v6477_v0  ;;  %v8578_v13 = vadd.f32 %v8577_v11, %v8576_v9  ;;  %v8579_v14 = vpop.f32.mrb[54].mxu1  ;;  %v7058_v0 = vld [vmem:[#allocation8 + $0x78] sm:$0xff]  ;;  %8962 = vmatpush3.bf16.msra.mxu0 %v8961_v5  ;;  %v8964_v7 = vpack.c.bf16 %v7140_v6, %v7139_v4  ;;  %v7142_v9 = vld [vmem:[#allocation11 + $0x28] sm:$0xff] }
 0x319   :  { %v8580_v15 = vpop.f32.mrb[55].mxu1  ;;  %v8958_v1 = vpack.c.bf16 %v7058_v0, %v7057_v63  ;;  %8963 = vmatprep.subr.bf16.mxu0 %v9906_v32  ;;  %v8967_v10 = vpack.c.bf16 %v7142_v9, %v7141_v8  ;;  %v7143_v11 = vld [vmem:[#allocation11 + $0x30] sm:$0xff]  ;;  %v7145_v14 = vld [vmem:[#allocation11 + $0x40] sm:$0xff]  ;;  %v7152_v8 = vld [vmem:[#allocation11 + $0x78] sm:$0xff] }
 0x31a   :  { %v6557_v16 = vadd.f32 %v8578_v13, %v6517_v12  ;;  %v7144_v12 = vld [vmem:[#allocation11 + $0x38] sm:$0xff]  ;;  %v7146_v15 = vld [vmem:[#allocation11 + $0x48] sm:$0xff] }
 0x31b   :  { %8959 = vmatpush3.bf16.msra.mxu1 %v8958_v1  ;;  %v8970_v13 = vpack.c.bf16 %v7144_v12, %v7143_v11 }
 0x31c   :  { %8965 = vmatpush3.bf16.msra.mxu0 %v8964_v7  ;;  %v7151_v7 = vld [vmem:[#allocation11 + $0x70] sm:$0xff] }
 0x31d   :  { %8966 = vmatprep.subr.bf16.mxu0 %v9906_v32  ;;  %v8982_v9 = vpack.c.bf16 %v7152_v8, %v7151_v7 }
 0x320   :  { %8968 = vmatpush3.bf16.msra.mxu0 %v8967_v10  ;;  %v7964_v10 = vld [vmem:[#allocation10] ss:$0 sm:$0xff] }
 0x321   :  { %8969 = vmatprep.subr.bf16.mxu0 %v9906_v32 }
 0x324   :  { %8971 = vmatpush3.bf16.msra.mxu0 %v8970_v13 }
 0x325   :  { %8972 = vmatprep.subr.bf16.mxu0 %v9906_v32 }
 0x334   :  { %v8598_v17 = vpop.f32.mrb[56].mxu0 }
 0x335   :  { %v8599_v18 = vpop.f32.mrb[57].mxu0 }
 0x336   :  { %v8600_v19 = vadd.f32 %v8599_v18, %v8598_v17  ;;  %v8601_v20 = vpop.f32.mrb[58].mxu0  ;;  %v8620_v21 = vpop.f32.mrb[56].mxu1  ;;  %v7147_v17 = vld [vmem:[#allocation11 + $0x50] sm:$0xff]  ;;  %v7148_v18 = vld [vmem:[#allocation11 + $0x58] sm:$0xff] }
 0x337   :  { %v8602_v22 = vpop.f32.mrb[59].mxu0  ;;  %v8621_v24 = vpop.f32.mrb[57].mxu1  ;;  %v7149_v20 = vld [vmem:[#allocation11 + $0x60] sm:$0xff] }
 0x338   :  { %v6597_v23 = vadd.f32 %v8600_v19, %v6557_v16  ;;  %v8622_v25 = vadd.f32 %v8621_v24, %v8620_v21  ;;  %v8623_v26 = vpop.f32.mrb[58].mxu1  ;;  %v8973_v16 = vpack.c.bf16 %v7146_v15, %v7145_v14  ;;  %v8976_v19 = vpack.c.bf16 %v7148_v18, %v7147_v17  ;;  %v7150_v21 = vld [vmem:[#allocation11 + $0x68] sm:$0xff]  ;;  %v7965_v15 = vld [vmem:[#allocation13] ss:$0 sm:$0xff] }
 0x339   :  { %v8624_v27 = vpop.f32.mrb[59].mxu1 }
 0x33a   :  { %v6637_v28 = vadd.f32 %v8622_v25, %v6597_v23  ;;  %8974 = vmatpush3.bf16.msra.mxu0 %v8973_v16  ;;  %v8979_v27 = vpack.c.bf16 %v7150_v21, %v7149_v20 }
 0x33b   :  { %8975 = vmatprep.subr.bf16.mxu0 %v9906_v32 }
 0x33e   :  { %8977 = vmatpush3.bf16.msra.mxu0 %v8976_v19 }
 0x33f   :  { %8978 = vmatprep.subr.bf16.mxu0 %v9906_v32 }
 0x342   :  { %8980 = vmatpush3.bf16.msra.mxu0 %v8979_v27 }
 0x343   :  { %8981 = vmatprep.subr.bf16.mxu0 %v9906_v32 }
 0x346   :  { %8983 = vmatpush3.bf16.msra.mxu0 %v8982_v9 }
 0x354   :  { %v8642_v48 = vpop.f32.mrb[60].mxu0 }
 0x355   :  { %v8643_v49 = vpop.f32.mrb[61].mxu0 }
 0x356   :  { %v8644_v50 = vadd.f32 %v8643_v49, %v8642_v48  ;;  %v8645_v51 = vpop.f32.mrb[62].mxu0  ;;  %v8664_v52 = vpop.f32.mrb[60].mxu1 }
 0x357   :  { %v8646_v55 = vpop.f32.mrb[63].mxu0  ;;  %v8665_v56 = vpop.f32.mrb[61].mxu1 }
 0x358   :  { %v6677_v58 = vadd.f32 %v8644_v50, %v6637_v28  ;;  %v8666_v59 = vadd.f32 %v8665_v56, %v8664_v52  ;;  %v8667_v60 = vpop.f32.mrb[62].mxu1 }
 0x359   :  { %v8668_v61 = vpop.f32.mrb[63].mxu1 }
 0x35a   :  { %v6717_v62 = vadd.f32 %v8666_v59, %v6677_v58 }
 0x374   :  { %v8686_v22 = vpop.f32.mrb[64].mxu0 }
 0x375   :  { %v8687_v23 = vpop.f32.mrb[65].mxu0 }
 0x376   :  { %v8688_v24 = vadd.f32 %v8687_v23, %v8686_v22  ;;  %v8689_v25 = vpop.f32.mrb[66].mxu0  ;;  %v8708_v26 = vpop.f32.mrb[64].mxu1 }
 0x377   :  { %v8690_v28 = vpop.f32.mrb[67].mxu0  ;;  %v8709_v29 = vpop.f32.mrb[65].mxu1 }
 0x378   :  { %v6757_v30 = vadd.f32 %v8688_v24, %v6717_v62  ;;  %v8710_v31 = vadd.f32 %v8709_v29, %v8708_v26  ;;  %v8711_v33 = vpop.f32.mrb[66].mxu1 }
 0x379   :  { %v8712_v34 = vpop.f32.mrb[67].mxu1 }
 0x37a   :  { %v6797_v35 = vadd.f32 %v8710_v31, %v6757_v30 }
 0x394   :  { %v8730_v36 = vpop.f32.mrb[68].mxu0 }
 0x395   :  { %v8731_v37 = vpop.f32.mrb[69].mxu0 }
 0x396   :  { %v8732_v38 = vadd.f32 %v8731_v37, %v8730_v36  ;;  %v8733_v39 = vpop.f32.mrb[70].mxu0  ;;  %v8752_v40 = vpop.f32.mrb[68].mxu1 }
 0x397   :  { %v8734_v41 = vpop.f32.mrb[71].mxu0  ;;  %v8753_v43 = vpop.f32.mrb[69].mxu1 }
 0x398   :  { %v6837_v42 = vadd.f32 %v8732_v38, %v6797_v35  ;;  %v8754_v44 = vadd.f32 %v8753_v43, %v8752_v40  ;;  %v8755_v45 = vpop.f32.mrb[70].mxu1 }
 0x399   :  { %v8756_v46 = vpop.f32.mrb[71].mxu1 }
 0x39a   :  { %v6877_v47 = vadd.f32 %v8754_v44, %v6837_v42 }
 0x3b4   :  { %v8774_v48 = vpop.f32.mrb[72].mxu0 }
 0x3b5   :  { %v8775_v49 = vpop.f32.mrb[73].mxu0 }
 0x3b6   :  { %v8776_v50 = vadd.f32 %v8775_v49, %v8774_v48  ;;  %v8777_v51 = vpop.f32.mrb[74].mxu0  ;;  %v8796_v52 = vpop.f32.mrb[72].mxu1 }
 0x3b7   :  { %v8778_v53 = vpop.f32.mrb[75].mxu0  ;;  %v8797_v54 = vpop.f32.mrb[73].mxu1 }
 0x3b8   :  { %v6917_v32 = vadd.f32 %v8776_v50, %v6877_v47  ;;  %v8798_v55 = vadd.f32 %v8797_v54, %v8796_v52  ;;  %v8799_v56 = vpop.f32.mrb[74].mxu1 }
 0x3b9   :  { %v8800_v57 = vpop.f32.mrb[75].mxu1 }
 0x3ba   :  { %v6957_v58 = vadd.f32 %v8798_v55, %v6917_v32 }
 0x3be   :  { %v7036_v59 = vpop.f32.mrb[76].mxu1 }
 0x3bf   :  { %v8864_v60 = vpop.f32.mrb[77].mxu1 }
 0x3c0   :  { %v7039_v61 = vpop.f32.mrb[78].mxu1 }
 0x3c1   :  { %v8865_v62 = vpop.f32.mrb[79].mxu1 }
 0x3d4   :  { %v8818_v63 = vpop.f32.mrb[76].mxu0 }
 0x3d5   :  { %v8819_v0 = vpop.f32.mrb[77].mxu0 }
 0x3d6   :  { %v8820_v1 = vadd.f32 %v8819_v0, %v8818_v63  ;;  %v8821_v2 = vpop.f32.mrb[78].mxu0 }
 0x3d7   :  { %v8822_v3 = vpop.f32.mrb[79].mxu0 }
 0x3d8   :  { %v6997_v4 = vadd.f32 %v8820_v1, %v6957_v58 }
 0x3da   :  { %v7037_v5 = vadd.f32 %v7036_v59, %v6997_v4 }
 0x3dc   :  { %v7042_v6 = vmax.f32 %v7037_v5, 0.0 }
 0x3de   :  { %8899 = vmatmul.mubr.f32.vlgmr.msra.gmra.mrb[80].mxu1 %v7042_v6 }
 0x4b1   :  { %v7132_v11 = vpop.f32.mrb[80].mxu1 }
 0x4b2   :  { %v7133_v12 = vadd.f32 %v7964_v10, %v7132_v11  ;;  %v8900_v13 = vpop.f32.mrb[81].mxu1 }
 0x4b4   :  { %v7136_v14 = vmax.f32 %v7133_v12, 0.0 }
 0x4b6   :  { %8934 = vmatmul.mubr.f32.vlgmr.msra.gmra.mrb[80].mxu0 %v7136_v14 }
 0x589   :  { %v7226_v16 = vpop.f32.mrb[80].mxu0 }
 0x58a   :  { %v7227_v17 = vadd.f32 %v7965_v15, %v7226_v16  ;;  %v8935_v18 = vpop.f32.mrb[81].mxu0 }
 0x58c   :  { %7230 = vmax.xlane.f32.xlu0 %v7227_v17 }
 0x619   :  { %v7231_v19 = vpop.xlane.xlu0 %7230 }
 0x61a   :  { %v7232_v20 = vsub.f32 %v7227_v17, %v7231_v19 }
 0x61c   :  { %v7233_v21 = vmul.f32 1.442695, %v7232_v20 }
 0x61e   :  { %9703 = vpow2.f32 %v7233_v21 }
 0x628   :  { %v9704_v22 = vpop.eup %9703 }
 0x629   :  { %7235 = vadd.xlane.f32.xlu0 %v9704_v22 }
 0x6b6   :  { %v7236_v23 = vpop.xlane.xlu0 %7235 }
 0x6b7   :  { %9705 = vrcp.f32 %v7236_v23 }
 0x6c1   :  { %v9706_v24 = vpop.eup %9705 }
 0x6c2   :  { %v7238_v25 = vmul.f32 %v9706_v24, %v9704_v22 }
 0x6c4   :  { %7239 = vst [vmem:[#allocation14] sm:$0xff] %v7238_v25 }
 0x6c5   :  { %9872 = shalt.err (!%p9869_p4)
}
 0x6c6   :  { %s9873_s3 = scalar_lea.hbm %s10106_s7, 128 }
 0x6c7   :  { %p9874_p5 = scmp.ne.s32.totalorder %s10106_s7, %s9873_s3  ;;  %p9877_p6 = scmp.lt.u32.totalorder %s9873_s3, %s10106_s7 }
 0x6c9   :  { %p9879_p7 = pnand %p9877_p6, %p9874_p5 }
 0x6cb   :  { %9882 = shalt.err (!%p9879_p7)
}
 0x6cc   :  { %7249 = dma.vmem_to_hbm [thread:$0]  %s7247_s14, 128, %s10106_s7, [#allocation4]  }
 0x6cd   :  { %9891 = dma.done.wait [#allocation4], 128  }
 0x6ce   :  { %9892 = vsyncadd [#allocation4], 4294967168 }
 0x6cf   :  { %7253 = vsyncpa [#allocation3], 1 }
 0x6d0   :  { %7254 = vsyncpa [#allocation6], 1 }
 0x6d1   :  { %7255 = vsyncpa [#allocation9], 1 }
 0x6d2   :  { %7256 = vsyncpa [#allocation12], 1 }
 0x6d3   :  { %7257 = vsyncpa [#allocation4], 1 }

</bundles_post_ra>
